<compile_context>
chip_gen: v5e
topology: v5e:2x2
jax: 0.10.0
libtpu: 0.0.40
codegen_flags: <defaults>
</compile_context>

<pallas_src>
import functools
import math

import jax
import jax.numpy as jnp
from jax.experimental import pallas as pl
from jax.experimental.pallas import tpu as pltpu


def clip_layer_kernel(x_ref,
                      ln1_g_ref, ln1_b_ref,
                      wq_ref, wk_ref, wv_ref,
                      bq_ref, bk_ref, bv_ref,
                      wo_ref, bo_ref,
                      ln2_g_ref, ln2_b_ref,
                      w1_ref, b1_ref,
                      w2_ref, b2_ref,
                      o_ref,
                      *, n_heads):
    f32 = jnp.float32
    bf16 = jnp.bfloat16
    eps = 1e-5                               # torch.nn.LayerNorm default

    x = x_ref[0].astype(f32)                 # (S, D)
    S, D = x.shape

    def layernorm(v, g, b):                  # f32 statistics
        mu = jnp.mean(v, axis=-1, keepdims=True)
        var = jnp.mean((v - mu) ** 2, axis=-1, keepdims=True)
        return (v - mu) * jax.lax.rsqrt(var + eps) * g + b

    # causal mask: strictly-above-diagonal positions are masked (== triu(.,1))
    row = jax.lax.broadcasted_iota(jnp.int32, (S, S), 0)
    col = jax.lax.broadcasted_iota(jnp.int32, (S, S), 1)
    causal = col > row

    # ---- attention block ---------------------------------------------------
    h = layernorm(x, ln1_g_ref[0], ln1_b_ref[0])
    h_b = h.astype(bf16)                     # MXU input

    attn_acc = jnp.zeros((S, D), f32)
    for hh in range(n_heads):                # short unrolled per-head loop
        # per-head projections: (S, D) @ (D, Dh); 1/sqrt(Dh) pre-folded into Q
        q_h = jnp.dot(h_b, wq_ref[hh], preferred_element_type=f32) + bq_ref[hh]
        k_h = jnp.dot(h_b, wk_ref[hh], preferred_element_type=f32) + bk_ref[hh]
        v_h = jnp.dot(h_b, wv_ref[hh], preferred_element_type=f32) + bv_ref[hh]

        # scores: contraction on the last dims -> no explicit transpose
        s_h = jnp.einsum('qd,kd->qk', q_h.astype(bf16), k_h.astype(bf16),
                         preferred_element_type=f32)       # (S, S)
        s_h = jnp.where(causal, -jnp.inf, s_h)

        # softmax in f32; denominator reciprocal goes to the EUP
        s_h = s_h - jnp.max(s_h, axis=-1, keepdims=True)
        p_h = jnp.exp(s_h)
        p_h = p_h * pl.reciprocal(jnp.sum(p_h, axis=-1, keepdims=True),
                                  approx=True)

        o_h = jnp.dot(p_h.astype(bf16), v_h.astype(bf16),
                      preferred_element_type=f32)           # (S, Dh)
        # merge heads via per-head output projection (no transpose/reshape)
        attn_acc = attn_acc + jnp.dot(o_h.astype(bf16), wo_ref[hh],
                                      preferred_element_type=f32)

    x2 = x + attn_acc + bo_ref[0]

    # ---- MLP block (QuickGELU) ---------------------------------------------
    h2 = layernorm(x2, ln2_g_ref[0], ln2_b_ref[0])
    h2 = jnp.dot(h2.astype(bf16), w1_ref[...],
                 preferred_element_type=f32) + b1_ref[0]
    h2 = h2 * jax.nn.sigmoid(1.702 * h2)     # QuickGELU in f32
    h2 = jnp.dot(h2.astype(bf16), w2_ref[...],
                 preferred_element_type=f32) + b2_ref[0]

    o_ref[0] = (x2 + h2).astype(o_ref.dtype)


def clip_layer(x, params, n_heads):
    B, S, D = x.shape
    Dh = D // n_heads
    f32, bf16 = jnp.float32, jnp.bfloat16
    scale = 1.0 / math.sqrt(Dh)

    # ---- host-side layout plumbing (runs once, outside the kernel) ----------
    w_in = params['w_in']                    # (D, 3D), columns = [q | k | v]
    b_in = params['b_in'][0]                 # (3D,)
    wq, wk, wv = w_in[:, :D], w_in[:, D:2 * D], w_in[:, 2 * D:]
    bq, bk, bv = b_in[:D], b_in[D:2 * D], b_in[2 * D:]

    def per_head_w(w):                       # (D, D) -> (H, D, Dh)
        return jnp.transpose(w.reshape(D, n_heads, Dh), (1, 0, 2))

    def per_head_b(b):                       # (D,) -> (H, 1, Dh)
        return b.reshape(n_heads, 1, Dh)

    weights = [
        params['ln1_g'].astype(f32), params['ln1_b'].astype(f32),
        (per_head_w(wq) * scale).astype(bf16),            # 1/sqrt(Dh) folded
        per_head_w(wk).astype(bf16),
        per_head_w(wv).astype(bf16),
        (per_head_b(bq) * scale).astype(f32),
        per_head_b(bk).astype(f32),
        per_head_b(bv).astype(f32),
        params['w_out'].reshape(n_heads, Dh, D).astype(bf16),   # (H, Dh, D)
        params['b_out'].astype(f32),
        params['ln2_g'].astype(f32), params['ln2_b'].astype(f32),
        params['w1'].astype(bf16), params['b1'].astype(f32),
        params['w2'].astype(bf16), params['b2'].astype(f32),
    ]

    def build_and_run(single_buffer_weights):
        def wspec(shape):
            idx = lambda b, _n=len(shape): (0,) * _n
            if single_buffer_weights:
                # grid-invariant blocks: no benefit from double-buffering
                return pl.BlockSpec(shape, idx,
                                    pipeline_mode=pl.Buffered(buffer_count=1))
            return pl.BlockSpec(shape, idx)

        in_specs = [pl.BlockSpec((1, S, D), lambda b: (b, 0, 0))]
        in_specs += [wspec(w.shape) for w in weights]

        return pl.pallas_call(
            functools.partial(clip_layer_kernel, n_heads=n_heads),
            out_shape=jax.ShapeDtypeStruct((B, S, D), x.dtype),
            grid=(B,),
            in_specs=in_specs,
            out_specs=pl.BlockSpec((1, S, D), lambda b: (b, 0, 0)),
            compiler_params=pltpu.CompilerParams(
                dimension_semantics=("parallel",),
                vmem_limit_bytes=64 * 1024 * 1024),
        )(x, *weights)

    try:
        return build_and_run(True)
    except Exception:
        # Fall back to default double-buffered weights if this jax version
        # rejects pl.Buffered(1) on grid-invariant blocks.
        return build_and_run(False)


def make_params(key, n_embed):
    ks = jax.random.split(key, 8)
    scale = 0.02
    f32 = jnp.float32
    params = {
        'ln1_g': (jnp.ones((1, n_embed), f32)
                  + scale * jax.random.normal(ks[0], (1, n_embed), f32)),
        'ln1_b': scale * jax.random.normal(ks[1], (1, n_embed), f32),
        'ln2_g': (jnp.ones((1, n_embed), f32)
                  + scale * jax.random.normal(ks[2], (1, n_embed), f32)),
        'ln2_b': scale * jax.random.normal(ks[3], (1, n_embed), f32),
        # attention projections (stored (in, out); kernel does x @ W + b)
        'w_in': scale * jax.random.normal(ks[4], (n_embed, 3 * n_embed), f32),
        'b_in': scale * jnp.arange(3 * n_embed, dtype=f32)[None, :] / (3 * n_embed),
        'w_out': scale * jax.random.normal(ks[5], (n_embed, n_embed), f32),
        'b_out': scale * jnp.arange(n_embed, dtype=f32)[None, :] / n_embed,
        # MLP
        'w1': scale * jax.random.normal(ks[6], (n_embed, 4 * n_embed), f32),
        'b1': scale * jnp.arange(4 * n_embed, dtype=f32)[None, :] / (4 * n_embed),
        'w2': scale * jax.random.normal(ks[7], (4 * n_embed, n_embed), f32),
        'b2': scale * jnp.arange(n_embed, dtype=f32)[None, :] / n_embed,
    }
    return params


def clip_layer_ref(x, p, n_heads):
    """Pure-JAX f32 reference mirroring the PyTorch forward exactly."""
    B, S, D = x.shape
    Dh = D // n_heads
    eps = 1e-5

    def ln(v, g, b):
        mu = jnp.mean(v, axis=-1, keepdims=True)
        var = jnp.mean((v - mu) ** 2, axis=-1, keepdims=True)
        return (v - mu) / jnp.sqrt(var + eps) * g[0] + b[0]

    resid = x
    h = ln(x, p['ln1_g'], p['ln1_b'])
    qkv = h @ p['w_in'] + p['b_in'][0]
    q, k, v = jnp.split(qkv, 3, axis=-1)
    q = q.reshape(B, S, n_heads, Dh).transpose(0, 2, 1, 3)
    k = k.reshape(B, S, n_heads, Dh).transpose(0, 2, 1, 3)
    v = v.reshape(B, S, n_heads, Dh).transpose(0, 2, 1, 3)
    w = jnp.einsum('bhqd,bhkd->bhqk', q, k)
    mask = jnp.triu(jnp.ones((S, S), bool), 1)
    w = jnp.where(mask, -jnp.inf, w) / math.sqrt(Dh)
    w = jax.nn.softmax(w, axis=-1)
    o = jnp.einsum('bhqk,bhkd->bhqd', w, v).transpose(0, 2, 1, 3).reshape(B, S, D)
    o = o @ p['w_out'] + p['b_out'][0]
    x = o + resid

    resid = x
    h = ln(x, p['ln2_g'], p['ln2_b'])
    h = h @ p['w1'] + p['b1'][0]
    h = h * jax.nn.sigmoid(1.702 * h)
    h = h @ p['w2'] + p['b2'][0]
    return h + resid


if __name__ == "__main__":
    B, S = 2, 8
    n_heads, n_embed = 4, 32

    key = jax.random.PRNGKey(0)
    kx, kp = jax.random.split(key)
    x = jax.random.normal(kx, (B, S, n_embed), jnp.float32)
    params = make_params(kp, n_embed)

    out = clip_layer(x, params, n_heads)
    out = jax.block_until_ready(out)

    ref = clip_layer_ref(x, params, n_heads)
    assert out.shape == (B, S, n_embed)
    # bf16 matmul inputs + approx reciprocal => tolerance loosened vs. pure f32
    assert jnp.allclose(out, ref, atol=5e-3, rtol=5e-3), (
        float(jnp.max(jnp.abs(out - ref))))

    print("KERNEL_OK")
</pallas_src>

<mosaic_0001>
module attributes {stable_mosaic.version = 11 : i64} {
  func.func @clip_layer_kernel(%arg0: i32, %arg1: memref<1x8x32xf32, #tpu.memory_space<vmem>>, %arg2: memref<1x32xf32, #tpu.memory_space<vmem>>, %arg3: memref<1x32xf32, #tpu.memory_space<vmem>>, %arg4: memref<4x32x8xbf16, #tpu.memory_space<vmem>>, %arg5: memref<4x32x8xbf16, #tpu.memory_space<vmem>>, %arg6: memref<4x32x8xbf16, #tpu.memory_space<vmem>>, %arg7: memref<4x1x8xf32, #tpu.memory_space<vmem>>, %arg8: memref<4x1x8xf32, #tpu.memory_space<vmem>>, %arg9: memref<4x1x8xf32, #tpu.memory_space<vmem>>, %arg10: memref<4x8x32xbf16, #tpu.memory_space<vmem>>, %arg11: memref<1x32xf32, #tpu.memory_space<vmem>>, %arg12: memref<1x32xf32, #tpu.memory_space<vmem>>, %arg13: memref<1x32xf32, #tpu.memory_space<vmem>>, %arg14: memref<32x128xbf16, #tpu.memory_space<vmem>>, %arg15: memref<1x128xf32, #tpu.memory_space<vmem>>, %arg16: memref<128x32xbf16, #tpu.memory_space<vmem>>, %arg17: memref<1x32xf32, #tpu.memory_space<vmem>>, %arg18: memref<1x8x32xf32, #tpu.memory_space<vmem>>) attributes {dimension_semantics = [#tpu.dimension_semantics<parallel>], iteration_bounds = array<i64: 2>, scalar_prefetch = 0 : i64, scratch_operands = 0 : i64, tpu.core_type = #tpu.core_type<tc>, window_params = [{transform_indices = @transform_0, window_bounds = array<i64: 1, 8, 32>}, {pipeline_mode = #tpu.pipeline_mode<synchronous>, transform_indices = @transform_1, window_bounds = array<i64: 1, 32>}, {pipeline_mode = #tpu.pipeline_mode<synchronous>, transform_indices = @transform_2, window_bounds = array<i64: 1, 32>}, {pipeline_mode = #tpu.pipeline_mode<synchronous>, transform_indices = @transform_3, window_bounds = array<i64: 4, 32, 8>}, {pipeline_mode = #tpu.pipeline_mode<synchronous>, transform_indices = @transform_4, window_bounds = array<i64: 4, 32, 8>}, {pipeline_mode = #tpu.pipeline_mode<synchronous>, transform_indices = @transform_5, window_bounds = array<i64: 4, 32, 8>}, {pipeline_mode = #tpu.pipeline_mode<synchronous>, transform_indices = @transform_6, window_bounds = array<i64: 4, 1, 8>}, {pipeline_mode = #tpu.pipeline_mode<synchronous>, transform_indices = @transform_7, window_bounds = array<i64: 4, 1, 8>}, {pipeline_mode = #tpu.pipeline_mode<synchronous>, transform_indices = @transform_8, window_bounds = array<i64: 4, 1, 8>}, {pipeline_mode = #tpu.pipeline_mode<synchronous>, transform_indices = @transform_9, window_bounds = array<i64: 4, 8, 32>}, {pipeline_mode = #tpu.pipeline_mode<synchronous>, transform_indices = @transform_10, window_bounds = array<i64: 1, 32>}, {pipeline_mode = #tpu.pipeline_mode<synchronous>, transform_indices = @transform_11, window_bounds = array<i64: 1, 32>}, {pipeline_mode = #tpu.pipeline_mode<synchronous>, transform_indices = @transform_12, window_bounds = array<i64: 1, 32>}, {pipeline_mode = #tpu.pipeline_mode<synchronous>, transform_indices = @transform_13, window_bounds = array<i64: 32, 128>}, {pipeline_mode = #tpu.pipeline_mode<synchronous>, transform_indices = @transform_14, window_bounds = array<i64: 1, 128>}, {pipeline_mode = #tpu.pipeline_mode<synchronous>, transform_indices = @transform_15, window_bounds = array<i64: 128, 32>}, {pipeline_mode = #tpu.pipeline_mode<synchronous>, transform_indices = @transform_16, window_bounds = array<i64: 1, 32>}, {transform_indices = @transform_17, window_bounds = array<i64: 1, 8, 32>}]} {
    %c0 = arith.constant 0 : index
    %c0_0 = arith.constant 0 : index
    %c0_1 = arith.constant 0 : index
    %0 = vector.load %arg1[%c0, %c0_0, %c0_1] : memref<1x8x32xf32, #tpu.memory_space<vmem>>, vector<1x8x32xf32>
    %1 = vector.shape_cast %0 : vector<1x8x32xf32> to vector<8x32xf32>
    %2 = tpu.iota {dimensions = array<i32: 0>} : vector<8x8xi32>
    %3 = tpu.iota {dimensions = array<i32: 1>} : vector<8x8xi32>
    %4 = arith.cmpi sgt, %3, %2 : vector<8x8xi32>
    %c0_2 = arith.constant 0 : index
    %c0_3 = arith.constant 0 : index
    %5 = vector.load %arg2[%c0_2, %c0_3] : memref<1x32xf32, #tpu.memory_space<vmem>>, vector<1x32xf32>
    %6 = vector.shape_cast %5 : vector<1x32xf32> to vector<32xf32>
    %c0_4 = arith.constant 0 : index
    %c0_5 = arith.constant 0 : index
    %7 = vector.load %arg3[%c0_4, %c0_5] : memref<1x32xf32, #tpu.memory_space<vmem>>, vector<1x32xf32>
    %8 = vector.shape_cast %7 : vector<1x32xf32> to vector<32xf32>
    %cst = arith.constant dense<0.000000e+00> : vector<8xf32>
    %9 = vector.multi_reduction <add>, %1, %cst [1] : vector<8x32xf32> to vector<8xf32>
    %10 = vector.shape_cast %9 : vector<8xf32> to vector<8x1xf32>
    %cst_6 = arith.constant 3.200000e+01 : f32
    %11 = vector.broadcast %cst_6 : f32 to vector<8x1xf32>
    %12 = arith.divf %10, %11 : vector<8x1xf32>
    %13 = vector.broadcast %12 : vector<8x1xf32> to vector<8x32xf32>
    %14 = arith.subf %1, %13 : vector<8x32xf32>
    %15 = arith.mulf %14, %14 : vector<8x32xf32>
    %cst_7 = arith.constant dense<0.000000e+00> : vector<8xf32>
    %16 = vector.multi_reduction <add>, %15, %cst_7 [1] : vector<8x32xf32> to vector<8xf32>
    %17 = vector.shape_cast %16 : vector<8xf32> to vector<8x1xf32>
    %cst_8 = arith.constant 3.200000e+01 : f32
    %18 = vector.broadcast %cst_8 : f32 to vector<8x1xf32>
    %19 = arith.divf %17, %18 : vector<8x1xf32>
    %20 = vector.broadcast %12 : vector<8x1xf32> to vector<8x32xf32>
    %21 = arith.subf %1, %20 : vector<8x32xf32>
    %cst_9 = arith.constant 9.99999974E-6 : f32
    %22 = vector.broadcast %cst_9 : f32 to vector<8x1xf32>
    %23 = arith.addf %19, %22 : vector<8x1xf32>
    %24 = math.rsqrt %23 : vector<8x1xf32>
    %25 = vector.broadcast %24 : vector<8x1xf32> to vector<8x32xf32>
    %26 = arith.mulf %21, %25 : vector<8x32xf32>
    %27 = vector.shape_cast %6 : vector<32xf32> to vector<1x32xf32>
    %28 = vector.broadcast %27 : vector<1x32xf32> to vector<8x32xf32>
    %29 = arith.mulf %26, %28 : vector<8x32xf32>
    %30 = vector.shape_cast %8 : vector<32xf32> to vector<1x32xf32>
    %31 = vector.broadcast %30 : vector<1x32xf32> to vector<8x32xf32>
    %32 = arith.addf %29, %31 : vector<8x32xf32>
    %33 = arith.truncf %32 : vector<8x32xf32> to vector<8x32xbf16>
    %cst_10 = arith.constant 0.000000e+00 : f32
    %34 = vector.broadcast %cst_10 : f32 to vector<8x32xf32>
    %c0_11 = arith.constant 0 : index
    %c0_12 = arith.constant 0 : index
    %c0_13 = arith.constant 0 : index
    %35 = vector.load %arg4[%c0_11, %c0_12, %c0_13] : memref<4x32x8xbf16, #tpu.memory_space<vmem>>, vector<1x32x8xbf16>
    %36 = vector.shape_cast %35 : vector<1x32x8xbf16> to vector<32x8xbf16>
    %cst_14 = arith.constant dense<0.000000e+00> : vector<8x8xf32>
    %37 = tpu.matmul %33, %36, %cst_14 {dimension_numbers = #tpu.dot_dimension_numbers<[1], [0], [0], [1], [0, 0, 1, 1], [], []>} : vector<8x32xbf16>, vector<32x8xbf16>, vector<8x8xf32> -> vector<8x8xf32>
    %c0_15 = arith.constant 0 : index
    %c0_16 = arith.constant 0 : index
    %c0_17 = arith.constant 0 : index
    %38 = vector.load %arg7[%c0_15, %c0_16, %c0_17] : memref<4x1x8xf32, #tpu.memory_space<vmem>>, vector<1x1x8xf32>
    %39 = vector.shape_cast %38 : vector<1x1x8xf32> to vector<1x8xf32>
    %40 = vector.broadcast %39 : vector<1x8xf32> to vector<8x8xf32>
    %41 = arith.addf %37, %40 : vector<8x8xf32>
    %c0_18 = arith.constant 0 : index
    %c0_19 = arith.constant 0 : index
    %c0_20 = arith.constant 0 : index
    %42 = vector.load %arg5[%c0_18, %c0_19, %c0_20] : memref<4x32x8xbf16, #tpu.memory_space<vmem>>, vector<1x32x8xbf16>
    %43 = vector.shape_cast %42 : vector<1x32x8xbf16> to vector<32x8xbf16>
    %cst_21 = arith.constant dense<0.000000e+00> : vector<8x8xf32>
    %44 = tpu.matmul %33, %43, %cst_21 {dimension_numbers = #tpu.dot_dimension_numbers<[1], [0], [0], [1], [0, 0, 1, 1], [], []>} : vector<8x32xbf16>, vector<32x8xbf16>, vector<8x8xf32> -> vector<8x8xf32>
    %c0_22 = arith.constant 0 : index
    %c0_23 = arith.constant 0 : index
    %c0_24 = arith.constant 0 : index
    %45 = vector.load %arg8[%c0_22, %c0_23, %c0_24] : memref<4x1x8xf32, #tpu.memory_space<vmem>>, vector<1x1x8xf32>
    %46 = vector.shape_cast %45 : vector<1x1x8xf32> to vector<1x8xf32>
    %47 = vector.broadcast %46 : vector<1x8xf32> to vector<8x8xf32>
    %48 = arith.addf %44, %47 : vector<8x8xf32>
    %c0_25 = arith.constant 0 : index
    %c0_26 = arith.constant 0 : index
    %c0_27 = arith.constant 0 : index
    %49 = vector.load %arg6[%c0_25, %c0_26, %c0_27] : memref<4x32x8xbf16, #tpu.memory_space<vmem>>, vector<1x32x8xbf16>
    %50 = vector.shape_cast %49 : vector<1x32x8xbf16> to vector<32x8xbf16>
    %cst_28 = arith.constant dense<0.000000e+00> : vector<8x8xf32>
    %51 = tpu.matmul %33, %50, %cst_28 {dimension_numbers = #tpu.dot_dimension_numbers<[1], [0], [0], [1], [0, 0, 1, 1], [], []>} : vector<8x32xbf16>, vector<32x8xbf16>, vector<8x8xf32> -> vector<8x8xf32>
    %c0_29 = arith.constant 0 : index
    %c0_30 = arith.constant 0 : index
    %c0_31 = arith.constant 0 : index
    %52 = vector.load %arg9[%c0_29, %c0_30, %c0_31] : memref<4x1x8xf32, #tpu.memory_space<vmem>>, vector<1x1x8xf32>
    %53 = vector.shape_cast %52 : vector<1x1x8xf32> to vector<1x8xf32>
    %54 = vector.broadcast %53 : vector<1x8xf32> to vector<8x8xf32>
    %55 = arith.addf %51, %54 : vector<8x8xf32>
    %56 = arith.truncf %41 : vector<8x8xf32> to vector<8x8xbf16>
    %57 = arith.truncf %48 : vector<8x8xf32> to vector<8x8xbf16>
    "tpu.trace_start"() <{level = 10 : i32, message = "qd,kd->qk"}> : () -> ()
    %cst_32 = arith.constant dense<0.000000e+00> : vector<8x8xf32>
    %58 = tpu.matmul %56, %57, %cst_32 {dimension_numbers = #tpu.dot_dimension_numbers<[1], [1], [0], [0], [0, 0, 1, 0], [], []>} : vector<8x8xbf16>, vector<8x8xbf16>, vector<8x8xf32> -> vector<8x8xf32>
    %cst_33 = arith.constant 0xFF800000 : f32
    "tpu.trace_stop"() : () -> ()
    %59 = vector.broadcast %cst_33 : f32 to vector<8x8xf32>
    %60 = arith.select %4, %59, %58 : vector<8x8xi1>, vector<8x8xf32>
    %cst_34 = arith.constant dense<0xFF800000> : vector<8xf32>
    %61 = vector.multi_reduction <maximumf>, %60, %cst_34 [1] : vector<8x8xf32> to vector<8xf32>
    %62 = vector.shape_cast %61 : vector<8xf32> to vector<8x1xf32>
    %63 = vector.broadcast %62 : vector<8x1xf32> to vector<8x8xf32>
    %64 = arith.subf %60, %63 : vector<8x8xf32>
    %65 = math.exp %64 : vector<8x8xf32>
    %cst_35 = arith.constant dense<0.000000e+00> : vector<8xf32>
    %66 = vector.multi_reduction <add>, %65, %cst_35 [1] : vector<8x8xf32> to vector<8xf32>
    %67 = vector.shape_cast %66 : vector<8xf32> to vector<8x1xf32>
    %68 = tpu.reciprocal %67 {approx = true} : vector<8x1xf32> -> vector<8x1xf32>
    %69 = vector.broadcast %68 : vector<8x1xf32> to vector<8x8xf32>
    %70 = arith.mulf %65, %69 : vector<8x8xf32>
    %71 = arith.truncf %70 : vector<8x8xf32> to vector<8x8xbf16>
    %72 = arith.truncf %55 : vector<8x8xf32> to vector<8x8xbf16>
    %cst_36 = arith.constant dense<0.000000e+00> : vector<8x8xf32>
    %73 = tpu.matmul %71, %72, %cst_36 {dimension_numbers = #tpu.dot_dimension_numbers<[1], [0], [0], [1], [0, 0, 1, 1], [], []>} : vector<8x8xbf16>, vector<8x8xbf16>, vector<8x8xf32> -> vector<8x8xf32>
    %74 = arith.truncf %73 : vector<8x8xf32> to vector<8x8xbf16>
    %c0_37 = arith.constant 0 : index
    %c0_38 = arith.constant 0 : index
    %c0_39 = arith.constant 0 : index
    %75 = vector.load %arg10[%c0_37, %c0_38, %c0_39] : memref<4x8x32xbf16, #tpu.memory_space<vmem>>, vector<1x8x32xbf16>
    %76 = vector.shape_cast %75 : vector<1x8x32xbf16> to vector<8x32xbf16>
    %cst_40 = arith.constant dense<0.000000e+00> : vector<8x32xf32>
    %77 = tpu.matmul %74, %76, %cst_40 {dimension_numbers = #tpu.dot_dimension_numbers<[1], [0], [0], [1], [0, 0, 1, 1], [], []>} : vector<8x8xbf16>, vector<8x32xbf16>, vector<8x32xf32> -> vector<8x32xf32>
    %78 = arith.addf %34, %77 : vector<8x32xf32>
    %c1 = arith.constant 1 : index
    %c0_41 = arith.constant 0 : index
    %c0_42 = arith.constant 0 : index
    %79 = vector.load %arg4[%c1, %c0_41, %c0_42] : memref<4x32x8xbf16, #tpu.memory_space<vmem>>, vector<1x32x8xbf16>
    %80 = vector.shape_cast %79 : vector<1x32x8xbf16> to vector<32x8xbf16>
    %cst_43 = arith.constant dense<0.000000e+00> : vector<8x8xf32>
    %81 = tpu.matmul %33, %80, %cst_43 {dimension_numbers = #tpu.dot_dimension_numbers<[1], [0], [0], [1], [0, 0, 1, 1], [], []>} : vector<8x32xbf16>, vector<32x8xbf16>, vector<8x8xf32> -> vector<8x8xf32>
    %c1_44 = arith.constant 1 : index
    %c0_45 = arith.constant 0 : index
    %c0_46 = arith.constant 0 : index
    %82 = vector.load %arg7[%c1_44, %c0_45, %c0_46] : memref<4x1x8xf32, #tpu.memory_space<vmem>>, vector<1x1x8xf32>
    %83 = vector.shape_cast %82 : vector<1x1x8xf32> to vector<1x8xf32>
    %84 = vector.broadcast %83 : vector<1x8xf32> to vector<8x8xf32>
    %85 = arith.addf %81, %84 : vector<8x8xf32>
    %c1_47 = arith.constant 1 : index
    %c0_48 = arith.constant 0 : index
    %c0_49 = arith.constant 0 : index
    %86 = vector.load %arg5[%c1_47, %c0_48, %c0_49] : memref<4x32x8xbf16, #tpu.memory_space<vmem>>, vector<1x32x8xbf16>
    %87 = vector.shape_cast %86 : vector<1x32x8xbf16> to vector<32x8xbf16>
    %cst_50 = arith.constant dense<0.000000e+00> : vector<8x8xf32>
    %88 = tpu.matmul %33, %87, %cst_50 {dimension_numbers = #tpu.dot_dimension_numbers<[1], [0], [0], [1], [0, 0, 1, 1], [], []>} : vector<8x32xbf16>, vector<32x8xbf16>, vector<8x8xf32> -> vector<8x8xf32>
    %c1_51 = arith.constant 1 : index
    %c0_52 = arith.constant 0 : index
    %c0_53 = arith.constant 0 : index
    %89 = vector.load %arg8[%c1_51, %c0_52, %c0_53] : memref<4x1x8xf32, #tpu.memory_space<vmem>>, vector<1x1x8xf32>
    %90 = vector.shape_cast %89 : vector<1x1x8xf32> to vector<1x8xf32>
    %91 = vector.broadcast %90 : vector<1x8xf32> to vector<8x8xf32>
    %92 = arith.addf %88, %91 : vector<8x8xf32>
    %c1_54 = arith.constant 1 : index
    %c0_55 = arith.constant 0 : index
    %c0_56 = arith.constant 0 : index
    %93 = vector.load %arg6[%c1_54, %c0_55, %c0_56] : memref<4x32x8xbf16, #tpu.memory_space<vmem>>, vector<1x32x8xbf16>
    %94 = vector.shape_cast %93 : vector<1x32x8xbf16> to vector<32x8xbf16>
    %cst_57 = arith.constant dense<0.000000e+00> : vector<8x8xf32>
    %95 = tpu.matmul %33, %94, %cst_57 {dimension_numbers = #tpu.dot_dimension_numbers<[1], [0], [0], [1], [0, 0, 1, 1], [], []>} : vector<8x32xbf16>, vector<32x8xbf16>, vector<8x8xf32> -> vector<8x8xf32>
    %c1_58 = arith.constant 1 : index
    %c0_59 = arith.constant 0 : index
    %c0_60 = arith.constant 0 : index
    %96 = vector.load %arg9[%c1_58, %c0_59, %c0_60] : memref<4x1x8xf32, #tpu.memory_space<vmem>>, vector<1x1x8xf32>
    %97 = vector.shape_cast %96 : vector<1x1x8xf32> to vector<1x8xf32>
    %98 = vector.broadcast %97 : vector<1x8xf32> to vector<8x8xf32>
    %99 = arith.addf %95, %98 : vector<8x8xf32>
    %100 = arith.truncf %85 : vector<8x8xf32> to vector<8x8xbf16>
    %101 = arith.truncf %92 : vector<8x8xf32> to vector<8x8xbf16>
    "tpu.trace_start"() <{level = 10 : i32, message = "qd,kd->qk"}> : () -> ()
    %cst_61 = arith.constant dense<0.000000e+00> : vector<8x8xf32>
    %102 = tpu.matmul %100, %101, %cst_61 {dimension_numbers = #tpu.dot_dimension_numbers<[1], [1], [0], [0], [0, 0, 1, 0], [], []>} : vector<8x8xbf16>, vector<8x8xbf16>, vector<8x8xf32> -> vector<8x8xf32>
    %cst_62 = arith.constant 0xFF800000 : f32
    "tpu.trace_stop"() : () -> ()
    %103 = vector.broadcast %cst_62 : f32 to vector<8x8xf32>
    %104 = arith.select %4, %103, %102 : vector<8x8xi1>, vector<8x8xf32>
    %cst_63 = arith.constant dense<0xFF800000> : vector<8xf32>
    %105 = vector.multi_reduction <maximumf>, %104, %cst_63 [1] : vector<8x8xf32> to vector<8xf32>
    %106 = vector.shape_cast %105 : vector<8xf32> to vector<8x1xf32>
    %107 = vector.broadcast %106 : vector<8x1xf32> to vector<8x8xf32>
    %108 = arith.subf %104, %107 : vector<8x8xf32>
    %109 = math.exp %108 : vector<8x8xf32>
    %cst_64 = arith.constant dense<0.000000e+00> : vector<8xf32>
    %110 = vector.multi_reduction <add>, %109, %cst_64 [1] : vector<8x8xf32> to vector<8xf32>
    %111 = vector.shape_cast %110 : vector<8xf32> to vector<8x1xf32>
    %112 = tpu.reciprocal %111 {approx = true} : vector<8x1xf32> -> vector<8x1xf32>
    %113 = vector.broadcast %112 : vector<8x1xf32> to vector<8x8xf32>
    %114 = arith.mulf %109, %113 : vector<8x8xf32>
    %115 = arith.truncf %114 : vector<8x8xf32> to vector<8x8xbf16>
    %116 = arith.truncf %99 : vector<8x8xf32> to vector<8x8xbf16>
    %cst_65 = arith.constant dense<0.000000e+00> : vector<8x8xf32>
    %117 = tpu.matmul %115, %116, %cst_65 {dimension_numbers = #tpu.dot_dimension_numbers<[1], [0], [0], [1], [0, 0, 1, 1], [], []>} : vector<8x8xbf16>, vector<8x8xbf16>, vector<8x8xf32> -> vector<8x8xf32>
    %118 = arith.truncf %117 : vector<8x8xf32> to vector<8x8xbf16>
    %c1_66 = arith.constant 1 : index
    %c0_67 = arith.constant 0 : index
    %c0_68 = arith.constant 0 : index
    %119 = vector.load %arg10[%c1_66, %c0_67, %c0_68] : memref<4x8x32xbf16, #tpu.memory_space<vmem>>, vector<1x8x32xbf16>
    %120 = vector.shape_cast %119 : vector<1x8x32xbf16> to vector<8x32xbf16>
    %cst_69 = arith.constant dense<0.000000e+00> : vector<8x32xf32>
    %121 = tpu.matmul %118, %120, %cst_69 {dimension_numbers = #tpu.dot_dimension_numbers<[1], [0], [0], [1], [0, 0, 1, 1], [], []>} : vector<8x8xbf16>, vector<8x32xbf16>, vector<8x32xf32> -> vector<8x32xf32>
    %122 = arith.addf %78, %121 : vector<8x32xf32>
    %c2 = arith.constant 2 : index
    %c0_70 = arith.constant 0 : index
    %c0_71 = arith.constant 0 : index
    %123 = vector.load %arg4[%c2, %c0_70, %c0_71] : memref<4x32x8xbf16, #tpu.memory_space<vmem>>, vector<1x32x8xbf16>
    %124 = vector.shape_cast %123 : vector<1x32x8xbf16> to vector<32x8xbf16>
    %cst_72 = arith.constant dense<0.000000e+00> : vector<8x8xf32>
    %125 = tpu.matmul %33, %124, %cst_72 {dimension_numbers = #tpu.dot_dimension_numbers<[1], [0], [0], [1], [0, 0, 1, 1], [], []>} : vector<8x32xbf16>, vector<32x8xbf16>, vector<8x8xf32> -> vector<8x8xf32>
    %c2_73 = arith.constant 2 : index
    %c0_74 = arith.constant 0 : index
    %c0_75 = arith.constant 0 : index
    %126 = vector.load %arg7[%c2_73, %c0_74, %c0_75] : memref<4x1x8xf32, #tpu.memory_space<vmem>>, vector<1x1x8xf32>
    %127 = vector.shape_cast %126 : vector<1x1x8xf32> to vector<1x8xf32>
    %128 = vector.broadcast %127 : vector<1x8xf32> to vector<8x8xf32>
    %129 = arith.addf %125, %128 : vector<8x8xf32>
    %c2_76 = arith.constant 2 : index
    %c0_77 = arith.constant 0 : index
    %c0_78 = arith.constant 0 : index
    %130 = vector.load %arg5[%c2_76, %c0_77, %c0_78] : memref<4x32x8xbf16, #tpu.memory_space<vmem>>, vector<1x32x8xbf16>
    %131 = vector.shape_cast %130 : vector<1x32x8xbf16> to vector<32x8xbf16>
    %cst_79 = arith.constant dense<0.000000e+00> : vector<8x8xf32>
    %132 = tpu.matmul %33, %131, %cst_79 {dimension_numbers = #tpu.dot_dimension_numbers<[1], [0], [0], [1], [0, 0, 1, 1], [], []>} : vector<8x32xbf16>, vector<32x8xbf16>, vector<8x8xf32> -> vector<8x8xf32>
    %c2_80 = arith.constant 2 : index
    %c0_81 = arith.constant 0 : index
    %c0_82 = arith.constant 0 : index
    %133 = vector.load %arg8[%c2_80, %c0_81, %c0_82] : memref<4x1x8xf32, #tpu.memory_space<vmem>>, vector<1x1x8xf32>
    %134 = vector.shape_cast %133 : vector<1x1x8xf32> to vector<1x8xf32>
    %135 = vector.broadcast %134 : vector<1x8xf32> to vector<8x8xf32>
    %136 = arith.addf %132, %135 : vector<8x8xf32>
    %c2_83 = arith.constant 2 : index
    %c0_84 = arith.constant 0 : index
    %c0_85 = arith.constant 0 : index
    %137 = vector.load %arg6[%c2_83, %c0_84, %c0_85] : memref<4x32x8xbf16, #tpu.memory_space<vmem>>, vector<1x32x8xbf16>
    %138 = vector.shape_cast %137 : vector<1x32x8xbf16> to vector<32x8xbf16>
    %cst_86 = arith.constant dense<0.000000e+00> : vector<8x8xf32>
    %139 = tpu.matmul %33, %138, %cst_86 {dimension_numbers = #tpu.dot_dimension_numbers<[1], [0], [0], [1], [0, 0, 1, 1], [], []>} : vector<8x32xbf16>, vector<32x8xbf16>, vector<8x8xf32> -> vector<8x8xf32>
    %c2_87 = arith.constant 2 : index
    %c0_88 = arith.constant 0 : index
    %c0_89 = arith.constant 0 : index
    %140 = vector.load %arg9[%c2_87, %c0_88, %c0_89] : memref<4x1x8xf32, #tpu.memory_space<vmem>>, vector<1x1x8xf32>
    %141 = vector.shape_cast %140 : vector<1x1x8xf32> to vector<1x8xf32>
    %142 = vector.broadcast %141 : vector<1x8xf32> to vector<8x8xf32>
    %143 = arith.addf %139, %142 : vector<8x8xf32>
    %144 = arith.truncf %129 : vector<8x8xf32> to vector<8x8xbf16>
    %145 = arith.truncf %136 : vector<8x8xf32> to vector<8x8xbf16>
    "tpu.trace_start"() <{level = 10 : i32, message = "qd,kd->qk"}> : () -> ()
    %cst_90 = arith.constant dense<0.000000e+00> : vector<8x8xf32>
    %146 = tpu.matmul %144, %145, %cst_90 {dimension_numbers = #tpu.dot_dimension_numbers<[1], [1], [0], [0], [0, 0, 1, 0], [], []>} : vector<8x8xbf16>, vector<8x8xbf16>, vector<8x8xf32> -> vector<8x8xf32>
    %cst_91 = arith.constant 0xFF800000 : f32
    "tpu.trace_stop"() : () -> ()
    %147 = vector.broadcast %cst_91 : f32 to vector<8x8xf32>
    %148 = arith.select %4, %147, %146 : vector<8x8xi1>, vector<8x8xf32>
    %cst_92 = arith.constant dense<0xFF800000> : vector<8xf32>
    %149 = vector.multi_reduction <maximumf>, %148, %cst_92 [1] : vector<8x8xf32> to vector<8xf32>
    %150 = vector.shape_cast %149 : vector<8xf32> to vector<8x1xf32>
    %151 = vector.broadcast %150 : vector<8x1xf32> to vector<8x8xf32>
    %152 = arith.subf %148, %151 : vector<8x8xf32>
    %153 = math.exp %152 : vector<8x8xf32>
    %cst_93 = arith.constant dense<0.000000e+00> : vector<8xf32>
    %154 = vector.multi_reduction <add>, %153, %cst_93 [1] : vector<8x8xf32> to vector<8xf32>
    %155 = vector.shape_cast %154 : vector<8xf32> to vector<8x1xf32>
    %156 = tpu.reciprocal %155 {approx = true} : vector<8x1xf32> -> vector<8x1xf32>
    %157 = vector.broadcast %156 : vector<8x1xf32> to vector<8x8xf32>
    %158 = arith.mulf %153, %157 : vector<8x8xf32>
    %159 = arith.truncf %158 : vector<8x8xf32> to vector<8x8xbf16>
    %160 = arith.truncf %143 : vector<8x8xf32> to vector<8x8xbf16>
    %cst_94 = arith.constant dense<0.000000e+00> : vector<8x8xf32>
    %161 = tpu.matmul %159, %160, %cst_94 {dimension_numbers = #tpu.dot_dimension_numbers<[1], [0], [0], [1], [0, 0, 1, 1], [], []>} : vector<8x8xbf16>, vector<8x8xbf16>, vector<8x8xf32> -> vector<8x8xf32>
    %162 = arith.truncf %161 : vector<8x8xf32> to vector<8x8xbf16>
    %c2_95 = arith.constant 2 : index
    %c0_96 = arith.constant 0 : index
    %c0_97 = arith.constant 0 : index
    %163 = vector.load %arg10[%c2_95, %c0_96, %c0_97] : memref<4x8x32xbf16, #tpu.memory_space<vmem>>, vector<1x8x32xbf16>
    %164 = vector.shape_cast %163 : vector<1x8x32xbf16> to vector<8x32xbf16>
    %cst_98 = arith.constant dense<0.000000e+00> : vector<8x32xf32>
    %165 = tpu.matmul %162, %164, %cst_98 {dimension_numbers = #tpu.dot_dimension_numbers<[1], [0], [0], [1], [0, 0, 1, 1], [], []>} : vector<8x8xbf16>, vector<8x32xbf16>, vector<8x32xf32> -> vector<8x32xf32>
    %166 = arith.addf %122, %165 : vector<8x32xf32>
    %c3 = arith.constant 3 : index
    %c0_99 = arith.constant 0 : index
    %c0_100 = arith.constant 0 : index
    %167 = vector.load %arg4[%c3, %c0_99, %c0_100] : memref<4x32x8xbf16, #tpu.memory_space<vmem>>, vector<1x32x8xbf16>
    %168 = vector.shape_cast %167 : vector<1x32x8xbf16> to vector<32x8xbf16>
    %cst_101 = arith.constant dense<0.000000e+00> : vector<8x8xf32>
    %169 = tpu.matmul %33, %168, %cst_101 {dimension_numbers = #tpu.dot_dimension_numbers<[1], [0], [0], [1], [0, 0, 1, 1], [], []>} : vector<8x32xbf16>, vector<32x8xbf16>, vector<8x8xf32> -> vector<8x8xf32>
    %c3_102 = arith.constant 3 : index
    %c0_103 = arith.constant 0 : index
    %c0_104 = arith.constant 0 : index
    %170 = vector.load %arg7[%c3_102, %c0_103, %c0_104] : memref<4x1x8xf32, #tpu.memory_space<vmem>>, vector<1x1x8xf32>
    %171 = vector.shape_cast %170 : vector<1x1x8xf32> to vector<1x8xf32>
    %172 = vector.broadcast %171 : vector<1x8xf32> to vector<8x8xf32>
    %173 = arith.addf %169, %172 : vector<8x8xf32>
    %c3_105 = arith.constant 3 : index
    %c0_106 = arith.constant 0 : index
    %c0_107 = arith.constant 0 : index
    %174 = vector.load %arg5[%c3_105, %c0_106, %c0_107] : memref<4x32x8xbf16, #tpu.memory_space<vmem>>, vector<1x32x8xbf16>
    %175 = vector.shape_cast %174 : vector<1x32x8xbf16> to vector<32x8xbf16>
    %cst_108 = arith.constant dense<0.000000e+00> : vector<8x8xf32>
    %176 = tpu.matmul %33, %175, %cst_108 {dimension_numbers = #tpu.dot_dimension_numbers<[1], [0], [0], [1], [0, 0, 1, 1], [], []>} : vector<8x32xbf16>, vector<32x8xbf16>, vector<8x8xf32> -> vector<8x8xf32>
    %c3_109 = arith.constant 3 : index
    %c0_110 = arith.constant 0 : index
    %c0_111 = arith.constant 0 : index
    %177 = vector.load %arg8[%c3_109, %c0_110, %c0_111] : memref<4x1x8xf32, #tpu.memory_space<vmem>>, vector<1x1x8xf32>
    %178 = vector.shape_cast %177 : vector<1x1x8xf32> to vector<1x8xf32>
    %179 = vector.broadcast %178 : vector<1x8xf32> to vector<8x8xf32>
    %180 = arith.addf %176, %179 : vector<8x8xf32>
    %c3_112 = arith.constant 3 : index
    %c0_113 = arith.constant 0 : index
    %c0_114 = arith.constant 0 : index
    %181 = vector.load %arg6[%c3_112, %c0_113, %c0_114] : memref<4x32x8xbf16, #tpu.memory_space<vmem>>, vector<1x32x8xbf16>
    %182 = vector.shape_cast %181 : vector<1x32x8xbf16> to vector<32x8xbf16>
    %cst_115 = arith.constant dense<0.000000e+00> : vector<8x8xf32>
    %183 = tpu.matmul %33, %182, %cst_115 {dimension_numbers = #tpu.dot_dimension_numbers<[1], [0], [0], [1], [0, 0, 1, 1], [], []>} : vector<8x32xbf16>, vector<32x8xbf16>, vector<8x8xf32> -> vector<8x8xf32>
    %c3_116 = arith.constant 3 : index
    %c0_117 = arith.constant 0 : index
    %c0_118 = arith.constant 0 : index
    %184 = vector.load %arg9[%c3_116, %c0_117, %c0_118] : memref<4x1x8xf32, #tpu.memory_space<vmem>>, vector<1x1x8xf32>
    %185 = vector.shape_cast %184 : vector<1x1x8xf32> to vector<1x8xf32>
    %186 = vector.broadcast %185 : vector<1x8xf32> to vector<8x8xf32>
    %187 = arith.addf %183, %186 : vector<8x8xf32>
    %188 = arith.truncf %173 : vector<8x8xf32> to vector<8x8xbf16>
    %189 = arith.truncf %180 : vector<8x8xf32> to vector<8x8xbf16>
    "tpu.trace_start"() <{level = 10 : i32, message = "qd,kd->qk"}> : () -> ()
    %cst_119 = arith.constant dense<0.000000e+00> : vector<8x8xf32>
    %190 = tpu.matmul %188, %189, %cst_119 {dimension_numbers = #tpu.dot_dimension_numbers<[1], [1], [0], [0], [0, 0, 1, 0], [], []>} : vector<8x8xbf16>, vector<8x8xbf16>, vector<8x8xf32> -> vector<8x8xf32>
    %cst_120 = arith.constant 0xFF800000 : f32
    "tpu.trace_stop"() : () -> ()
    %191 = vector.broadcast %cst_120 : f32 to vector<8x8xf32>
    %192 = arith.select %4, %191, %190 : vector<8x8xi1>, vector<8x8xf32>
    %cst_121 = arith.constant dense<0xFF800000> : vector<8xf32>
    %193 = vector.multi_reduction <maximumf>, %192, %cst_121 [1] : vector<8x8xf32> to vector<8xf32>
    %194 = vector.shape_cast %193 : vector<8xf32> to vector<8x1xf32>
    %195 = vector.broadcast %194 : vector<8x1xf32> to vector<8x8xf32>
    %196 = arith.subf %192, %195 : vector<8x8xf32>
    %197 = math.exp %196 : vector<8x8xf32>
    %cst_122 = arith.constant dense<0.000000e+00> : vector<8xf32>
    %198 = vector.multi_reduction <add>, %197, %cst_122 [1] : vector<8x8xf32> to vector<8xf32>
    %199 = vector.shape_cast %198 : vector<8xf32> to vector<8x1xf32>
    %200 = tpu.reciprocal %199 {approx = true} : vector<8x1xf32> -> vector<8x1xf32>
    %201 = vector.broadcast %200 : vector<8x1xf32> to vector<8x8xf32>
    %202 = arith.mulf %197, %201 : vector<8x8xf32>
    %203 = arith.truncf %202 : vector<8x8xf32> to vector<8x8xbf16>
    %204 = arith.truncf %187 : vector<8x8xf32> to vector<8x8xbf16>
    %cst_123 = arith.constant dense<0.000000e+00> : vector<8x8xf32>
    %205 = tpu.matmul %203, %204, %cst_123 {dimension_numbers = #tpu.dot_dimension_numbers<[1], [0], [0], [1], [0, 0, 1, 1], [], []>} : vector<8x8xbf16>, vector<8x8xbf16>, vector<8x8xf32> -> vector<8x8xf32>
    %206 = arith.truncf %205 : vector<8x8xf32> to vector<8x8xbf16>
    %c3_124 = arith.constant 3 : index
    %c0_125 = arith.constant 0 : index
    %c0_126 = arith.constant 0 : index
    %207 = vector.load %arg10[%c3_124, %c0_125, %c0_126] : memref<4x8x32xbf16, #tpu.memory_space<vmem>>, vector<1x8x32xbf16>
    %208 = vector.shape_cast %207 : vector<1x8x32xbf16> to vector<8x32xbf16>
    %cst_127 = arith.constant dense<0.000000e+00> : vector<8x32xf32>
    %209 = tpu.matmul %206, %208, %cst_127 {dimension_numbers = #tpu.dot_dimension_numbers<[1], [0], [0], [1], [0, 0, 1, 1], [], []>} : vector<8x8xbf16>, vector<8x32xbf16>, vector<8x32xf32> -> vector<8x32xf32>
    %210 = arith.addf %166, %209 : vector<8x32xf32>
    %211 = arith.addf %1, %210 : vector<8x32xf32>
    %c0_128 = arith.constant 0 : index
    %c0_129 = arith.constant 0 : index
    %212 = vector.load %arg11[%c0_128, %c0_129] : memref<1x32xf32, #tpu.memory_space<vmem>>, vector<1x32xf32>
    %213 = vector.shape_cast %212 : vector<1x32xf32> to vector<32xf32>
    %214 = vector.shape_cast %213 : vector<32xf32> to vector<1x32xf32>
    %215 = vector.broadcast %214 : vector<1x32xf32> to vector<8x32xf32>
    %216 = arith.addf %211, %215 : vector<8x32xf32>
    %c0_130 = arith.constant 0 : index
    %c0_131 = arith.constant 0 : index
    %217 = vector.load %arg12[%c0_130, %c0_131] : memref<1x32xf32, #tpu.memory_space<vmem>>, vector<1x32xf32>
    %218 = vector.shape_cast %217 : vector<1x32xf32> to vector<32xf32>
    %c0_132 = arith.constant 0 : index
    %c0_133 = arith.constant 0 : index
    %219 = vector.load %arg13[%c0_132, %c0_133] : memref<1x32xf32, #tpu.memory_space<vmem>>, vector<1x32xf32>
    %220 = vector.shape_cast %219 : vector<1x32xf32> to vector<32xf32>
    %cst_134 = arith.constant dense<0.000000e+00> : vector<8xf32>
    %221 = vector.multi_reduction <add>, %216, %cst_134 [1] : vector<8x32xf32> to vector<8xf32>
    %222 = vector.shape_cast %221 : vector<8xf32> to vector<8x1xf32>
    %cst_135 = arith.constant 3.200000e+01 : f32
    %223 = vector.broadcast %cst_135 : f32 to vector<8x1xf32>
    %224 = arith.divf %222, %223 : vector<8x1xf32>
    %225 = vector.broadcast %224 : vector<8x1xf32> to vector<8x32xf32>
    %226 = arith.subf %216, %225 : vector<8x32xf32>
    %227 = arith.mulf %226, %226 : vector<8x32xf32>
    %cst_136 = arith.constant dense<0.000000e+00> : vector<8xf32>
    %228 = vector.multi_reduction <add>, %227, %cst_136 [1] : vector<8x32xf32> to vector<8xf32>
    %229 = vector.shape_cast %228 : vector<8xf32> to vector<8x1xf32>
    %cst_137 = arith.constant 3.200000e+01 : f32
    %230 = vector.broadcast %cst_137 : f32 to vector<8x1xf32>
    %231 = arith.divf %229, %230 : vector<8x1xf32>
    %232 = vector.broadcast %224 : vector<8x1xf32> to vector<8x32xf32>
    %233 = arith.subf %216, %232 : vector<8x32xf32>
    %cst_138 = arith.constant 9.99999974E-6 : f32
    %234 = vector.broadcast %cst_138 : f32 to vector<8x1xf32>
    %235 = arith.addf %231, %234 : vector<8x1xf32>
    %236 = math.rsqrt %235 : vector<8x1xf32>
    %237 = vector.broadcast %236 : vector<8x1xf32> to vector<8x32xf32>
    %238 = arith.mulf %233, %237 : vector<8x32xf32>
    %239 = vector.shape_cast %218 : vector<32xf32> to vector<1x32xf32>
    %240 = vector.broadcast %239 : vector<1x32xf32> to vector<8x32xf32>
    %241 = arith.mulf %238, %240 : vector<8x32xf32>
    %242 = vector.shape_cast %220 : vector<32xf32> to vector<1x32xf32>
    %243 = vector.broadcast %242 : vector<1x32xf32> to vector<8x32xf32>
    %244 = arith.addf %241, %243 : vector<8x32xf32>
    %245 = arith.truncf %244 : vector<8x32xf32> to vector<8x32xbf16>
    %c0_139 = arith.constant 0 : index
    %c0_140 = arith.constant 0 : index
    %246 = vector.load %arg14[%c0_139, %c0_140] : memref<32x128xbf16, #tpu.memory_space<vmem>>, vector<32x128xbf16>
    %cst_141 = arith.constant dense<0.000000e+00> : vector<8x128xf32>
    %247 = tpu.matmul %245, %246, %cst_141 {dimension_numbers = #tpu.dot_dimension_numbers<[1], [0], [0], [1], [0, 0, 1, 1], [], []>} : vector<8x32xbf16>, vector<32x128xbf16>, vector<8x128xf32> -> vector<8x128xf32>
    %c0_142 = arith.constant 0 : index
    %c0_143 = arith.constant 0 : index
    %248 = vector.load %arg15[%c0_142, %c0_143] : memref<1x128xf32, #tpu.memory_space<vmem>>, vector<1x128xf32>
    %249 = vector.shape_cast %248 : vector<1x128xf32> to vector<128xf32>
    %250 = vector.shape_cast %249 : vector<128xf32> to vector<1x128xf32>
    %251 = vector.broadcast %250 : vector<1x128xf32> to vector<8x128xf32>
    %252 = arith.addf %247, %251 : vector<8x128xf32>
    %cst_144 = arith.constant 1.702000e+00 : f32
    %253 = vector.broadcast %cst_144 : f32 to vector<8x128xf32>
    %254 = arith.mulf %253, %252 : vector<8x128xf32>
    %255 = arith.negf %254 : vector<8x128xf32>
    %256 = math.exp %255 : vector<8x128xf32>
    %cst_145 = arith.constant 1.000000e+00 : f32
    %257 = vector.broadcast %cst_145 : f32 to vector<8x128xf32>
    %258 = arith.addf %257, %256 : vector<8x128xf32>
    %259 = arith.divf %257, %258 : vector<8x128xf32>
    %260 = arith.mulf %252, %259 : vector<8x128xf32>
    %261 = arith.truncf %260 : vector<8x128xf32> to vector<8x128xbf16>
    %c0_146 = arith.constant 0 : index
    %c0_147 = arith.constant 0 : index
    %262 = vector.load %arg16[%c0_146, %c0_147] : memref<128x32xbf16, #tpu.memory_space<vmem>>, vector<128x32xbf16>
    %cst_148 = arith.constant dense<0.000000e+00> : vector<8x32xf32>
    %263 = tpu.matmul %261, %262, %cst_148 {dimension_numbers = #tpu.dot_dimension_numbers<[1], [0], [0], [1], [0, 0, 1, 1], [], []>} : vector<8x128xbf16>, vector<128x32xbf16>, vector<8x32xf32> -> vector<8x32xf32>
    %c0_149 = arith.constant 0 : index
    %c0_150 = arith.constant 0 : index
    %264 = vector.load %arg17[%c0_149, %c0_150] : memref<1x32xf32, #tpu.memory_space<vmem>>, vector<1x32xf32>
    %265 = vector.shape_cast %264 : vector<1x32xf32> to vector<32xf32>
    %266 = vector.shape_cast %265 : vector<32xf32> to vector<1x32xf32>
    %267 = vector.broadcast %266 : vector<1x32xf32> to vector<8x32xf32>
    %268 = arith.addf %263, %267 : vector<8x32xf32>
    %269 = arith.addf %216, %268 : vector<8x32xf32>
    %c0_151 = arith.constant 0 : index
    %c0_152 = arith.constant 0 : index
    %c0_153 = arith.constant 0 : index
    %270 = vector.load %arg18[%c0_151, %c0_152, %c0_153] : memref<1x8x32xf32, #tpu.memory_space<vmem>>, vector<1x8x32xf32>
    %271 = vector.shape_cast %270 : vector<1x8x32xf32> to vector<8x32xf32>
    %272 = vector.shape_cast %269 : vector<8x32xf32> to vector<1x8x32xf32>
    tpu.vector_store %arg18[%c0_151, %c0_152, %c0_153], %272 {strides = array<i32>} : memref<1x8x32xf32, #tpu.memory_space<vmem>>, vector<1x8x32xf32>,
    return
  }
  func.func @transform_0(%arg0: i32) -> (i32, i32, i32) {
    %c0_i32 = arith.constant 0 : i32
    %c0_i32_0 = arith.constant 0 : i32
    %c0_i32_1 = arith.constant 0 : i32
    return %arg0, %c0_i32, %c0_i32_0 : i32, i32, i32
  }
  func.func @transform_1(%arg0: i32) -> (i32, i32) {
    %c0_i32 = arith.constant 0 : i32
    %c0_i32_0 = arith.constant 0 : i32
    %c0_i32_1 = arith.constant 0 : i32
    return %c0_i32, %c0_i32_0 : i32, i32
  }
  func.func @transform_2(%arg0: i32) -> (i32, i32) {
    %c0_i32 = arith.constant 0 : i32
    %c0_i32_0 = arith.constant 0 : i32
    %c0_i32_1 = arith.constant 0 : i32
    return %c0_i32, %c0_i32_0 : i32, i32
  }
  func.func @transform_3(%arg0: i32) -> (i32, i32, i32) {
    %c0_i32 = arith.constant 0 : i32
    %c0_i32_0 = arith.constant 0 : i32
    %c0_i32_1 = arith.constant 0 : i32
    %c0_i32_2 = arith.constant 0 : i32
    return %c0_i32, %c0_i32_0, %c0_i32_1 : i32, i32, i32
  }
  func.func @transform_4(%arg0: i32) -> (i32, i32, i32) {
    %c0_i32 = arith.constant 0 : i32
    %c0_i32_0 = arith.constant 0 : i32
    %c0_i32_1 = arith.constant 0 : i32
    %c0_i32_2 = arith.constant 0 : i32
    return %c0_i32, %c0_i32_0, %c0_i32_1 : i32, i32, i32
  }
  func.func @transform_5(%arg0: i32) -> (i32, i32, i32) {
    %c0_i32 = arith.constant 0 : i32
    %c0_i32_0 = arith.constant 0 : i32
    %c0_i32_1 = arith.constant 0 : i32
    %c0_i32_2 = arith.constant 0 : i32
    return %c0_i32, %c0_i32_0, %c0_i32_1 : i32, i32, i32
  }
  func.func @transform_6(%arg0: i32) -> (i32, i32, i32) {
    %c0_i32 = arith.constant 0 : i32
    %c0_i32_0 = arith.constant 0 : i32
    %c0_i32_1 = arith.constant 0 : i32
    %c0_i32_2 = arith.constant 0 : i32
    return %c0_i32, %c0_i32_0, %c0_i32_1 : i32, i32, i32
  }
  func.func @transform_7(%arg0: i32) -> (i32, i32, i32) {
    %c0_i32 = arith.constant 0 : i32
    %c0_i32_0 = arith.constant 0 : i32
    %c0_i32_1 = arith.constant 0 : i32
    %c0_i32_2 = arith.constant 0 : i32
    return %c0_i32, %c0_i32_0, %c0_i32_1 : i32, i32, i32
  }
  func.func @transform_8(%arg0: i32) -> (i32, i32, i32) {
    %c0_i32 = arith.constant 0 : i32
    %c0_i32_0 = arith.constant 0 : i32
    %c0_i32_1 = arith.constant 0 : i32
    %c0_i32_2 = arith.constant 0 : i32
    return %c0_i32, %c0_i32_0, %c0_i32_1 : i32, i32, i32
  }
  func.func @transform_9(%arg0: i32) -> (i32, i32, i32) {
    %c0_i32 = arith.constant 0 : i32
    %c0_i32_0 = arith.constant 0 : i32
    %c0_i32_1 = arith.constant 0 : i32
    %c0_i32_2 = arith.constant 0 : i32
    return %c0_i32, %c0_i32_0, %c0_i32_1 : i32, i32, i32
  }
  func.func @transform_10(%arg0: i32) -> (i32, i32) {
    %c0_i32 = arith.constant 0 : i32
    %c0_i32_0 = arith.constant 0 : i32
    %c0_i32_1 = arith.constant 0 : i32
    return %c0_i32, %c0_i32_0 : i32, i32
  }
  func.func @transform_11(%arg0: i32) -> (i32, i32) {
    %c0_i32 = arith.constant 0 : i32
    %c0_i32_0 = arith.constant 0 : i32
    %c0_i32_1 = arith.constant 0 : i32
    return %c0_i32, %c0_i32_0 : i32, i32
  }
  func.func @transform_12(%arg0: i32) -> (i32, i32) {
    %c0_i32 = arith.constant 0 : i32
    %c0_i32_0 = arith.constant 0 : i32
    %c0_i32_1 = arith.constant 0 : i32
    return %c0_i32, %c0_i32_0 : i32, i32
  }
  func.func @transform_13(%arg0: i32) -> (i32, i32) {
    %c0_i32 = arith.constant 0 : i32
    %c0_i32_0 = arith.constant 0 : i32
    %c0_i32_1 = arith.constant 0 : i32
    return %c0_i32, %c0_i32_0 : i32, i32
  }
  func.func @transform_14(%arg0: i32) -> (i32, i32) {
    %c0_i32 = arith.constant 0 : i32
    %c0_i32_0 = arith.constant 0 : i32
    %c0_i32_1 = arith.constant 0 : i32
    return %c0_i32, %c0_i32_0 : i32, i32
  }
  func.func @transform_15(%arg0: i32) -> (i32, i32) {
    %c0_i32 = arith.constant 0 : i32
    %c0_i32_0 = arith.constant 0 : i32
    %c0_i32_1 = arith.constant 0 : i32
    return %c0_i32, %c0_i32_0 : i32, i32
  }
  func.func @transform_16(%arg0: i32) -> (i32, i32) {
    %c0_i32 = arith.constant 0 : i32
    %c0_i32_0 = arith.constant 0 : i32
    %c0_i32_1 = arith.constant 0 : i32
    return %c0_i32, %c0_i32_0 : i32, i32
  }
  func.func @transform_17(%arg0: i32) -> (i32, i32, i32) {
    %c0_i32 = arith.constant 0 : i32
    %c0_i32_0 = arith.constant 0 : i32
    %c0_i32_1 = arith.constant 0 : i32
    return %arg0, %c0_i32, %c0_i32_0 : i32, i32, i32
  }
}

module attributes {stable_mosaic.version = 11 : i64} {
  func.func @clip_layer_kernel(%arg0: i32, %arg1: memref<1x8x32xf32, #tpu.memory_space<vmem>>, %arg2: memref<1x32xf32, #tpu.memory_space<vmem>>, %arg3: memref<1x32xf32, #tpu.memory_space<vmem>>, %arg4: memref<4x32x8xbf16, #tpu.memory_space<vmem>>, %arg5: memref<4x32x8xbf16, #tpu.memory_space<vmem>>, %arg6: memref<4x32x8xbf16, #tpu.memory_space<vmem>>, %arg7: memref<4x1x8xf32, #tpu.memory_space<vmem>>, %arg8: memref<4x1x8xf32, #tpu.memory_space<vmem>>, %arg9: memref<4x1x8xf32, #tpu.memory_space<vmem>>, %arg10: memref<4x8x32xbf16, #tpu.memory_space<vmem>>, %arg11: memref<1x32xf32, #tpu.memory_space<vmem>>, %arg12: memref<1x32xf32, #tpu.memory_space<vmem>>, %arg13: memref<1x32xf32, #tpu.memory_space<vmem>>, %arg14: memref<32x128xbf16, #tpu.memory_space<vmem>>, %arg15: memref<1x128xf32, #tpu.memory_space<vmem>>, %arg16: memref<128x32xbf16, #tpu.memory_space<vmem>>, %arg17: memref<1x32xf32, #tpu.memory_space<vmem>>, %arg18: memref<1x8x32xf32, #tpu.memory_space<vmem>>) attributes {dimension_semantics = [#tpu.dimension_semantics<parallel>], iteration_bounds = array<i64: 2>, scalar_prefetch = 0 : i64, scratch_operands = 0 : i64, tpu.core_type = #tpu.core_type<tc>, window_params = [{transform_indices = @transform_0, window_bounds = array<i64: 1, 8, 32>}, {pipeline_mode = #tpu.pipeline_mode<synchronous>, transform_indices = @transform_1, window_bounds = array<i64: 1, 32>}, {pipeline_mode = #tpu.pipeline_mode<synchronous>, transform_indices = @transform_2, window_bounds = array<i64: 1, 32>}, {pipeline_mode = #tpu.pipeline_mode<synchronous>, transform_indices = @transform_3, window_bounds = array<i64: 4, 32, 8>}, {pipeline_mode = #tpu.pipeline_mode<synchronous>, transform_indices = @transform_4, window_bounds = array<i64: 4, 32, 8>}, {pipeline_mode = #tpu.pipeline_mode<synchronous>, transform_indices = @transform_5, window_bounds = array<i64: 4, 32, 8>}, {pipeline_mode = #tpu.pipeline_mode<synchronous>, transform_indices = @transform_6, window_bounds = array<i64: 4, 1, 8>}, {pipeline_mode = #tpu.pipeline_mode<synchronous>, transform_indices = @transform_7, window_bounds = array<i64: 4, 1, 8>}, {pipeline_mode = #tpu.pipeline_mode<synchronous>, transform_indices = @transform_8, window_bounds = array<i64: 4, 1, 8>}, {pipeline_mode = #tpu.pipeline_mode<synchronous>, transform_indices = @transform_9, window_bounds = array<i64: 4, 8, 32>}, {pipeline_mode = #tpu.pipeline_mode<synchronous>, transform_indices = @transform_10, window_bounds = array<i64: 1, 32>}, {pipeline_mode = #tpu.pipeline_mode<synchronous>, transform_indices = @transform_11, window_bounds = array<i64: 1, 32>}, {pipeline_mode = #tpu.pipeline_mode<synchronous>, transform_indices = @transform_12, window_bounds = array<i64: 1, 32>}, {pipeline_mode = #tpu.pipeline_mode<synchronous>, transform_indices = @transform_13, window_bounds = array<i64: 32, 128>}, {pipeline_mode = #tpu.pipeline_mode<synchronous>, transform_indices = @transform_14, window_bounds = array<i64: 1, 128>}, {pipeline_mode = #tpu.pipeline_mode<synchronous>, transform_indices = @transform_15, window_bounds = array<i64: 128, 32>}, {pipeline_mode = #tpu.pipeline_mode<synchronous>, transform_indices = @transform_16, window_bounds = array<i64: 1, 32>}, {transform_indices = @transform_17, window_bounds = array<i64: 1, 8, 32>}]} {
    %c0 = arith.constant 0 : index
    %c0_0 = arith.constant 0 : index
    %c0_1 = arith.constant 0 : index
    %0 = vector.load %arg1[%c0, %c0_0, %c0_1] : memref<1x8x32xf32, #tpu.memory_space<vmem>>, vector<1x8x32xf32>
    %1 = vector.shape_cast %0 : vector<1x8x32xf32> to vector<8x32xf32>
    %2 = tpu.iota {dimensions = array<i32: 0>} : vector<8x8xi32>
    %3 = tpu.iota {dimensions = array<i32: 1>} : vector<8x8xi32>
    %4 = arith.cmpi sgt, %3, %2 : vector<8x8xi32>
    %c0_2 = arith.constant 0 : index
    %c0_3 = arith.constant 0 : index
    %5 = vector.load %arg2[%c0_2, %c0_3] : memref<1x32xf32, #tpu.memory_space<vmem>>, vector<1x32xf32>
    %6 = vector.shape_cast %5 : vector<1x32xf32> to vector<32xf32>
    %c0_4 = arith.constant 0 : index
    %c0_5 = arith.constant 0 : index
    %7 = vector.load %arg3[%c0_4, %c0_5] : memref<1x32xf32, #tpu.memory_space<vmem>>, vector<1x32xf32>
    %8 = vector.shape_cast %7 : vector<1x32xf32> to vector<32xf32>
    %cst = arith.constant dense<0.000000e+00> : vector<8xf32>
    %9 = vector.multi_reduction <add>, %1, %cst [1] : vector<8x32xf32> to vector<8xf32>
    %10 = vector.shape_cast %9 : vector<8xf32> to vector<8x1xf32>
    %cst_6 = arith.constant 3.200000e+01 : f32
    %11 = vector.broadcast %cst_6 : f32 to vector<8x1xf32>
    %12 = arith.divf %10, %11 : vector<8x1xf32>
    %13 = vector.broadcast %12 : vector<8x1xf32> to vector<8x32xf32>
    %14 = arith.subf %1, %13 : vector<8x32xf32>
    %15 = arith.mulf %14, %14 : vector<8x32xf32>
    %cst_7 = arith.constant dense<0.000000e+00> : vector<8xf32>
    %16 = vector.multi_reduction <add>, %15, %cst_7 [1] : vector<8x32xf32> to vector<8xf32>
    %17 = vector.shape_cast %16 : vector<8xf32> to vector<8x1xf32>
    %cst_8 = arith.constant 3.200000e+01 : f32
    %18 = vector.broadcast %cst_8 : f32 to vector<8x1xf32>
    %19 = arith.divf %17, %18 : vector<8x1xf32>
    %20 = vector.broadcast %12 : vector<8x1xf32> to vector<8x32xf32>
    %21 = arith.subf %1, %20 : vector<8x32xf32>
    %cst_9 = arith.constant 9.99999974E-6 : f32
    %22 = vector.broadcast %cst_9 : f32 to vector<8x1xf32>
    %23 = arith.addf %19, %22 : vector<8x1xf32>
    %24 = math.rsqrt %23 : vector<8x1xf32>
    %25 = vector.broadcast %24 : vector<8x1xf32> to vector<8x32xf32>
    %26 = arith.mulf %21, %25 : vector<8x32xf32>
    %27 = vector.shape_cast %6 : vector<32xf32> to vector<1x32xf32>
    %28 = vector.broadcast %27 : vector<1x32xf32> to vector<8x32xf32>
    %29 = arith.mulf %26, %28 : vector<8x32xf32>
    %30 = vector.shape_cast %8 : vector<32xf32> to vector<1x32xf32>
    %31 = vector.broadcast %30 : vector<1x32xf32> to vector<8x32xf32>
    %32 = arith.addf %29, %31 : vector<8x32xf32>
    %33 = arith.truncf %32 : vector<8x32xf32> to vector<8x32xbf16>
    %cst_10 = arith.constant 0.000000e+00 : f32
    %34 = vector.broadcast %cst_10 : f32 to vector<8x32xf32>
    %c0_11 = arith.constant 0 : index
    %c0_12 = arith.constant 0 : index
    %c0_13 = arith.constant 0 : index
    %35 = vector.load %arg4[%c0_11, %c0_12, %c0_13] : memref<4x32x8xbf16, #tpu.memory_space<vmem>>, vector<1x32x8xbf16>
    %36 = vector.shape_cast %35 : vector<1x32x8xbf16> to vector<32x8xbf16>
    %cst_14 = arith.constant dense<0.000000e+00> : vector<8x8xf32>
    %37 = tpu.matmul %33, %36, %cst_14 {dimension_numbers = #tpu.dot_dimension_numbers<[1], [0], [0], [1], [0, 0, 1, 1], [], []>} : vector<8x32xbf16>, vector<32x8xbf16>, vector<8x8xf32> -> vector<8x8xf32>
    %c0_15 = arith.constant 0 : index
    %c0_16 = arith.constant 0 : index
    %c0_17 = arith.constant 0 : index
    %38 = vector.load %arg7[%c0_15, %c0_16, %c0_17] : memref<4x1x8xf32, #tpu.memory_space<vmem>>, vector<1x1x8xf32>
    %39 = vector.shape_cast %38 : vector<1x1x8xf32> to vector<1x8xf32>
    %40 = vector.broadcast %39 : vector<1x8xf32> to vector<8x8xf32>
    %41 = arith.addf %37, %40 : vector<8x8xf32>
    %c0_18 = arith.constant 0 : index
    %c0_19 = arith.constant 0 : index
    %c0_20 = arith.constant 0 : index
    %42 = vector.load %arg5[%c0_18, %c0_19, %c0_20] : memref<4x32x8xbf16, #tpu.memory_space<vmem>>, vector<1x32x8xbf16>
    %43 = vector.shape_cast %42 : vector<1x32x8xbf16> to vector<32x8xbf16>
    %cst_21 = arith.constant dense<0.000000e+00> : vector<8x8xf32>
    %44 = tpu.matmul %33, %43, %cst_21 {dimension_numbers = #tpu.dot_dimension_numbers<[1], [0], [0], [1], [0, 0, 1, 1], [], []>} : vector<8x32xbf16>, vector<32x8xbf16>, vector<8x8xf32> -> vector<8x8xf32>
    %c0_22 = arith.constant 0 : index
    %c0_23 = arith.constant 0 : index
    %c0_24 = arith.constant 0 : index
    %45 = vector.load %arg8[%c0_22, %c0_23, %c0_24] : memref<4x1x8xf32, #tpu.memory_space<vmem>>, vector<1x1x8xf32>
    %46 = vector.shape_cast %45 : vector<1x1x8xf32> to vector<1x8xf32>
    %47 = vector.broadcast %46 : vector<1x8xf32> to vector<8x8xf32>
    %48 = arith.addf %44, %47 : vector<8x8xf32>
    %c0_25 = arith.constant 0 : index
    %c0_26 = arith.constant 0 : index
    %c0_27 = arith.constant 0 : index
    %49 = vector.load %arg6[%c0_25, %c0_26, %c0_27] : memref<4x32x8xbf16, #tpu.memory_space<vmem>>, vector<1x32x8xbf16>
    %50 = vector.shape_cast %49 : vector<1x32x8xbf16> to vector<32x8xbf16>
    %cst_28 = arith.constant dense<0.000000e+00> : vector<8x8xf32>
    %51 = tpu.matmul %33, %50, %cst_28 {dimension_numbers = #tpu.dot_dimension_numbers<[1], [0], [0], [1], [0, 0, 1, 1], [], []>} : vector<8x32xbf16>, vector<32x8xbf16>, vector<8x8xf32> -> vector<8x8xf32>
    %c0_29 = arith.constant 0 : index
    %c0_30 = arith.constant 0 : index
    %c0_31 = arith.constant 0 : index
    %52 = vector.load %arg9[%c0_29, %c0_30, %c0_31] : memref<4x1x8xf32, #tpu.memory_space<vmem>>, vector<1x1x8xf32>
    %53 = vector.shape_cast %52 : vector<1x1x8xf32> to vector<1x8xf32>
    %54 = vector.broadcast %53 : vector<1x8xf32> to vector<8x8xf32>
    %55 = arith.addf %51, %54 : vector<8x8xf32>
    %56 = arith.truncf %41 : vector<8x8xf32> to vector<8x8xbf16>
    %57 = arith.truncf %48 : vector<8x8xf32> to vector<8x8xbf16>
    "tpu.trace_start"() <{level = 10 : i32, message = "qd,kd->qk"}> : () -> ()
    %cst_32 = arith.constant dense<0.000000e+00> : vector<8x8xf32>
    %58 = tpu.matmul %56, %57, %cst_32 {dimension_numbers = #tpu.dot_dimension_numbers<[1], [1], [0], [0], [0, 0, 1, 0], [], []>} : vector<8x8xbf16>, vector<8x8xbf16>, vector<8x8xf32> -> vector<8x8xf32>
    %cst_33 = arith.constant 0xFF800000 : f32
    "tpu.trace_stop"() : () -> ()
    %59 = vector.broadcast %cst_33 : f32 to vector<8x8xf32>
    %60 = arith.select %4, %59, %58 : vector<8x8xi1>, vector<8x8xf32>
    %cst_34 = arith.constant dense<0xFF800000> : vector<8xf32>
    %61 = vector.multi_reduction <maximumf>, %60, %cst_34 [1] : vector<8x8xf32> to vector<8xf32>
    %62 = vector.shape_cast %61 : vector<8xf32> to vector<8x1xf32>
    %63 = vector.broadcast %62 : vector<8x1xf32> to vector<8x8xf32>
    %64 = arith.subf %60, %63 : vector<8x8xf32>
    %65 = math.exp %64 : vector<8x8xf32>
    %cst_35 = arith.constant dense<0.000000e+00> : vector<8xf32>
    %66 = vector.multi_reduction <add>, %65, %cst_35 [1] : vector<8x8xf32> to vector<8xf32>
    %67 = vector.shape_cast %66 : vector<8xf32> to vector<8x1xf32>
    %68 = tpu.reciprocal %67 {approx = true} : vector<8x1xf32> -> vector<8x1xf32>
    %69 = vector.broadcast %68 : vector<8x1xf32> to vector<8x8xf32>
    %70 = arith.mulf %65, %69 : vector<8x8xf32>
    %71 = arith.truncf %70 : vector<8x8xf32> to vector<8x8xbf16>
    %72 = arith.truncf %55 : vector<8x8xf32> to vector<8x8xbf16>
    %cst_36 = arith.constant dense<0.000000e+00> : vector<8x8xf32>
    %73 = tpu.matmul %71, %72, %cst_36 {dimension_numbers = #tpu.dot_dimension_numbers<[1], [0], [0], [1], [0, 0, 1, 1], [], []>} : vector<8x8xbf16>, vector<8x8xbf16>, vector<8x8xf32> -> vector<8x8xf32>
    %74 = arith.truncf %73 : vector<8x8xf32> to vector<8x8xbf16>
    %c0_37 = arith.constant 0 : index
    %c0_38 = arith.constant 0 : index
    %c0_39 = arith.constant 0 : index
    %75 = vector.load %arg10[%c0_37, %c0_38, %c0_39] : memref<4x8x32xbf16, #tpu.memory_space<vmem>>, vector<1x8x32xbf16>
    %76 = vector.shape_cast %75 : vector<1x8x32xbf16> to vector<8x32xbf16>
    %cst_40 = arith.constant dense<0.000000e+00> : vector<8x32xf32>
    %77 = tpu.matmul %74, %76, %cst_40 {dimension_numbers = #tpu.dot_dimension_numbers<[1], [0], [0], [1], [0, 0, 1, 1], [], []>} : vector<8x8xbf16>, vector<8x32xbf16>, vector<8x32xf32> -> vector<8x32xf32>
    %78 = arith.addf %34, %77 : vector<8x32xf32>
    %c1 = arith.constant 1 : index
    %c0_41 = arith.constant 0 : index
    %c0_42 = arith.constant 0 : index
    %79 = vector.load %arg4[%c1, %c0_41, %c0_42] : memref<4x32x8xbf16, #tpu.memory_space<vmem>>, vector<1x32x8xbf16>
    %80 = vector.shape_cast %79 : vector<1x32x8xbf16> to vector<32x8xbf16>
    %cst_43 = arith.constant dense<0.000000e+00> : vector<8x8xf32>
    %81 = tpu.matmul %33, %80, %cst_43 {dimension_numbers = #tpu.dot_dimension_numbers<[1], [0], [0], [1], [0, 0, 1, 1], [], []>} : vector<8x32xbf16>, vector<32x8xbf16>, vector<8x8xf32> -> vector<8x8xf32>
    %c1_44 = arith.constant 1 : index
    %c0_45 = arith.constant 0 : index
    %c0_46 = arith.constant 0 : index
    %82 = vector.load %arg7[%c1_44, %c0_45, %c0_46] : memref<4x1x8xf32, #tpu.memory_space<vmem>>, vector<1x1x8xf32>
    %83 = vector.shape_cast %82 : vector<1x1x8xf32> to vector<1x8xf32>
    %84 = vector.broadcast %83 : vector<1x8xf32> to vector<8x8xf32>
    %85 = arith.addf %81, %84 : vector<8x8xf32>
    %c1_47 = arith.constant 1 : index
    %c0_48 = arith.constant 0 : index
    %c0_49 = arith.constant 0 : index
    %86 = vector.load %arg5[%c1_47, %c0_48, %c0_49] : memref<4x32x8xbf16, #tpu.memory_space<vmem>>, vector<1x32x8xbf16>
    %87 = vector.shape_cast %86 : vector<1x32x8xbf16> to vector<32x8xbf16>
    %cst_50 = arith.constant dense<0.000000e+00> : vector<8x8xf32>
    %88 = tpu.matmul %33, %87, %cst_50 {dimension_numbers = #tpu.dot_dimension_numbers<[1], [0], [0], [1], [0, 0, 1, 1], [], []>} : vector<8x32xbf16>, vector<32x8xbf16>, vector<8x8xf32> -> vector<8x8xf32>
    %c1_51 = arith.constant 1 : index
    %c0_52 = arith.constant 0 : index
    %c0_53 = arith.constant 0 : index
    %89 = vector.load %arg8[%c1_51, %c0_52, %c0_53] : memref<4x1x8xf32, #tpu.memory_space<vmem>>, vector<1x1x8xf32>
    %90 = vector.shape_cast %89 : vector<1x1x8xf32> to vector<1x8xf32>
    %91 = vector.broadcast %90 : vector<1x8xf32> to vector<8x8xf32>
    %92 = arith.addf %88, %91 : vector<8x8xf32>
    %c1_54 = arith.constant 1 : index
    %c0_55 = arith.constant 0 : index
    %c0_56 = arith.constant 0 : index
    %93 = vector.load %arg6[%c1_54, %c0_55, %c0_56] : memref<4x32x8xbf16, #tpu.memory_space<vmem>>, vector<1x32x8xbf16>
    %94 = vector.shape_cast %93 : vector<1x32x8xbf16> to vector<32x8xbf16>
    %cst_57 = arith.constant dense<0.000000e+00> : vector<8x8xf32>
    %95 = tpu.matmul %33, %94, %cst_57 {dimension_numbers = #tpu.dot_dimension_numbers<[1], [0], [0], [1], [0, 0, 1, 1], [], []>} : vector<8x32xbf16>, vector<32x8xbf16>, vector<8x8xf32> -> vector<8x8xf32>
    %c1_58 = arith.constant 1 : index
    %c0_59 = arith.constant 0 : index
    %c0_60 = arith.constant 0 : index
    %96 = vector.load %arg9[%c1_58, %c0_59, %c0_60] : memref<4x1x8xf32, #tpu.memory_space<vmem>>, vector<1x1x8xf32>
    %97 = vector.shape_cast %96 : vector<1x1x8xf32> to vector<1x8xf32>
    %98 = vector.broadcast %97 : vector<1x8xf32> to vector<8x8xf32>
    %99 = arith.addf %95, %98 : vector<8x8xf32>
    %100 = arith.truncf %85 : vector<8x8xf32> to vector<8x8xbf16>
    %101 = arith.truncf %92 : vector<8x8xf32> to vector<8x8xbf16>
    "tpu.trace_start"() <{level = 10 : i32, message = "qd,kd->qk"}> : () -> ()
    %cst_61 = arith.constant dense<0.000000e+00> : vector<8x8xf32>
    %102 = tpu.matmul %100, %101, %cst_61 {dimension_numbers = #tpu.dot_dimension_numbers<[1], [1], [0], [0], [0, 0, 1, 0], [], []>} : vector<8x8xbf16>, vector<8x8xbf16>, vector<8x8xf32> -> vector<8x8xf32>
    %cst_62 = arith.constant 0xFF800000 : f32
    "tpu.trace_stop"() : () -> ()
    %103 = vector.broadcast %cst_62 : f32 to vector<8x8xf32>
    %104 = arith.select %4, %103, %102 : vector<8x8xi1>, vector<8x8xf32>
    %cst_63 = arith.constant dense<0xFF800000> : vector<8xf32>
    %105 = vector.multi_reduction <maximumf>, %104, %cst_63 [1] : vector<8x8xf32> to vector<8xf32>
    %106 = vector.shape_cast %105 : vector<8xf32> to vector<8x1xf32>
    %107 = vector.broadcast %106 : vector<8x1xf32> to vector<8x8xf32>
    %108 = arith.subf %104, %107 : vector<8x8xf32>
    %109 = math.exp %108 : vector<8x8xf32>
    %cst_64 = arith.constant dense<0.000000e+00> : vector<8xf32>
    %110 = vector.multi_reduction <add>, %109, %cst_64 [1] : vector<8x8xf32> to vector<8xf32>
    %111 = vector.shape_cast %110 : vector<8xf32> to vector<8x1xf32>
    %112 = tpu.reciprocal %111 {approx = true} : vector<8x1xf32> -> vector<8x1xf32>
    %113 = vector.broadcast %112 : vector<8x1xf32> to vector<8x8xf32>
    %114 = arith.mulf %109, %113 : vector<8x8xf32>
    %115 = arith.truncf %114 : vector<8x8xf32> to vector<8x8xbf16>
    %116 = arith.truncf %99 : vector<8x8xf32> to vector<8x8xbf16>
    %cst_65 = arith.constant dense<0.000000e+00> : vector<8x8xf32>
    %117 = tpu.matmul %115, %116, %cst_65 {dimension_numbers = #tpu.dot_dimension_numbers<[1], [0], [0], [1], [0, 0, 1, 1], [], []>} : vector<8x8xbf16>, vector<8x8xbf16>, vector<8x8xf32> -> vector<8x8xf32>
    %118 = arith.truncf %117 : vector<8x8xf32> to vector<8x8xbf16>
    %c1_66 = arith.constant 1 : index
    %c0_67 = arith.constant 0 : index
    %c0_68 = arith.constant 0 : index
    %119 = vector.load %arg10[%c1_66, %c0_67, %c0_68] : memref<4x8x32xbf16, #tpu.memory_space<vmem>>, vector<1x8x32xbf16>
    %120 = vector.shape_cast %119 : vector<1x8x32xbf16> to vector<8x32xbf16>
    %cst_69 = arith.constant dense<0.000000e+00> : vector<8x32xf32>
    %121 = tpu.matmul %118, %120, %cst_69 {dimension_numbers = #tpu.dot_dimension_numbers<[1], [0], [0], [1], [0, 0, 1, 1], [], []>} : vector<8x8xbf16>, vector<8x32xbf16>, vector<8x32xf32> -> vector<8x32xf32>
    %122 = arith.addf %78, %121 : vector<8x32xf32>
    %c2 = arith.constant 2 : index
    %c0_70 = arith.constant 0 : index
    %c0_71 = arith.constant 0 : index
    %123 = vector.load %arg4[%c2, %c0_70, %c0_71] : memref<4x32x8xbf16, #tpu.memory_space<vmem>>, vector<1x32x8xbf16>
    %124 = vector.shape_cast %123 : vector<1x32x8xbf16> to vector<32x8xbf16>
    %cst_72 = arith.constant dense<0.000000e+00> : vector<8x8xf32>
    %125 = tpu.matmul %33, %124, %cst_72 {dimension_numbers = #tpu.dot_dimension_numbers<[1], [0], [0], [1], [0, 0, 1, 1], [], []>} : vector<8x32xbf16>, vector<32x8xbf16>, vector<8x8xf32> -> vector<8x8xf32>
    %c2_73 = arith.constant 2 : index
    %c0_74 = arith.constant 0 : index
    %c0_75 = arith.constant 0 : index
    %126 = vector.load %arg7[%c2_73, %c0_74, %c0_75] : memref<4x1x8xf32, #tpu.memory_space<vmem>>, vector<1x1x8xf32>
    %127 = vector.shape_cast %126 : vector<1x1x8xf32> to vector<1x8xf32>
    %128 = vector.broadcast %127 : vector<1x8xf32> to vector<8x8xf32>
    %129 = arith.addf %125, %128 : vector<8x8xf32>
    %c2_76 = arith.constant 2 : index
    %c0_77 = arith.constant 0 : index
    %c0_78 = arith.constant 0 : index
    %130 = vector.load %arg5[%c2_76, %c0_77, %c0_78] : memref<4x32x8xbf16, #tpu.memory_space<vmem>>, vector<1x32x8xbf16>
    %131 = vector.shape_cast %130 : vector<1x32x8xbf16> to vector<32x8xbf16>
    %cst_79 = arith.constant dense<0.000000e+00> : vector<8x8xf32>
    %132 = tpu.matmul %33, %131, %cst_79 {dimension_numbers = #tpu.dot_dimension_numbers<[1], [0], [0], [1], [0, 0, 1, 1], [], []>} : vector<8x32xbf16>, vector<32x8xbf16>, vector<8x8xf32> -> vector<8x8xf32>
    %c2_80 = arith.constant 2 : index
    %c0_81 = arith.constant 0 : index
    %c0_82 = arith.constant 0 : index
    %133 = vector.load %arg8[%c2_80, %c0_81, %c0_82] : memref<4x1x8xf32, #tpu.memory_space<vmem>>, vector<1x1x8xf32>
    %134 = vector.shape_cast %133 : vector<1x1x8xf32> to vector<1x8xf32>
    %135 = vector.broadcast %134 : vector<1x8xf32> to vector<8x8xf32>
    %136 = arith.addf %132, %135 : vector<8x8xf32>
    %c2_83 = arith.constant 2 : index
    %c0_84 = arith.constant 0 : index
    %c0_85 = arith.constant 0 : index
    %137 = vector.load %arg6[%c2_83, %c0_84, %c0_85] : memref<4x32x8xbf16, #tpu.memory_space<vmem>>, vector<1x32x8xbf16>
    %138 = vector.shape_cast %137 : vector<1x32x8xbf16> to vector<32x8xbf16>
    %cst_86 = arith.constant dense<0.000000e+00> : vector<8x8xf32>
    %139 = tpu.matmul %33, %138, %cst_86 {dimension_numbers = #tpu.dot_dimension_numbers<[1], [0], [0], [1], [0, 0, 1, 1], [], []>} : vector<8x32xbf16>, vector<32x8xbf16>, vector<8x8xf32> -> vector<8x8xf32>
    %c2_87 = arith.constant 2 : index
    %c0_88 = arith.constant 0 : index
    %c0_89 = arith.constant 0 : index
    %140 = vector.load %arg9[%c2_87, %c0_88, %c0_89] : memref<4x1x8xf32, #tpu.memory_space<vmem>>, vector<1x1x8xf32>
    %141 = vector.shape_cast %140 : vector<1x1x8xf32> to vector<1x8xf32>
    %142 = vector.broadcast %141 : vector<1x8xf32> to vector<8x8xf32>
    %143 = arith.addf %139, %142 : vector<8x8xf32>
    %144 = arith.truncf %129 : vector<8x8xf32> to vector<8x8xbf16>
    %145 = arith.truncf %136 : vector<8x8xf32> to vector<8x8xbf16>
    "tpu.trace_start"() <{level = 10 : i32, message = "qd,kd->qk"}> : () -> ()
    %cst_90 = arith.constant dense<0.000000e+00> : vector<8x8xf32>
    %146 = tpu.matmul %144, %145, %cst_90 {dimension_numbers = #tpu.dot_dimension_numbers<[1], [1], [0], [0], [0, 0, 1, 0], [], []>} : vector<8x8xbf16>, vector<8x8xbf16>, vector<8x8xf32> -> vector<8x8xf32>
    %cst_91 = arith.constant 0xFF800000 : f32
    "tpu.trace_stop"() : () -> ()
    %147 = vector.broadcast %cst_91 : f32 to vector<8x8xf32>
    %148 = arith.select %4, %147, %146 : vector<8x8xi1>, vector<8x8xf32>
    %cst_92 = arith.constant dense<0xFF800000> : vector<8xf32>
    %149 = vector.multi_reduction <maximumf>, %148, %cst_92 [1] : vector<8x8xf32> to vector<8xf32>
    %150 = vector.shape_cast %149 : vector<8xf32> to vector<8x1xf32>
    %151 = vector.broadcast %150 : vector<8x1xf32> to vector<8x8xf32>
    %152 = arith.subf %148, %151 : vector<8x8xf32>
    %153 = math.exp %152 : vector<8x8xf32>
    %cst_93 = arith.constant dense<0.000000e+00> : vector<8xf32>
    %154 = vector.multi_reduction <add>, %153, %cst_93 [1] : vector<8x8xf32> to vector<8xf32>
    %155 = vector.shape_cast %154 : vector<8xf32> to vector<8x1xf32>
    %156 = tpu.reciprocal %155 {approx = true} : vector<8x1xf32> -> vector<8x1xf32>
    %157 = vector.broadcast %156 : vector<8x1xf32> to vector<8x8xf32>
    %158 = arith.mulf %153, %157 : vector<8x8xf32>
    %159 = arith.truncf %158 : vector<8x8xf32> to vector<8x8xbf16>
    %160 = arith.truncf %143 : vector<8x8xf32> to vector<8x8xbf16>
    %cst_94 = arith.constant dense<0.000000e+00> : vector<8x8xf32>
    %161 = tpu.matmul %159, %160, %cst_94 {dimension_numbers = #tpu.dot_dimension_numbers<[1], [0], [0], [1], [0, 0, 1, 1], [], []>} : vector<8x8xbf16>, vector<8x8xbf16>, vector<8x8xf32> -> vector<8x8xf32>
    %162 = arith.truncf %161 : vector<8x8xf32> to vector<8x8xbf16>
    %c2_95 = arith.constant 2 : index
    %c0_96 = arith.constant 0 : index
    %c0_97 = arith.constant 0 : index
    %163 = vector.load %arg10[%c2_95, %c0_96, %c0_97] : memref<4x8x32xbf16, #tpu.memory_space<vmem>>, vector<1x8x32xbf16>
    %164 = vector.shape_cast %163 : vector<1x8x32xbf16> to vector<8x32xbf16>
    %cst_98 = arith.constant dense<0.000000e+00> : vector<8x32xf32>
    %165 = tpu.matmul %162, %164, %cst_98 {dimension_numbers = #tpu.dot_dimension_numbers<[1], [0], [0], [1], [0, 0, 1, 1], [], []>} : vector<8x8xbf16>, vector<8x32xbf16>, vector<8x32xf32> -> vector<8x32xf32>
    %166 = arith.addf %122, %165 : vector<8x32xf32>
    %c3 = arith.constant 3 : index
    %c0_99 = arith.constant 0 : index
    %c0_100 = arith.constant 0 : index
    %167 = vector.load %arg4[%c3, %c0_99, %c0_100] : memref<4x32x8xbf16, #tpu.memory_space<vmem>>, vector<1x32x8xbf16>
    %168 = vector.shape_cast %167 : vector<1x32x8xbf16> to vector<32x8xbf16>
    %cst_101 = arith.constant dense<0.000000e+00> : vector<8x8xf32>
    %169 = tpu.matmul %33, %168, %cst_101 {dimension_numbers = #tpu.dot_dimension_numbers<[1], [0], [0], [1], [0, 0, 1, 1], [], []>} : vector<8x32xbf16>, vector<32x8xbf16>, vector<8x8xf32> -> vector<8x8xf32>
    %c3_102 = arith.constant 3 : index
    %c0_103 = arith.constant 0 : index
    %c0_104 = arith.constant 0 : index
    %170 = vector.load %arg7[%c3_102, %c0_103, %c0_104] : memref<4x1x8xf32, #tpu.memory_space<vmem>>, vector<1x1x8xf32>
    %171 = vector.shape_cast %170 : vector<1x1x8xf32> to vector<1x8xf32>
    %172 = vector.broadcast %171 : vector<1x8xf32> to vector<8x8xf32>
    %173 = arith.addf %169, %172 : vector<8x8xf32>
    %c3_105 = arith.constant 3 : index
    %c0_106 = arith.constant 0 : index
    %c0_107 = arith.constant 0 : index
    %174 = vector.load %arg5[%c3_105, %c0_106, %c0_107] : memref<4x32x8xbf16, #tpu.memory_space<vmem>>, vector<1x32x8xbf16>
    %175 = vector.shape_cast %174 : vector<1x32x8xbf16> to vector<32x8xbf16>
    %cst_108 = arith.constant dense<0.000000e+00> : vector<8x8xf32>
    %176 = tpu.matmul %33, %175, %cst_108 {dimension_numbers = #tpu.dot_dimension_numbers<[1], [0], [0], [1], [0, 0, 1, 1], [], []>} : vector<8x32xbf16>, vector<32x8xbf16>, vector<8x8xf32> -> vector<8x8xf32>
    %c3_109 = arith.constant 3 : index
    %c0_110 = arith.constant 0 : index
    %c0_111 = arith.constant 0 : index
    %177 = vector.load %arg8[%c3_109, %c0_110, %c0_111] : memref<4x1x8xf32, #tpu.memory_space<vmem>>, vector<1x1x8xf32>
    %178 = vector.shape_cast %177 : vector<1x1x8xf32> to vector<1x8xf32>
    %179 = vector.broadcast %178 : vector<1x8xf32> to vector<8x8xf32>
    %180 = arith.addf %176, %179 : vector<8x8xf32>
    %c3_112 = arith.constant 3 : index
    %c0_113 = arith.constant 0 : index
    %c0_114 = arith.constant 0 : index
    %181 = vector.load %arg6[%c3_112, %c0_113, %c0_114] : memref<4x32x8xbf16, #tpu.memory_space<vmem>>, vector<1x32x8xbf16>
    %182 = vector.shape_cast %181 : vector<1x32x8xbf16> to vector<32x8xbf16>
    %cst_115 = arith.constant dense<0.000000e+00> : vector<8x8xf32>
    %183 = tpu.matmul %33, %182, %cst_115 {dimension_numbers = #tpu.dot_dimension_numbers<[1], [0], [0], [1], [0, 0, 1, 1], [], []>} : vector<8x32xbf16>, vector<32x8xbf16>, vector<8x8xf32> -> vector<8x8xf32>
    %c3_116 = arith.constant 3 : index
    %c0_117 = arith.constant 0 : index
    %c0_118 = arith.constant 0 : index
    %184 = vector.load %arg9[%c3_116, %c0_117, %c0_118] : memref<4x1x8xf32, #tpu.memory_space<vmem>>, vector<1x1x8xf32>
    %185 = vector.shape_cast %184 : vector<1x1x8xf32> to vector<1x8xf32>
    %186 = vector.broadcast %185 : vector<1x8xf32> to vector<8x8xf32>
    %187 = arith.addf %183, %186 : vector<8x8xf32>
    %188 = arith.truncf %173 : vector<8x8xf32> to vector<8x8xbf16>
    %189 = arith.truncf %180 : vector<8x8xf32> to vector<8x8xbf16>
    "tpu.trace_start"() <{level = 10 : i32, message = "qd,kd->qk"}> : () -> ()
    %cst_119 = arith.constant dense<0.000000e+00> : vector<8x8xf32>
    %190 = tpu.matmul %188, %189, %cst_119 {dimension_numbers = #tpu.dot_dimension_numbers<[1], [1], [0], [0], [0, 0, 1, 0], [], []>} : vector<8x8xbf16>, vector<8x8xbf16>, vector<8x8xf32> -> vector<8x8xf32>
    %cst_120 = arith.constant 0xFF800000 : f32
    "tpu.trace_stop"() : () -> ()
    %191 = vector.broadcast %cst_120 : f32 to vector<8x8xf32>
    %192 = arith.select %4, %191, %190 : vector<8x8xi1>, vector<8x8xf32>
    %cst_121 = arith.constant dense<0xFF800000> : vector<8xf32>
    %193 = vector.multi_reduction <maximumf>, %192, %cst_121 [1] : vector<8x8xf32> to vector<8xf32>
    %194 = vector.shape_cast %193 : vector<8xf32> to vector<8x1xf32>
    %195 = vector.broadcast %194 : vector<8x1xf32> to vector<8x8xf32>
    %196 = arith.subf %192, %195 : vector<8x8xf32>
    %197 = math.exp %196 : vector<8x8xf32>
    %cst_122 = arith.constant dense<0.000000e+00> : vector<8xf32>
    %198 = vector.multi_reduction <add>, %197, %cst_122 [1] : vector<8x8xf32> to vector<8xf32>
    %199 = vector.shape_cast %198 : vector<8xf32> to vector<8x1xf32>
    %200 = tpu.reciprocal %199 {approx = true} : vector<8x1xf32> -> vector<8x1xf32>
    %201 = vector.broadcast %200 : vector<8x1xf32> to vector<8x8xf32>
    %202 = arith.mulf %197, %201 : vector<8x8xf32>
    %203 = arith.truncf %202 : vector<8x8xf32> to vector<8x8xbf16>
    %204 = arith.truncf %187 : vector<8x8xf32> to vector<8x8xbf16>
    %cst_123 = arith.constant dense<0.000000e+00> : vector<8x8xf32>
    %205 = tpu.matmul %203, %204, %cst_123 {dimension_numbers = #tpu.dot_dimension_numbers<[1], [0], [0], [1], [0, 0, 1, 1], [], []>} : vector<8x8xbf16>, vector<8x8xbf16>, vector<8x8xf32> -> vector<8x8xf32>
    %206 = arith.truncf %205 : vector<8x8xf32> to vector<8x8xbf16>
    %c3_124 = arith.constant 3 : index
    %c0_125 = arith.constant 0 : index
    %c0_126 = arith.constant 0 : index
    %207 = vector.load %arg10[%c3_124, %c0_125, %c0_126] : memref<4x8x32xbf16, #tpu.memory_space<vmem>>, vector<1x8x32xbf16>
    %208 = vector.shape_cast %207 : vector<1x8x32xbf16> to vector<8x32xbf16>
    %cst_127 = arith.constant dense<0.000000e+00> : vector<8x32xf32>
    %209 = tpu.matmul %206, %208, %cst_127 {dimension_numbers = #tpu.dot_dimension_numbers<[1], [0], [0], [1], [0, 0, 1, 1], [], []>} : vector<8x8xbf16>, vector<8x32xbf16>, vector<8x32xf32> -> vector<8x32xf32>
    %210 = arith.addf %166, %209 : vector<8x32xf32>
    %211 = arith.addf %1, %210 : vector<8x32xf32>
    %c0_128 = arith.constant 0 : index
    %c0_129 = arith.constant 0 : index
    %212 = vector.load %arg11[%c0_128, %c0_129] : memref<1x32xf32, #tpu.memory_space<vmem>>, vector<1x32xf32>
    %213 = vector.shape_cast %212 : vector<1x32xf32> to vector<32xf32>
    %214 = vector.shape_cast %213 : vector<32xf32> to vector<1x32xf32>
    %215 = vector.broadcast %214 : vector<1x32xf32> to vector<8x32xf32>
    %216 = arith.addf %211, %215 : vector<8x32xf32>
    %c0_130 = arith.constant 0 : index
    %c0_131 = arith.constant 0 : index
    %217 = vector.load %arg12[%c0_130, %c0_131] : memref<1x32xf32, #tpu.memory_space<vmem>>, vector<1x32xf32>
    %218 = vector.shape_cast %217 : vector<1x32xf32> to vector<32xf32>
    %c0_132 = arith.constant 0 : index
    %c0_133 = arith.constant 0 : index
    %219 = vector.load %arg13[%c0_132, %c0_133] : memref<1x32xf32, #tpu.memory_space<vmem>>, vector<1x32xf32>
    %220 = vector.shape_cast %219 : vector<1x32xf32> to vector<32xf32>
    %cst_134 = arith.constant dense<0.000000e+00> : vector<8xf32>
    %221 = vector.multi_reduction <add>, %216, %cst_134 [1] : vector<8x32xf32> to vector<8xf32>
    %222 = vector.shape_cast %221 : vector<8xf32> to vector<8x1xf32>
    %cst_135 = arith.constant 3.200000e+01 : f32
    %223 = vector.broadcast %cst_135 : f32 to vector<8x1xf32>
    %224 = arith.divf %222, %223 : vector<8x1xf32>
    %225 = vector.broadcast %224 : vector<8x1xf32> to vector<8x32xf32>
    %226 = arith.subf %216, %225 : vector<8x32xf32>
    %227 = arith.mulf %226, %226 : vector<8x32xf32>
    %cst_136 = arith.constant dense<0.000000e+00> : vector<8xf32>
    %228 = vector.multi_reduction <add>, %227, %cst_136 [1] : vector<8x32xf32> to vector<8xf32>
    %229 = vector.shape_cast %228 : vector<8xf32> to vector<8x1xf32>
    %cst_137 = arith.constant 3.200000e+01 : f32
    %230 = vector.broadcast %cst_137 : f32 to vector<8x1xf32>
    %231 = arith.divf %229, %230 : vector<8x1xf32>
    %232 = vector.broadcast %224 : vector<8x1xf32> to vector<8x32xf32>
    %233 = arith.subf %216, %232 : vector<8x32xf32>
    %cst_138 = arith.constant 9.99999974E-6 : f32
    %234 = vector.broadcast %cst_138 : f32 to vector<8x1xf32>
    %235 = arith.addf %231, %234 : vector<8x1xf32>
    %236 = math.rsqrt %235 : vector<8x1xf32>
    %237 = vector.broadcast %236 : vector<8x1xf32> to vector<8x32xf32>
    %238 = arith.mulf %233, %237 : vector<8x32xf32>
    %239 = vector.shape_cast %218 : vector<32xf32> to vector<1x32xf32>
    %240 = vector.broadcast %239 : vector<1x32xf32> to vector<8x32xf32>
    %241 = arith.mulf %238, %240 : vector<8x32xf32>
    %242 = vector.shape_cast %220 : vector<32xf32> to vector<1x32xf32>
    %243 = vector.broadcast %242 : vector<1x32xf32> to vector<8x32xf32>
    %244 = arith.addf %241, %243 : vector<8x32xf32>
    %245 = arith.truncf %244 : vector<8x32xf32> to vector<8x32xbf16>
    %c0_139 = arith.constant 0 : index
    %c0_140 = arith.constant 0 : index
    %246 = vector.load %arg14[%c0_139, %c0_140] : memref<32x128xbf16, #tpu.memory_space<vmem>>, vector<32x128xbf16>
    %cst_141 = arith.constant dense<0.000000e+00> : vector<8x128xf32>
    %247 = tpu.matmul %245, %246, %cst_141 {dimension_numbers = #tpu.dot_dimension_numbers<[1], [0], [0], [1], [0, 0, 1, 1], [], []>} : vector<8x32xbf16>, vector<32x128xbf16>, vector<8x128xf32> -> vector<8x128xf32>
    %c0_142 = arith.constant 0 : index
    %c0_143 = arith.constant 0 : index
    %248 = vector.load %arg15[%c0_142, %c0_143] : memref<1x128xf32, #tpu.memory_space<vmem>>, vector<1x128xf32>
    %249 = vector.shape_cast %248 : vector<1x128xf32> to vector<128xf32>
    %250 = vector.shape_cast %249 : vector<128xf32> to vector<1x128xf32>
    %251 = vector.broadcast %250 : vector<1x128xf32> to vector<8x128xf32>
    %252 = arith.addf %247, %251 : vector<8x128xf32>
    %cst_144 = arith.constant 1.702000e+00 : f32
    %253 = vector.broadcast %cst_144 : f32 to vector<8x128xf32>
    %254 = arith.mulf %253, %252 : vector<8x128xf32>
    %255 = arith.negf %254 : vector<8x128xf32>
    %256 = math.exp %255 : vector<8x128xf32>
    %cst_145 = arith.constant 1.000000e+00 : f32
    %257 = vector.broadcast %cst_145 : f32 to vector<8x128xf32>
    %258 = arith.addf %257, %256 : vector<8x128xf32>
    %259 = arith.divf %257, %258 : vector<8x128xf32>
    %260 = arith.mulf %252, %259 : vector<8x128xf32>
    %261 = arith.truncf %260 : vector<8x128xf32> to vector<8x128xbf16>
    %c0_146 = arith.constant 0 : index
    %c0_147 = arith.constant 0 : index
    %262 = vector.load %arg16[%c0_146, %c0_147] : memref<128x32xbf16, #tpu.memory_space<vmem>>, vector<128x32xbf16>
    %cst_148 = arith.constant dense<0.000000e+00> : vector<8x32xf32>
    %263 = tpu.matmul %261, %262, %cst_148 {dimension_numbers = #tpu.dot_dimension_numbers<[1], [0], [0], [1], [0, 0, 1, 1], [], []>} : vector<8x128xbf16>, vector<128x32xbf16>, vector<8x32xf32> -> vector<8x32xf32>
    %c0_149 = arith.constant 0 : index
    %c0_150 = arith.constant 0 : index
    %264 = vector.load %arg17[%c0_149, %c0_150] : memref<1x32xf32, #tpu.memory_space<vmem>>, vector<1x32xf32>
    %265 = vector.shape_cast %264 : vector<1x32xf32> to vector<32xf32>
    %266 = vector.shape_cast %265 : vector<32xf32> to vector<1x32xf32>
    %267 = vector.broadcast %266 : vector<1x32xf32> to vector<8x32xf32>
    %268 = arith.addf %263, %267 : vector<8x32xf32>
    %269 = arith.addf %216, %268 : vector<8x32xf32>
    %c0_151 = arith.constant 0 : index
    %c0_152 = arith.constant 0 : index
    %c0_153 = arith.constant 0 : index
    %270 = vector.load %arg18[%c0_151, %c0_152, %c0_153] : memref<1x8x32xf32, #tpu.memory_space<vmem>>, vector<1x8x32xf32>
    %271 = vector.shape_cast %270 : vector<1x8x32xf32> to vector<8x32xf32>
    %272 = vector.shape_cast %269 : vector<8x32xf32> to vector<1x8x32xf32>
    tpu.vector_store %arg18[%c0_151, %c0_152, %c0_153], %272 {strides = array<i32>} : memref<1x8x32xf32, #tpu.memory_space<vmem>>, vector<1x8x32xf32>,
    return
  }
  func.func @transform_0(%arg0: i32) -> (i32, i32, i32) {
    %c0_i32 = arith.constant 0 : i32
    %c0_i32_0 = arith.constant 0 : i32
    %c0_i32_1 = arith.constant 0 : i32
    return %arg0, %c0_i32, %c0_i32_0 : i32, i32, i32
  }
  func.func @transform_1(%arg0: i32) -> (i32, i32) {
    %c0_i32 = arith.constant 0 : i32
    %c0_i32_0 = arith.constant 0 : i32
    %c0_i32_1 = arith.constant 0 : i32
    return %c0_i32, %c0_i32_0 : i32, i32
  }
  func.func @transform_2(%arg0: i32) -> (i32, i32) {
    %c0_i32 = arith.constant 0 : i32
    %c0_i32_0 = arith.constant 0 : i32
    %c0_i32_1 = arith.constant 0 : i32
    return %c0_i32, %c0_i32_0 : i32, i32
  }
  func.func @transform_3(%arg0: i32) -> (i32, i32, i32) {
    %c0_i32 = arith.constant 0 : i32
    %c0_i32_0 = arith.constant 0 : i32
    %c0_i32_1 = arith.constant 0 : i32
    %c0_i32_2 = arith.constant 0 : i32
    return %c0_i32, %c0_i32_0, %c0_i32_1 : i32, i32, i32
  }
  func.func @transform_4(%arg0: i32) -> (i32, i32, i32) {
    %c0_i32 = arith.constant 0 : i32
    %c0_i32_0 = arith.constant 0 : i32
    %c0_i32_1 = arith.constant 0 : i32
    %c0_i32_2 = arith.constant 0 : i32
    return %c0_i32, %c0_i32_0, %c0_i32_1 : i32, i32, i32
  }
  func.func @transform_5(%arg0: i32) -> (i32, i32, i32) {
    %c0_i32 = arith.constant 0 : i32
    %c0_i32_0 = arith.constant 0 : i32
    %c0_i32_1 = arith.constant 0 : i32
    %c0_i32_2 = arith.constant 0 : i32
    return %c0_i32, %c0_i32_0, %c0_i32_1 : i32, i32, i32
  }
  func.func @transform_6(%arg0: i32) -> (i32, i32, i32) {
    %c0_i32 = arith.constant 0 : i32
    %c0_i32_0 = arith.constant 0 : i32
    %c0_i32_1 = arith.constant 0 : i32
    %c0_i32_2 = arith.constant 0 : i32
    return %c0_i32, %c0_i32_0, %c0_i32_1 : i32, i32, i32
  }
  func.func @transform_7(%arg0: i32) -> (i32, i32, i32) {
    %c0_i32 = arith.constant 0 : i32
    %c0_i32_0 = arith.constant 0 : i32
    %c0_i32_1 = arith.constant 0 : i32
    %c0_i32_2 = arith.constant 0 : i32
    return %c0_i32, %c0_i32_0, %c0_i32_1 : i32, i32, i32
  }
  func.func @transform_8(%arg0: i32) -> (i32, i32, i32) {
    %c0_i32 = arith.constant 0 : i32
    %c0_i32_0 = arith.constant 0 : i32
    %c0_i32_1 = arith.constant 0 : i32
    %c0_i32_2 = arith.constant 0 : i32
    return %c0_i32, %c0_i32_0, %c0_i32_1 : i32, i32, i32
  }
  func.func @transform_9(%arg0: i32) -> (i32, i32, i32) {
    %c0_i32 = arith.constant 0 : i32
    %c0_i32_0 = arith.constant 0 : i32
    %c0_i32_1 = arith.constant 0 : i32
    %c0_i32_2 = arith.constant 0 : i32
    return %c0_i32, %c0_i32_0, %c0_i32_1 : i32, i32, i32
  }
  func.func @transform_10(%arg0: i32) -> (i32, i32) {
    %c0_i32 = arith.constant 0 : i32
    %c0_i32_0 = arith.constant 0 : i32
    %c0_i32_1 = arith.constant 0 : i32
    return %c0_i32, %c0_i32_0 : i32, i32
  }
  func.func @transform_11(%arg0: i32) -> (i32, i32) {
    %c0_i32 = arith.constant 0 : i32
    %c0_i32_0 = arith.constant 0 : i32
    %c0_i32_1 = arith.constant 0 : i32
    return %c0_i32, %c0_i32_0 : i32, i32
  }
  func.func @transform_12(%arg0: i32) -> (i32, i32) {
    %c0_i32 = arith.constant 0 : i32
    %c0_i32_0 = arith.constant 0 : i32
    %c0_i32_1 = arith.constant 0 : i32
    return %c0_i32, %c0_i32_0 : i32, i32
  }
  func.func @transform_13(%arg0: i32) -> (i32, i32) {
    %c0_i32 = arith.constant 0 : i32
    %c0_i32_0 = arith.constant 0 : i32
    %c0_i32_1 = arith.constant 0 : i32
    return %c0_i32, %c0_i32_0 : i32, i32
  }
  func.func @transform_14(%arg0: i32) -> (i32, i32) {
    %c0_i32 = arith.constant 0 : i32
    %c0_i32_0 = arith.constant 0 : i32
    %c0_i32_1 = arith.constant 0 : i32
    return %c0_i32, %c0_i32_0 : i32, i32
  }
  func.func @transform_15(%arg0: i32) -> (i32, i32) {
    %c0_i32 = arith.constant 0 : i32
    %c0_i32_0 = arith.constant 0 : i32
    %c0_i32_1 = arith.constant 0 : i32
    return %c0_i32, %c0_i32_0 : i32, i32
  }
  func.func @transform_16(%arg0: i32) -> (i32, i32) {
    %c0_i32 = arith.constant 0 : i32
    %c0_i32_0 = arith.constant 0 : i32
    %c0_i32_1 = arith.constant 0 : i32
    return %c0_i32, %c0_i32_0 : i32, i32
  }
  func.func @transform_17(%arg0: i32) -> (i32, i32, i32) {
    %c0_i32 = arith.constant 0 : i32
    %c0_i32_0 = arith.constant 0 : i32
    %c0_i32_1 = arith.constant 0 : i32
    return %arg0, %c0_i32, %c0_i32_0 : i32, i32, i32
  }
}

</mosaic_0001>

<bundles_post_ra>
// kernel: tpu_custom_call.1
= control target key start
LH: loop header
LB: loop body
LE: loop exit
PB: predicated region body
PF: predicated region fallthrough
CT: control target
= control target key end

     0   :  { %s2425_s0 = inlined_call_operand.vmem [shape: f32[2,8,32], index: 0, kind: input, shape index: {}]   ;;  %s2426_s1 = inlined_call_operand.vmem [shape: f32[1,32], index: 1, kind: input, shape index: {}]   ;;  %s2427_s2 = inlined_call_operand.vmem [shape: f32[1,32], index: 2, kind: input, shape index: {}]   ;;  %s2428_s3 = inlined_call_operand.vmem [shape: bf16[4,32,8], index: 3, kind: input, shape index: {}]   ;;  %s2429_s4 = inlined_call_operand.vmem [shape: bf16[4,32,8], index: 4, kind: input, shape index: {}]   ;;  %s2430_s5 = inlined_call_operand.vmem [shape: bf16[4,32,8], index: 5, kind: input, shape index: {}]   ;;  %s2431_s6 = inlined_call_operand.vmem [shape: f32[4,1,8], index: 6, kind: input, shape index: {}]   ;;  %s2432_s7 = inlined_call_operand.vmem [shape: f32[4,1,8], index: 7, kind: input, shape index: {}]   ;;  %s2433_s8 = inlined_call_operand.vmem [shape: f32[4,1,8], index: 8, kind: input, shape index: {}]   ;;  %s2434_s9 = inlined_call_operand.vmem [shape: bf16[4,8,32], index: 9, kind: input, shape index: {}]   ;;  %s2435_s10 = inlined_call_operand.vmem [shape: f32[1,32], index: 10, kind: input, shape index: {}]   ;;  %s2436_s11 = inlined_call_operand.vmem [shape: f32[1,32], index: 11, kind: input, shape index: {}]   ;;  %s2437_s12 = inlined_call_operand.vmem [shape: f32[1,32], index: 12, kind: input, shape index: {}]   ;;  %s2438_s13 = inlined_call_operand.vmem [shape: bf16[32,128], index: 13, kind: input, shape index: {}]   ;;  %s2439_s14 = inlined_call_operand.vmem [shape: f32[1,128], index: 14, kind: input, shape index: {}]   ;;  %s2440_s15 = inlined_call_operand.vmem [shape: bf16[128,32], index: 15, kind: input, shape index: {}]   ;;  %s2441_s16 = inlined_call_operand.vmem [shape: f32[1,32], index: 16, kind: input, shape index: {}]   ;;  %s2442_s17 = inlined_call_operand.hbm [shape: f32[2,8,32], index: 17, kind: output, shape index: {}]  }
   0x1   :  { %2447 = sst [smem:[#allocation9_spill]] %s2425_s0 }
   0x2   :  { %2448 = sst [smem:[#allocation10_spill]] %s2426_s1 }
   0x3   :  { %2449 = sst [smem:[#allocation11_spill]] %s2427_s2 }
   0x4   :  { %2450 = sst [smem:[#allocation12_spill]] %s2428_s3 }
   0x5   :  { %22 = vsyncpa [#allocation3], 0 }
   0x6   :  { %24 = vsyncpa [#allocation3 + $0x1], 0  ;;  %s2065_s24 = smov 0   ;;  %s2067_s25 = smov 0  }
   0x7   :  { %s2069_s26 = smov 0   ;;  %s2071_s27 = smov 0  }
   0x8 LB: > { %2451 = sst [smem:[#allocation5_spill]] %s1968_s26  ;;  %s2086_s28 = sadd.s32 4294967295, %s1972_s27   ;;  %s1972_s27 = sphi %s2071_s27, %s2462_s27   ;;  %s1968_s26 = sphi %s2069_s26, %s2464_s26   ;;  %s1964_s25 = sphi %s2067_s25, %s2466_s25   ;;  %s1960_s24 = sphi %s2065_s24, %s2465_s24  }
   0x9   : > { %s1571_s29 = sadd.s32 4294967294, %s1972_s27   ;;  %s2090_s0 = sadd.s32 1, %s1972_s27  }
   0xa   : > { %2452 = sst [smem:[#allocation6_spill]] %s2090_s0  ;;  %s399_s30 = sadd.s32 1, %s1968_s26 }
   0xb   : > { %s396_s18 = ssub.s32 %s1972_s27, %s2090_s0  ;;  %p409_p0 = scmp.ne.s32.totalorder %s1968_s26, %s1964_s25 }
   0xc   : > { %p397_p1 = scmp.eq.s32.totalorder %s396_s18, 0  ;;  %p410_p2 = scmp.eq.s32.totalorder %s2086_s28, 1 }
   0xd   : > { %p415_p3 = scmp.ne.s32.totalorder %s1964_s25, %s1960_s24  ;;  %p416_p4 = scmp.eq.s32.totalorder %s1571_s29, 1 }
   0xe   : > { %s2101_s19 = scalar_select %p397_p1, %s1968_s26, %s399_s30  }
   0xf   : > { %p2103_p5 = por %p410_p2, %p409_p0  ;;  %p2107_p6 = por %p416_p4, %p415_p3 }
  0x10   : > { %2453 = sst [smem:[#allocation7_spill]] %s2101_s19  ;;  %p1574_p7 = scmp.ge.s32.totalorder %s1972_s27, 1 }
  0x11   : > { %s2455_s20 = scalar_select %p2107_p6, 1, 0 }
  0x12   : > { %p489_p8 = scmp.lt.s32.totalorder %s1972_s27, 3 }
  0x13   : > { %2456 = sst [smem:[#allocation8_spill]] %s2455_s20 }
  0x14   : > { %p490_p9 = pnand %p1574_p7, %p489_p8 }
  0x15   : > { %p540_p10 = scmp.lt.s32.totalorder (!%p490_p9), %s2086_s28, 1  ;;  %s2457_s30 = sld [smem:[#allocation9_spill]] (!%p490_p9) }
  0x16   : > { %493 = sbr.rel (%p490_p9) target bundleno = 3142 (0xc46), region = 88  ;;  %s2458_s3 = sld [smem:[#allocation12_spill]] (!%p490_p9) }
  0x17   : > { %s2460_s2 = sld [smem:[#allocation11_spill]] (!%p490_p9)  ;;  %s537_s29 = sand.u32 (!%p490_p9), 1, %s1964_s25  }
  0x18   : > { %s1575_s26 = sshll.u32 (!%p490_p9), %s537_s29, 3  ;;  %s1788_s19 = sshll.u32 (!%p490_p9), %s2086_s28, 3 }
  0x1b   : > { %s541_s21 = scalar_select %p540_p10, %s2086_s28, 1  ;;  %vm553_vm0 = vcmask 261120   ;;  %v1974_v2 = vmov 32.0   ;;  %v1794_v15 = vld [vmem:[%s2429_s4 + $0x8] sm:$0xff]  ;;  %v1793_v18 = vld [vmem:[%s2429_s4] sm:$0xff]  ;;  %v1800_v37 = vld [vmem:[%s2429_s4 + $0x18] sm:$0xff] }
  0x1c   : > { %1884 = vrcp.f32 %v1974_v2  ;;  %v1792_v14 = vld [vmem:[%s2458_s3 + $0x8] sm:$0xff]  ;;  %v1798_v16 = vld [vmem:[%s2458_s3 + $0x18] sm:$0xff]  ;;  %654 = vmatpush.bf16.msra.mxu2 %v1794_v15  ;;  %v1791_v17 = vld [vmem:[%s2458_s3] sm:$0xff]  ;;  %vm696_vm5 = vcmask 64512   ;;  %vm733_vm6 = vcmask 1043456   ;;  %s1497_s28 = scalar_lea.sflag [#allocation3], %s537_s29 }
  0x1d   : > { %s1576_s22 = sshll.u32 %s541_s21, 3  ;;  %621 = vmatpush.bf16.msra.mxu0 %v1792_v14  ;;  %780 = vmatpush.bf16.msra.mxu1 %v1798_v16  ;;  %v1797_v19 = vld [vmem:[%s2458_s3 + $0x10] sm:$0xff]  ;;  %v1796_v21 = vld [vmem:[%s2430_s5 + $0x8] sm:$0xff]  ;;  %v1795_v23 = vld [vmem:[%s2430_s5] sm:$0xff]  ;;  %s1507_s21 = scalar_lea.hbm %s2442_s17, %s1788_s19 }
  0x1e   : > { %s543_s18 = scalar_lea.vmem %s2457_s30, %s1576_s22  ;;  %s2459_s30 = sld [smem:[#allocation10_spill]]  ;;  %v1866_v33 = vld [vmem:[%s2460_s2] ss:$0 sm:$0xff]  ;;  %v1799_v39 = vld [vmem:[%s2429_s4 + $0x10] sm:$0xff]  ;;  %v1802_v49 = vld [vmem:[%s2430_s5 + $0x18] sm:$0xff] }
  0x1f   : > { %v2118_v0 = vld [vmem:[%s543_s18] sm:$0xff]  ;;  %v1801_v52 = vld [vmem:[%s2430_s5 + $0x10] sm:$0xff]  ;;  %s539_s22 = scalar_lea.vmem [#allocation2], %s1575_s26  ;;  %s1511_s2 = sshll.u32 %s1507_s21, 4  ;;  %s1512_s2 = int_to_ptr.hbm [resolvable:$true] %s1511_s2 }
  0x20   : > { %v554_v1 = vsel %vm553_vm0, %v2118_v0, 0.0  ;;  %655 = vmatpush.bf16.msra.mxu2 %v1793_v18  ;;  %v1869_v42 = vld [vmem:[%s2432_s7] ss:$0 sm:$0xff]  ;;  %v1871_v61 = vld [vmem:[%s2432_s7 + $0x1] ss:$0 sm:$0xff]  ;;  %s1509_s23 = sshll.u32 %s539_s22, 4  ;;  %s1510_s23 = int_to_ptr.vmem [resolvable:$true] %s1509_s23 }
  0x21   : > { %555 = vadd.xlane.f32.xlu0 %v554_v1  ;;  %622 = vmatpush.bf16.msra.mxu0 %v1791_v17  ;;  %v1867_v46 = vld [vmem:[%s2431_s6] ss:$0 sm:$0xff]  ;;  %s1930_s26 = scalar_lea.hbm %s2442_s17, 16 }
  0x22   : > { %v1885_v3 = vpop.eup %1884  ;;  %781 = vmatpush.bf16.msra.mxu1 %v1797_v19  ;;  %v1870_v55 = vld [vmem:[%s2433_s8] ss:$0 sm:$0xff] }
  0x23   : > { %v558_v4 = vmul.f32 32.0, %v1885_v3  ;;  %vm562_vm1 = vweird.f32 %v1885_v3 }
  0x24   : > { %687 = vmatpush.bf16.msrb.mxu2 %v1796_v21  ;;  %v1865_v31 = vld [vmem:[%s2459_s30] ss:$0 sm:$0xff] }
  0x25   : > { %v559_v5 = vsub.f32 1.0, %v558_v4  ;;  %v546_v4 = vlaneseq }
  0x27   : > { %v560_v6 = vmul.f32 %v1885_v3, %v559_v5  ;;  %v2202_v5 = vshrl.u32 %v546_v4, 7 }
  0x28   : > { %688 = vmatpush.bf16.msrb.mxu2 %v1795_v23 }
  0x29   : > { %v561_v7 = vadd.f32 %v1885_v3, %v560_v6  ;;  %v2204_v6 = vand.u32 127, %v546_v4 }
  0x2b   : > { %v2122_v8 = vsel %vm562_vm1, %v1885_v3, %v561_v7  ;;  %vm550_vm7 = vcmp.gt.s32.totalorder %v2204_v6, %v2202_v5 }
  0x94   : > { %v556_v9 = vpop.xlane.xlu0 %555 }
  0x95   : > { %v564_v10 = vmul.f32 %v2122_v8, %v556_v9 }
  0x97   : > { %v565_v11 = vsub.f32 %v2118_v0, %v564_v10 }
  0x99   : > { %v566_v12 = vmul.f32 %v565_v11, %v565_v11 }
  0x9b   : > { %v567_v13 = vsel %vm553_vm0, %v566_v12, 0.0  ;;  %v1872_v12 = vld [vmem:[%s2433_s8 + $0x1] ss:$0 sm:$0xff] }
  0x9c   : > { %568 = vadd.xlane.f32.xlu0 %v567_v13 }
 0x10f   : > { %v569_v20 = vpop.xlane.xlu0 %568 }
 0x110   : > { %v570_v22 = vmul.f32 %v569_v20, %v2122_v8 }
 0x112   : > { %v571_v24 = vadd.f32 1e-05, %v570_v22 }
 0x114   : > { %1886 = vrsqrt.f32 %v571_v24  ;;  %vm578_vm3 = vweird.f32 %v571_v24 }
 0x11a   : > { %v1887_v25 = vpop.eup %1886 }
 0x11b   : > { %v573_v26 = vmul.f32 %v1887_v25, %v571_v24  ;;  %vm579_vm2 = vweird.f32 %v1887_v25 }
 0x11c   : > { %vm580_vm4 = vmor %vm578_vm3, %vm579_vm2 }
 0x11d   : > { %v574_v27 = vmul.f32 %v1887_v25, %v573_v26  ;;  %v1804_v26 = vld [vmem:[%s2458_s3 + $0x28] sm:$0xff] }
 0x11f   : > { %v575_v28 = vmul.f32 0.5, %v574_v27 }
 0x121   : > { %v576_v29 = vsub.f32 1.5, %v575_v28  ;;  %v1803_v28 = vld [vmem:[%s2458_s3 + $0x20] sm:$0xff] }
 0x123   : > { %v577_v30 = vmul.f32 %v1887_v25, %v576_v29  ;;  %v1868_v29 = vld [vmem:[%s2431_s6 + $0x1] ss:$0 sm:$0xff] }
 0x125   : > { %v581_v32 = vsel %vm580_vm4, %v1887_v25, %v577_v30 }
 0x126   : > { %v582_v34 = vmul.f32 %v581_v32, %v565_v11  ;;  %v751_v32 = vld [vmem:[%s2434_s9] sm:$0xf] }
 0x128   : > { %v586_v35 = vmul.f32 %v1865_v31, %v582_v34 }
 0x12a   : > { %v590_v36 = vadd.f32 %v1866_v33, %v586_v35  ;;  %v937_v33 = vsel %vm733_vm6, %v751_v32, 0  ;;  %v1877_v32 = vld [vmem:[%s2432_s7 + $0x3] ss:$0 sm:$0xff] }
 0x12c   : > { %v2161_v38 = vpack.c.bf16 %v590_v36, %v590_v36 }
 0x12e   : > { %1585 = vmatmul.msk.bf16.vlgmr.msra.gmra.mxu0 %vm553_vm0, %v2161_v38  ;;  %1594 = vmatmul.msk.bf16.vlgmr.msra.gmra.mxu2 %vm553_vm0, %v2161_v38 }
 0x12f   : > { %1619 = vmatmul.msk.bf16.vlgmr.msra.gmra.mxu1 %vm553_vm0, %v2161_v38  ;;  %815 = vmatpush.bf16.msra.mxu2 %v1800_v37 }
 0x133   : > { %816 = vmatpush.bf16.msra.mxu2 %v1799_v39 }
 0x13e   : > { %1603 = vmatmul.msk.bf16.vlgmr.msrb.gmra.mxu2 %vm553_vm0, %v2161_v38 }
 0x14e   : > { %1633 = vmatmul.msk.bf16.vlgmr.msra.gmra.mxu2 %vm553_vm0, %v2161_v38 }
 0x1ab   : > { %v624_v40 = vpop.f32.mrf.mxu0 }
 0x1ac   : > { %v2176_v41 = vpop.f32.mrf.mxu1  ;;  %v625_v51 = vadd.f32 %v1867_v46, %v624_v40 }
 0x1ad   : > { %v784_v30 = vadd.f32 %v1868_v29, %v2176_v41 }
 0x1ae   : > { %v694_v54 = vpack.c.bf16 %v625_v51, %v625_v51  ;;  %v1806_v51 = vld [vmem:[%s2429_s4 + $0x28] sm:$0xff] }
 0x1af   : > { %v857_v31 = vpack.c.bf16 %v784_v30, %v784_v30 }
 0x1b1   : > { %v657_v43 = vpop.f32.mrf.mxu2 }
 0x1b2   : > { %v658_v44 = vadd.f32 %v1869_v42, %v657_v43 }
 0x1b3   : > { %v626_v45 = vpop.f32.mrf.mxu0 }
 0x1b4   : > { %v695_v47 = vpack.c.bf16 %v658_v44, %v658_v44  ;;  %v785_v48 = vpop.f32.mrf.mxu1 }
 0x1b6   : > { %v701_v50 = vsel %vm696_vm5, %v695_v47, 0 }
 0x1b7   : > { %710 = vmatpush.bf16.xpose.msra.mxu3 %v701_v50 }
 0x1b9   : > { %v659_v53 = vpop.f32.mrf.mxu2 }
 0x1be   : > { %1604 = vmatmul.msk.bf16.vlgmr.msra.gmra.mxu3 %vm696_vm5, %v694_v54 }
 0x1bf   : > { %850 = vmatpush.bf16.msrb.mxu3 %v1802_v49 }
 0x1c1   : > { %v690_v56 = vpop.f32.mrf.mxu2 }
 0x1c2   : > { %v691_v57 = vadd.f32 %v1870_v55, %v690_v56 }
 0x1c3   : > { %851 = vmatpush.bf16.msrb.mxu3 %v1801_v52  ;;  %v1805_v52 = vld [vmem:[%s2429_s4 + $0x20] sm:$0xff] }
 0x1c4   : > { %v729_v58 = vpack.c.bf16 %v691_v57, %v691_v57  ;;  %v1650_v57 = vld [vmem:[%s2434_s9 + $0x4] sm:$0xf] }
 0x1c6   : > { %v735_v59 = vsel %vm733_vm6, %v729_v58, 0  ;;  %v918_v58 = vsel %vm733_vm6, %v1650_v57, 0  ;;  %v1878_v57 = vld [vmem:[%s2433_s8 + $0x3] ss:$0 sm:$0xff] }
 0x1c7   : > { %744 = vmatpush.bf16.msrb.mxu0 %v735_v59  ;;  %946 = vmatpush.bf16.msra.mxu3 %v937_v33  ;;  %v1808_v59 = vld [vmem:[%s2430_s5 + $0x28] sm:$0xff] }
 0x1c8   : > { %927 = vmatpush.bf16.msrb.mxu2 %v918_v58 }
 0x1c9   : > { %v692_v60 = vpop.f32.mrf.mxu2 }
 0x1ca   : > { %v1807_v60 = vld [vmem:[%s2430_s5 + $0x20] sm:$0xff] }
 0x1cc   : > { %1050 = vmatpush.bf16.msra.mxu2 %v1808_v59 }
 0x1ce   : > { %1647 = vmatmul.msk.bf16.vlgmr.msrb.gmra.mxu3 %vm553_vm0, %v2161_v38 }
 0x1d0   : > { %1051 = vmatpush.bf16.msra.mxu2 %v1807_v60 }
 0x1d1   : > { %v818_v62 = vpop.f32.mrf.mxu2 }
 0x1d2   : > { %v819_v63 = vadd.f32 %v1871_v61, %v818_v62  ;;  %v1810_v62 = vld [vmem:[%s2458_s3 + $0x38] sm:$0xff] }
 0x1d4   : > { %v858_v1 = vpack.c.bf16 %v819_v63, %v819_v63 }
 0x1d6   : > { %v863_v2 = vsel %vm696_vm5, %v858_v1, 0  ;;  %v1809_v1 = vld [vmem:[%s2458_s3 + $0x30] sm:$0xff]  ;;  %s1924_s3 = sshra.s32 %s1512_s2, 4  ;;  %s1925_s3 = int_to_ptr.hbm [resolvable:$true] %s1924_s3 }
 0x1d7   : > { %872 = vmatpush.bf16.xpose.msra.mxu0 %v863_v2  ;;  %s1926_s0 = scalar_lea.hbm %s1925_s3, 8  ;;  %p1931_p0 = scmp.lt.s32.totalorder %s1925_s3, %s2442_s17 }
 0x1d8   : > { %p1927_p11 = scmp.ne.s32.totalorder %s1925_s3, %s1926_s0  ;;  %p1932_p1 = scmp.lt.s32.totalorder %s1930_s26, %s1926_s0 }
 0x1d9   : > { %v820_v3 = vpop.f32.mrf.mxu2 }
 0x1da   : > { %v1874_v3 = vld [vmem:[%s2432_s7 + $0x2] ss:$0 sm:$0xff]  ;;  %p1928_p12 = pnand %p1927_p11, %p2103_p5  ;;  %p1933_p2 = por %p1932_p1, %p1931_p0 }
 0x1dc   : > { %p1929_p13 = pneg %p1928_p12 }
 0x1de   : > { %p1934_p3 = pnand %p1933_p2, %p1929_p13 }
 0x241   : > { %v712_v7 = vpop.f32.mrf.mxu3 }
 0x242   : > { %v716_v9 = vsel %vm550_vm7, -inf, %v712_v7 }
 0x243   : > { %v717_v10 = vsel %vm696_vm5, %v716_v9, -inf }
 0x244   : > { %718 = vmax.xlane.f32.xlu1 %v717_v10 }
 0x249   : > { %v714_v11 = vpop.f32.mrf.mxu3 }
 0x24a   : > { %v1812_v11 = vld [vmem:[%s2429_s4 + $0x38] sm:$0xff] }
 0x251   : > { %v853_v13 = vpop.f32.mrf.mxu3 }
 0x252   : > { %v854_v14 = vadd.f32 %v1872_v12, %v853_v13 }
 0x254   : > { %v891_v15 = vpack.c.bf16 %v854_v14, %v854_v14  ;;  %v1811_v14 = vld [vmem:[%s2429_s4 + $0x30] sm:$0xff] }
 0x256   : > { %v896_v16 = vsel %vm733_vm6, %v891_v15, 0 }
 0x257   : > { %905 = vmatpush.bf16.msrb.mxu1 %v896_v16 }
 0x259   : > { %v855_v17 = vpop.f32.mrf.mxu3 }
 0x25b   : > { %1015 = vmatpush.bf16.msra.mxu1 %v1806_v51 }
 0x25f   : > { %1016 = vmatpush.bf16.msra.mxu1 %v1805_v52 }
 0x2b7   : > { %v719_v18 = vpop.xlane.xlu1 %718 }
 0x2b8   : > { %v720_v19 = vsub.f32 %v716_v9, %v719_v18  ;;  %v1873_v9 = vld [vmem:[%s2431_s6 + $0x2] ss:$0 sm:$0xff] }
 0x2ba   : > { %v721_v20 = vmul.f32 1.442695, %v720_v19  ;;  %v1875_v19 = vld [vmem:[%s2433_s8 + $0x2] ss:$0 sm:$0xff] }
 0x2bc   : > { %1888 = vpow2.f32 %v721_v20  ;;  %v1697_v20 = vld [vmem:[%s2434_s9 + $0x8] sm:$0xf] }
 0x2c2   : > { %v1889_v21 = vpop.eup %1888 }
 0x2c3   : > { %v723_v22 = vsel %vm696_vm5, %v1889_v21, 0.0 }
 0x2c4   : > { %724 = vadd.xlane.f32.xlu1 %v723_v22 }
 0x337   : > { %v725_v23 = vpop.xlane.xlu1 %724 }
 0x338   : > { %1890 = vrcp.f32 %v725_v23 }
 0x33e   : > { %v1891_v24 = vpop.eup %1890 }
 0x33f   : > { %v727_v25 = vmul.f32 %v1891_v24, %v1889_v21  ;;  %v1118_v21 = vsel %vm733_vm6, %v1697_v20, 0 }
 0x341   : > { %v728_v27 = vpack.c.bf16 %v727_v25, %v727_v25 }
 0x343   : > { %1605 = vmatmul.msk.bf16.vlgmr.msrb.gmra.mxu0 %vm696_vm5, %v728_v27 }
 0x344   : > { %980 = vmatpush.bf16.msrb.mxu0 %v1804_v26 }
 0x348   : > { %981 = vmatpush.bf16.msrb.mxu0 %v1803_v28 }
 0x353   : > { %1648 = vmatmul.msk.bf16.vlgmr.msra.gmra.mxu0 %vm696_vm5, %v857_v31 }
 0x363   : > { %1666 = vmatmul.msk.bf16.vlgmr.msrb.gmra.mxu0 %vm553_vm0, %v2161_v38 }
 0x3c0   : > { %v746_v34 = vpop.f32.mrf.mxu0 }
 0x3c1   : > { %v750_v35 = vpack.c.bf16 %v746_v34, %v746_v34 }
 0x3c3   : > { %1652 = vmatmul.msk.bf16.vlgmr.msra.gmra.mxu3 %vm696_vm5, %v750_v35 }
 0x3c8   : > { %v748_v36 = vpop.f32.mrf.mxu0 }
 0x3d0   : > { %v874_v37 = vpop.f32.mrf.mxu0 }
 0x3d1   : > { %v878_v39 = vsel %vm550_vm7, -inf, %v874_v37 }
 0x3d2   : > { %v879_v40 = vsel %vm696_vm5, %v878_v39, -inf }
 0x3d3   : > { %880 = vmax.xlane.f32.xlu2 %v879_v40 }
 0x3d8   : > { %v876_v41 = vpop.f32.mrf.mxu0 }
 0x3e0   : > { %v983_v42 = vpop.f32.mrf.mxu0 }
 0x3e1   : > { %v984_v13 = vadd.f32 %v1873_v9, %v983_v42 }
 0x3e3   : > { %v1057_v16 = vpack.c.bf16 %v984_v13, %v984_v13 }
 0x3e8   : > { %v985_v43 = vpop.f32.mrf.mxu0 }
 0x446   : > { %v881_v44 = vpop.xlane.xlu2 %880  ;;  %v2240_v45 = vpop.f32.mrf.mxu3 }
 0x447   : > { %v882_v46 = vsub.f32 %v878_v39, %v881_v44 }
 0x449   : > { %v883_v47 = vmul.f32 1.442695, %v882_v46  ;;  %v1814_v46 = vld [vmem:[%s2430_s5 + $0x38] sm:$0xff] }
 0x44b   : > { %1892 = vpow2.f32 %v883_v47  ;;  %v1813_v47 = vld [vmem:[%s2430_s5 + $0x30] sm:$0xff] }
 0x44e   : > { %v950_v48 = vpop.f32.mrf.mxu3 }
 0x451   : > { %v1893_v49 = vpop.eup %1892 }
 0x452   : > { %v885_v50 = vsel %vm696_vm5, %v1893_v49, 0.0 }
 0x453   : > { %886 = vadd.xlane.f32.xlu2 %v885_v50 }
 0x4c6   : > { %v887_v53 = vpop.xlane.xlu2 %886 }
 0x4c7   : > { %1894 = vrcp.f32 %v887_v53 }
 0x4cd   : > { %v1895_v54 = vpop.eup %1894 }
 0x4ce   : > { %v889_v55 = vmul.f32 %v1895_v54, %v1893_v49 }
 0x4d0   : > { %v890_v56 = vpack.c.bf16 %v889_v55, %v889_v55  ;;  %v1876_v55 = vld [vmem:[%s2431_s6 + $0x3] ss:$0 sm:$0xff] }
 0x4d2   : > { %1649 = vmatmul.msk.bf16.vlgmr.msrb.gmra.mxu1 %vm696_vm5, %v890_v56 }
 0x4d3   : > { %1127 = vmatpush.bf16.msrb.mxu1 %v1118_v21 }
 0x4e2   : > { %1680 = vmatmul.msk.bf16.vlgmr.msra.gmra.mxu1 %vm553_vm0, %v2161_v38 }
 0x54f   : > { %v907_v61 = vpop.f32.mrf.mxu1 }
 0x550   : > { %v911_v63 = vpack.c.bf16 %v907_v61, %v907_v61 }
 0x552   : > { %1651 = vmatmul.msk.bf16.vlgmr.msrb.gmra.mxu2 %vm696_vm5, %v911_v63 }
 0x553   : > { %1162 = vmatpush.bf16.msrb.mxu2 %v1810_v62 }
 0x557   : > { %v909_v2 = vpop.f32.mrf.mxu1  ;;  %1163 = vmatpush.bf16.msrb.mxu2 %v1809_v1 }
 0x55f   : > { %v1018_v4 = vpop.f32.mrf.mxu1 }
 0x560   : > { %v1019_v7 = vadd.f32 %v1874_v3, %v1018_v4 }
 0x562   : > { %v1058_v10 = vpack.c.bf16 %v1019_v7, %v1019_v7  ;;  %1694 = vmatmul.msk.bf16.vlgmr.msra.gmra.mxu2 %vm553_vm0, %v2161_v38 }
 0x564   : > { %v1063_v12 = vsel %vm696_vm5, %v1058_v10, 0 }
 0x565   : > { %1072 = vmatpush.bf16.xpose.msrb.mxu3 %v1063_v12 }
 0x567   : > { %v1020_v15 = vpop.f32.mrf.mxu1 }
 0x56c   : > { %1695 = vmatmul.msk.bf16.vlgmr.msrb.gmra.mxu3 %vm696_vm5, %v1057_v16 }
 0x56d   : > { %1197 = vmatpush.bf16.msra.mxu3 %v1812_v11 }
 0x571   : > { %1198 = vmatpush.bf16.msra.mxu3 %v1811_v14 }
 0x572   : > { %1712 = vmatmul.msk.bf16.vlgmr.msrb.gmra.mxu2 %vm553_vm0, %v2161_v38 }
 0x57c   : > { %1726 = vmatmul.msk.bf16.vlgmr.msra.gmra.mxu3 %vm553_vm0, %v2161_v38 }
 0x5d5   : > { %v929_v17 = vpop.f32.mrf.mxu2 }
 0x5d6   : > { %v949_v63 = vadd.f32 %v2240_v45, %v929_v17  ;;  %v1743_v45 = vld [vmem:[%s2434_s9 + $0xc] sm:$0xf] }
 0x5d7   : > { %v1300_v16 = vsel %vm733_vm6, %v1743_v45, 0 }
 0x5d8   : > { %1309 = vmatpush.bf16.msrb.mxu3 %v1300_v16 }
 0x5dd   : > { %v931_v18 = vpop.f32.mrf.mxu2 }
 0x5e5   : > { %v1053_v22 = vpop.f32.mrf.mxu2 }
 0x5e6   : > { %v1054_v23 = vadd.f32 %v1875_v19, %v1053_v22 }
 0x5e8   : > { %v1091_v24 = vpack.c.bf16 %v1054_v23, %v1054_v23 }
 0x5ea   : > { %v1096_v25 = vsel %vm733_vm6, %v1091_v24, 0  ;;  %v1879_v24 = vld [vmem:[%s2435_s10] ss:$0 sm:$0xff] }
 0x5eb   : > { %1105 = vmatpush.bf16.msra.mxu0 %v1096_v25 }
 0x5ed   : > { %v1055_v26 = vpop.f32.mrf.mxu2 }
 0x5ef   : > { %v1074_v27 = vpop.f32.mrf.mxu3  ;;  %1232 = vmatpush.bf16.msrb.mxu0 %v1814_v46  ;;  %v1880_v46 = vld [vmem:[%s2436_s11] ss:$0 sm:$0xff] }
 0x5f0   : > { %v1078_v28 = vsel %vm550_vm7, -inf, %v1074_v27 }
 0x5f1   : > { %v1079_v29 = vsel %vm696_vm5, %v1078_v28, -inf }
 0x5f2   : > { %1080 = vmax.xlane.f32.xlu0 %v1079_v29 }
 0x5f3   : > { %1233 = vmatpush.bf16.msrb.mxu0 %v1813_v47 }
 0x5f5   : > { %v1165_v30 = vpop.f32.mrf.mxu2 }
 0x5f6   : > { %v1166_v56 = vadd.f32 %v1876_v55, %v1165_v30  ;;  %v1821_v55 = vld [vmem:[%s2440_s15 + $0x20] sm:$0xff] }
 0x5f7   : > { %v1076_v31 = vpop.f32.mrf.mxu3 }
 0x5f8   : > { %v1239_v59 = vpack.c.bf16 %v1166_v56, %v1166_v56  ;;  %v1820_v56 = vld [vmem:[%s2440_s15 + $0x18] sm:$0xff] }
 0x5fd   : > { %v1167_v33 = vpop.f32.mrf.mxu2 }
 0x5ff   : > { %v1200_v34 = vpop.f32.mrf.mxu3 }
 0x600   : > { %v1201_v35 = vadd.f32 %v1877_v32, %v1200_v34  ;;  %v1815_v34 = vld [vmem:[%s2438_s13] sm:$0xff] }
 0x602   : > { %v1240_v36 = vpack.c.bf16 %v1201_v35, %v1201_v35 }
 0x604   : > { %v1245_v37 = vsel %vm696_vm5, %v1240_v36, 0 }
 0x605   : > { %1254 = vmatpush.bf16.xpose.msra.mxu1 %v1245_v37 }
 0x607   : > { %v1202_v39 = vpop.f32.mrf.mxu3 }
 0x665   : > { %v1081_v40 = vpop.xlane.xlu0 %1080 }
 0x666   : > { %v1082_v41 = vsub.f32 %v1078_v28, %v1081_v40 }
 0x668   : > { %v1083_v42 = vmul.f32 1.442695, %v1082_v41 }
 0x66a   : > { %1896 = vpow2.f32 %v1083_v42 }
 0x670   : > { %v1897_v43 = vpop.eup %1896 }
 0x671   : > { %v1085_v44 = vsel %vm696_vm5, %v1897_v43, 0.0 }
 0x672   : > { %1086 = vadd.xlane.f32.xlu1 %v1085_v44 }
 0x6e5   : > { %v1087_v48 = vpop.xlane.xlu1 %1086 }
 0x6e6   : > { %1898 = vrcp.f32 %v1087_v48 }
 0x6ec   : > { %v1899_v49 = vpop.eup %1898 }
 0x6ed   : > { %v1089_v50 = vmul.f32 %v1899_v49, %v1897_v43 }
 0x6ef   : > { %v1090_v51 = vpack.c.bf16 %v1089_v50, %v1089_v50 }
 0x6f1   : > { %1696 = vmatmul.msk.bf16.vlgmr.msra.gmra.mxu0 %vm696_vm5, %v1090_v51 }
 0x701   : > { %1740 = vmatmul.msk.bf16.vlgmr.msrb.gmra.mxu0 %vm553_vm0, %v2161_v38 }
 0x76e   : > { %v1107_v52 = vpop.f32.mrf.mxu0 }
 0x76f   : > { %v1111_v53 = vpack.c.bf16 %v1107_v52, %v1107_v52  ;;  %v1824_v52 = vld [vmem:[%s2440_s15 + $0x38] sm:$0xff] }
 0x771   : > { %1698 = vmatmul.msk.bf16.vlgmr.msrb.gmra.mxu1 %vm696_vm5, %v1111_v53  ;;  %v1823_v53 = vld [vmem:[%s2440_s15 + $0x30] sm:$0xff] }
 0x772   : > { %1481 = vmatpush.bf16.msrb.mxu1 %v1824_v52 }
 0x776   : > { %v1109_v54 = vpop.f32.mrf.mxu0  ;;  %1482 = vmatpush.bf16.msrb.mxu1 %v1823_v53 }
 0x777   : > { %v1822_v54 = vld [vmem:[%s2440_s15 + $0x28] sm:$0xff] }
 0x77a   : > { %1483 = vmatpush.bf16.msrb.mxu1 %v1822_v54 }
 0x77e   : > { %v1235_v58 = vpop.f32.mrf.mxu0  ;;  %1484 = vmatpush.bf16.msrb.mxu1 %v1821_v55 }
 0x77f   : > { %v1236_v60 = vadd.f32 %v1878_v57, %v1235_v58  ;;  %v1819_v57 = vld [vmem:[%s2440_s15 + $0x10] sm:$0xff]  ;;  %v1882_v58 = vld [vmem:[%s2439_s14] ss:$0 sm:$0xff] }
 0x781   : > { %v1273_v61 = vpack.c.bf16 %v1236_v60, %v1236_v60  ;;  %1741 = vmatmul.msk.bf16.vlgmr.msra.gmra.mxu1 %vm696_vm5, %v1239_v59  ;;  %v1818_v59 = vld [vmem:[%s2440_s15 + $0x8] sm:$0xff] }
 0x782   : > { %1485 = vmatpush.bf16.msrb.mxu1 %v1820_v56 }
 0x783   : > { %v1278_v38 = vsel %vm733_vm6, %v1273_v61, 0 }
 0x784   : > { %1287 = vmatpush.bf16.msra.mxu2 %v1278_v38  ;;  %v1817_v38 = vld [vmem:[%s2440_s15] sm:$0xff] }
 0x786   : > { %v1237_v62 = vpop.f32.mrf.mxu0  ;;  %1486 = vmatpush.bf16.msrb.mxu1 %v1819_v57 }
 0x78a   : > { %1487 = vmatpush.bf16.msrb.mxu1 %v1818_v59 }
 0x78e   : > { %1488 = vmatpush.bf16.msrb.mxu1 %v1817_v38 }
 0x7ee   : > { %v1129_v1 = vpop.f32.mrf.mxu1 }
 0x7ef   : > { %v1133_v2 = vadd.f32 %v1129_v1, %v949_v63 }
 0x7f6   : > { %v1131_v3 = vpop.f32.mrf.mxu1 }
 0x7fe   : > { %v1256_v4 = vpop.f32.mrf.mxu1 }
 0x7ff   : > { %v1260_v7 = vsel %vm550_vm7, -inf, %v1256_v4 }
 0x800   : > { %v1261_v9 = vsel %vm696_vm5, %v1260_v7, -inf }
 0x801   : > { %1262 = vmax.xlane.f32.xlu2 %v1261_v9 }
 0x806   : > { %v1258_v10 = vpop.f32.mrf.mxu1 }
 0x874   : > { %v1263_v11 = vpop.xlane.xlu2 %1262 }
 0x875   : > { %v1264_v12 = vsub.f32 %v1260_v7, %v1263_v11 }
 0x877   : > { %v1265_v13 = vmul.f32 1.442695, %v1264_v12 }
 0x879   : > { %1900 = vpow2.f32 %v1265_v13 }
 0x87f   : > { %v1901_v14 = vpop.eup %1900 }
 0x880   : > { %v1267_v15 = vsel %vm696_vm5, %v1901_v14, 0.0 }
 0x881   : > { %1268 = vadd.xlane.f32.xlu0 %v1267_v15 }
 0x8f4   : > { %v1269_v5 = vpop.xlane.xlu0 %1268 }
 0x8f5   : > { %1902 = vrcp.f32 %v1269_v5 }
 0x8fb   : > { %v1903_v6 = vpop.eup %1902 }
 0x8fc   : > { %v1271_v17 = vmul.f32 %v1903_v6, %v1901_v14  ;;  %v1883_v6 = vld [vmem:[%s2441_s16] ss:$0 sm:$0xff] }
 0x8fe   : > { %v1272_v18 = vpack.c.bf16 %v1271_v17, %v1271_v17 }
 0x900   : > { %1742 = vmatmul.msk.bf16.vlgmr.msra.gmra.mxu2 %vm696_vm5, %v1272_v18 }
 0x983   : > { %v1289_v19 = vpop.f32.mrf.mxu2 }
 0x984   : > { %v1293_v20 = vpack.c.bf16 %v1289_v19, %v1289_v19 }
 0x986   : > { %1744 = vmatmul.msk.bf16.vlgmr.msrb.gmra.mxu3 %vm696_vm5, %v1293_v20 }
 0x98b   : > { %v1291_v21 = vpop.f32.mrf.mxu2 }
 0xa09   : > { %v1311_v22 = vpop.f32.mrf.mxu3 }
 0xa0a   : > { %v1315_v23 = vadd.f32 %v1311_v22, %v1133_v2 }
 0xa0c   : > { %v1316_v25 = vadd.f32 %v1315_v23, %v2118_v0  ;;  %v1816_v0 = vld [vmem:[%s2438_s13 + $0x8] sm:$0xff] }
 0xa0d   : > { %1384 = vmatpush.bf16.msra.mxu0 %v1816_v0 }
 0xa0e   : > { %v2340_v26 = vadd.f32 %v1879_v24, %v1316_v25 }
 0xa10   : > { %v1324_v27 = vsel %vm553_vm0, %v2340_v26, 0.0 }
 0xa11   : > { %1325 = vadd.xlane.f32.xlu1 %v1324_v27  ;;  %v1313_v28 = vpop.f32.mrf.mxu3  ;;  %1385 = vmatpush.bf16.msra.mxu0 %v1815_v34 }
 0xa84   : > { %v1326_v29 = vpop.xlane.xlu1 %1325 }
 0xa85   : > { %v1327_v30 = vmul.f32 %v1326_v29, %v2122_v8 }
 0xa87   : > { %v1328_v31 = vsub.f32 %v2340_v26, %v1327_v30 }
 0xa89   : > { %v1329_v32 = vmul.f32 %v1328_v31, %v1328_v31 }
 0xa8b   : > { %v1330_v33 = vsel %vm553_vm0, %v1329_v32, 0.0 }
 0xa8c   : > { %1331 = vadd.xlane.f32.xlu2 %v1330_v33 }
 0xaff   : > { %v1332_v35 = vpop.xlane.xlu2 %1331 }
 0xb00   : > { %v1333_v36 = vmul.f32 %v1332_v35, %v2122_v8  ;;  %v1881_v8 = vld [vmem:[%s2437_s12] ss:$0 sm:$0xff] }
 0xb02   : > { %v1334_v37 = vadd.f32 1e-05, %v1333_v36 }
 0xb04   : > { %1904 = vrsqrt.f32 %v1334_v37  ;;  %vm1341_vm9 = vweird.f32 %v1334_v37 }
 0xb0a   : > { %v1905_v39 = vpop.eup %1904 }
 0xb0b   : > { %v1336_v40 = vmul.f32 %v1905_v39, %v1334_v37  ;;  %vm1342_vm8 = vweird.f32 %v1905_v39 }
 0xb0c   : > { %vm1343_vm10 = vmor %vm1341_vm9, %vm1342_vm8 }
 0xb0d   : > { %v1337_v41 = vmul.f32 %v1905_v39, %v1336_v40 }
 0xb0f   : > { %v1338_v42 = vmul.f32 0.5, %v1337_v41 }
 0xb11   : > { %v1339_v43 = vsub.f32 1.5, %v1338_v42 }
 0xb13   : > { %v1340_v44 = vmul.f32 %v1905_v39, %v1339_v43 }
 0xb15   : > { %v1344_v47 = vsel %vm1343_vm10, %v1905_v39, %v1340_v44 }
 0xb16   : > { %v1345_v48 = vmul.f32 %v1344_v47, %v1328_v31 }
 0xb18   : > { %v1349_v49 = vmul.f32 %v1880_v46, %v1345_v48 }
 0xb1a   : > { %v1353_v50 = vadd.f32 %v1881_v8, %v1349_v49 }
 0xb1c   : > { %v1354_v51 = vpack.c.bf16 %v1353_v50, %v1353_v50 }
 0xb1e   : > { %1753 = vmatmul.msk.bf16.vlgmr.msra.gmra.mxu0 %vm553_vm0, %v1354_v51 }
 0xb9b   : > { %v1387_v60 = vpop.f32.mrf.mxu0 }
 0xb9c   : > { %v1388_v61 = vadd.f32 %v1882_v58, %v1387_v60 }
 0xb9e   : > { %v1754_v62 = vmul.f32 -1.702, %v1388_v61 }
 0xba0   : > { %v1393_v63 = vmul.f32 1.442695, %v1754_v62 }
 0xba2   : > { %1906 = vpow2.f32 %v1393_v63 }
 0xba3   : > { %v1389_v1 = vpop.f32.mrf.mxu0 }
 0xba8   : > { %v1907_v2 = vpop.eup %1906 }
 0xba9   : > { %v1395_v3 = vadd.f32 1.0, %v1907_v2 }
 0xbab   : > { %1908 = vrcp.f32 %v1395_v3  ;;  %v1407_v10 = vand.u32 2147483648, %v1395_v3  ;;  %v1405_v12 = vand.u32 2147483647, %v1395_v3  ;;  %vm1401_vm12 = vweird.f32 %v1395_v3 }
 0xbad   : > { %v1408_v14 = vor.u32 1.1754944e-38, %v1407_v10  ;;  %vm1406_vm14 = vcmp.eq.f32.partialorder %v1405_v12, 8.507059e+37 }
 0xbb1   : > { %v1909_v4 = vpop.eup %1908 }
 0xbb2   : > { %v1397_v7 = vmul.f32 %v1909_v4, %v1395_v3  ;;  %vm1402_vm11 = vweird.f32 %v1909_v4 }
 0xbb3   : > { %vm1403_vm13 = vmor %vm1401_vm12, %vm1402_vm11 }
 0xbb4   : > { %v1398_v9 = vsub.f32 1.0, %v1397_v7 }
 0xbb6   : > { %v1399_v11 = vmul.f32 %v1909_v4, %v1398_v9 }
 0xbb8   : > { %v1400_v13 = vadd.f32 %v1909_v4, %v1399_v11 }
 0xbba   : > { %v1404_v15 = vsel %vm1403_vm13, %v1909_v4, %v1400_v13 }
 0xbbb   : > { %v1409_v45 = vsel %vm1406_vm14, %v1408_v14, %v1404_v15 }
 0xbbc   : > { %v1411_v16 = vmul.f32 %v1409_v45, %v1388_v61 }
 0xbbe   : > { %v1412_v5 = vpack.c.bf16 %v1411_v16, %v1411_v16 }
 0xbc0   : > { %1489 = vmatmul.bf16.vlgmr.msrb.gmra.mxu1 %v1412_v5 }
 0xc3d   : > { %v1490_v17 = vpop.f32.mrf.mxu1 }
 0xc3e   : > { %v1491_v18 = vadd.f32 %v1883_v6, %v1490_v17 }
 0xc40   : > { %v1494_v19 = vadd.f32 %v1491_v18, %v2340_v26 }
 0xc42   : > { %1495 = vst.msk [vmem:[%s539_s22] sm:$0xff] %vm553_vm0, %v1494_v19 }
 0xc43   : > { %1937 = shalt.err (!%p1934_p3)
}
 0xc44   : > { %1825 = dma.vmem_to_hbm [thread:$0]  (%p2103_p5), %s1510_s23, 128, %s1512_s2, %s1497_s28  }
 0xc45   : > { %v1492_v20 = vpop.f32.mrf.mxu1 }
 0xc46 PF: > { %p1831_p4 = scmp.ge.s32.totalorder %s1972_s27, 2  ;;  %s1523_s21 = sand.u32 1, %s1960_s24  }
 0xc47   : > { %s1524_s22 = scalar_lea.sflag [#allocation3], %s1523_s21 }
 0xc48   : > { %p1828_p7 = pnand %p1831_p4, %p2107_p6 }
 0xc4a   : > { %p1829_p8 = pneg %p1828_p7 }
 0xc4c   : > { %1955 = dma.done.wait (%p1829_p8), %s1524_s22, 128  }
 0xc4d   : > { %1957 = vsyncadd (%p1829_p8), %s1524_s22, 4294967168  ;;  %s2462_s27 = sld [smem:[#allocation6_spill]]  ;;  %s2465_s24 = smov %s1964_s25 }
 0xc4e   : > { %s2463_s3 = sld [smem:[#allocation5_spill]] }
 0xc4f   : > { %s2464_s26 = sld [smem:[#allocation7_spill]] }
 0xc53   : > { %p27_p9 = scmp.ge.s32.totalorder %s2462_s27, 4  }
 0xc54   : > { %s2466_s25 = smov %s2463_s3 }
 0xc55   :  { %29 = sbr.rel (!%p27_p9) target bundleno = 8 (0x8), region = 144 }
 0xc5a   :  { %1530 = vsyncpa [#allocation3], 1 }
 0xc5b   :  { %1532 = vsyncpa [#allocation3 + $0x1], 1 }

// kernel: tpu_custom_call.1
= control target key start
LH: loop header
LB: loop body
LE: loop exit
PB: predicated region body
PF: predicated region fallthrough
CT: control target
= control target key end

     0   :  { %s2425_s0 = inlined_call_operand.vmem [shape: f32[2,8,32], index: 0, kind: input, shape index: {}]   ;;  %s2426_s1 = inlined_call_operand.vmem [shape: f32[1,32], index: 1, kind: input, shape index: {}]   ;;  %s2427_s2 = inlined_call_operand.vmem [shape: f32[1,32], index: 2, kind: input, shape index: {}]   ;;  %s2428_s3 = inlined_call_operand.vmem [shape: bf16[4,32,8], index: 3, kind: input, shape index: {}]   ;;  %s2429_s4 = inlined_call_operand.vmem [shape: bf16[4,32,8], index: 4, kind: input, shape index: {}]   ;;  %s2430_s5 = inlined_call_operand.vmem [shape: bf16[4,32,8], index: 5, kind: input, shape index: {}]   ;;  %s2431_s6 = inlined_call_operand.vmem [shape: f32[4,1,8], index: 6, kind: input, shape index: {}]   ;;  %s2432_s7 = inlined_call_operand.vmem [shape: f32[4,1,8], index: 7, kind: input, shape index: {}]   ;;  %s2433_s8 = inlined_call_operand.vmem [shape: f32[4,1,8], index: 8, kind: input, shape index: {}]   ;;  %s2434_s9 = inlined_call_operand.vmem [shape: bf16[4,8,32], index: 9, kind: input, shape index: {}]   ;;  %s2435_s10 = inlined_call_operand.vmem [shape: f32[1,32], index: 10, kind: input, shape index: {}]   ;;  %s2436_s11 = inlined_call_operand.vmem [shape: f32[1,32], index: 11, kind: input, shape index: {}]   ;;  %s2437_s12 = inlined_call_operand.vmem [shape: f32[1,32], index: 12, kind: input, shape index: {}]   ;;  %s2438_s13 = inlined_call_operand.vmem [shape: bf16[32,128], index: 13, kind: input, shape index: {}]   ;;  %s2439_s14 = inlined_call_operand.vmem [shape: f32[1,128], index: 14, kind: input, shape index: {}]   ;;  %s2440_s15 = inlined_call_operand.vmem [shape: bf16[128,32], index: 15, kind: input, shape index: {}]   ;;  %s2441_s16 = inlined_call_operand.vmem [shape: f32[1,32], index: 16, kind: input, shape index: {}]   ;;  %s2442_s17 = inlined_call_operand.hbm [shape: f32[2,8,32], index: 17, kind: output, shape index: {}]  }
   0x1   :  { %2447 = sst [smem:[#allocation9_spill]] %s2425_s0 }
   0x2   :  { %2448 = sst [smem:[#allocation10_spill]] %s2426_s1 }
   0x3   :  { %2449 = sst [smem:[#allocation11_spill]] %s2427_s2 }
   0x4   :  { %2450 = sst [smem:[#allocation12_spill]] %s2428_s3 }
   0x5   :  { %22 = vsyncpa [#allocation3], 0 }
   0x6   :  { %24 = vsyncpa [#allocation3 + $0x1], 0  ;;  %s2065_s24 = smov 0   ;;  %s2067_s25 = smov 0  }
   0x7   :  { %s2069_s26 = smov 0   ;;  %s2071_s27 = smov 0  }
   0x8 LB: > { %2451 = sst [smem:[#allocation5_spill]] %s1968_s26  ;;  %s2086_s28 = sadd.s32 4294967295, %s1972_s27   ;;  %s1972_s27 = sphi %s2071_s27, %s2462_s27   ;;  %s1968_s26 = sphi %s2069_s26, %s2464_s26   ;;  %s1964_s25 = sphi %s2067_s25, %s2466_s25   ;;  %s1960_s24 = sphi %s2065_s24, %s2465_s24  }
   0x9   : > { %s1571_s29 = sadd.s32 4294967294, %s1972_s27   ;;  %s2090_s0 = sadd.s32 1, %s1972_s27  }
   0xa   : > { %2452 = sst [smem:[#allocation6_spill]] %s2090_s0  ;;  %s399_s30 = sadd.s32 1, %s1968_s26 }
   0xb   : > { %s396_s18 = ssub.s32 %s1972_s27, %s2090_s0  ;;  %p409_p0 = scmp.ne.s32.totalorder %s1968_s26, %s1964_s25 }
   0xc   : > { %p397_p1 = scmp.eq.s32.totalorder %s396_s18, 0  ;;  %p410_p2 = scmp.eq.s32.totalorder %s2086_s28, 1 }
   0xd   : > { %p415_p3 = scmp.ne.s32.totalorder %s1964_s25, %s1960_s24  ;;  %p416_p4 = scmp.eq.s32.totalorder %s1571_s29, 1 }
   0xe   : > { %s2101_s19 = scalar_select %p397_p1, %s1968_s26, %s399_s30  }
   0xf   : > { %p2103_p5 = por %p410_p2, %p409_p0  ;;  %p2107_p6 = por %p416_p4, %p415_p3 }
  0x10   : > { %2453 = sst [smem:[#allocation7_spill]] %s2101_s19  ;;  %p1574_p7 = scmp.ge.s32.totalorder %s1972_s27, 1 }
  0x11   : > { %s2455_s20 = scalar_select %p2107_p6, 1, 0 }
  0x12   : > { %p489_p8 = scmp.lt.s32.totalorder %s1972_s27, 3 }
  0x13   : > { %2456 = sst [smem:[#allocation8_spill]] %s2455_s20 }
  0x14   : > { %p490_p9 = pnand %p1574_p7, %p489_p8 }
  0x15   : > { %p540_p10 = scmp.lt.s32.totalorder (!%p490_p9), %s2086_s28, 1  ;;  %s2457_s30 = sld [smem:[#allocation9_spill]] (!%p490_p9) }
  0x16   : > { %493 = sbr.rel (%p490_p9) target bundleno = 3142 (0xc46), region = 88  ;;  %s2458_s3 = sld [smem:[#allocation12_spill]] (!%p490_p9) }
  0x17   : > { %s2460_s2 = sld [smem:[#allocation11_spill]] (!%p490_p9)  ;;  %s537_s29 = sand.u32 (!%p490_p9), 1, %s1964_s25  }
  0x18   : > { %s1575_s26 = sshll.u32 (!%p490_p9), %s537_s29, 3  ;;  %s1788_s19 = sshll.u32 (!%p490_p9), %s2086_s28, 3 }
  0x1b   : > { %s541_s21 = scalar_select %p540_p10, %s2086_s28, 1  ;;  %vm553_vm0 = vcmask 261120   ;;  %v1974_v2 = vmov 32.0   ;;  %v1794_v15 = vld [vmem:[%s2429_s4 + $0x8] sm:$0xff]  ;;  %v1793_v18 = vld [vmem:[%s2429_s4] sm:$0xff]  ;;  %v1800_v37 = vld [vmem:[%s2429_s4 + $0x18] sm:$0xff] }
  0x1c   : > { %1884 = vrcp.f32 %v1974_v2  ;;  %v1792_v14 = vld [vmem:[%s2458_s3 + $0x8] sm:$0xff]  ;;  %v1798_v16 = vld [vmem:[%s2458_s3 + $0x18] sm:$0xff]  ;;  %654 = vmatpush.bf16.msra.mxu2 %v1794_v15  ;;  %v1791_v17 = vld [vmem:[%s2458_s3] sm:$0xff]  ;;  %vm696_vm5 = vcmask 64512   ;;  %vm733_vm6 = vcmask 1043456   ;;  %s1497_s28 = scalar_lea.sflag [#allocation3], %s537_s29 }
  0x1d   : > { %s1576_s22 = sshll.u32 %s541_s21, 3  ;;  %621 = vmatpush.bf16.msra.mxu0 %v1792_v14  ;;  %780 = vmatpush.bf16.msra.mxu1 %v1798_v16  ;;  %v1797_v19 = vld [vmem:[%s2458_s3 + $0x10] sm:$0xff]  ;;  %v1796_v21 = vld [vmem:[%s2430_s5 + $0x8] sm:$0xff]  ;;  %v1795_v23 = vld [vmem:[%s2430_s5] sm:$0xff]  ;;  %s1507_s21 = scalar_lea.hbm %s2442_s17, %s1788_s19 }
  0x1e   : > { %s543_s18 = scalar_lea.vmem %s2457_s30, %s1576_s22  ;;  %s2459_s30 = sld [smem:[#allocation10_spill]]  ;;  %v1866_v33 = vld [vmem:[%s2460_s2] ss:$0 sm:$0xff]  ;;  %v1799_v39 = vld [vmem:[%s2429_s4 + $0x10] sm:$0xff]  ;;  %v1802_v49 = vld [vmem:[%s2430_s5 + $0x18] sm:$0xff] }
  0x1f   : > { %v2118_v0 = vld [vmem:[%s543_s18] sm:$0xff]  ;;  %v1801_v52 = vld [vmem:[%s2430_s5 + $0x10] sm:$0xff]  ;;  %s539_s22 = scalar_lea.vmem [#allocation2], %s1575_s26  ;;  %s1511_s2 = sshll.u32 %s1507_s21, 4  ;;  %s1512_s2 = int_to_ptr.hbm [resolvable:$true] %s1511_s2 }
  0x20   : > { %v554_v1 = vsel %vm553_vm0, %v2118_v0, 0.0  ;;  %655 = vmatpush.bf16.msra.mxu2 %v1793_v18  ;;  %v1869_v42 = vld [vmem:[%s2432_s7] ss:$0 sm:$0xff]  ;;  %v1871_v61 = vld [vmem:[%s2432_s7 + $0x1] ss:$0 sm:$0xff]  ;;  %s1509_s23 = sshll.u32 %s539_s22, 4  ;;  %s1510_s23 = int_to_ptr.vmem [resolvable:$true] %s1509_s23 }
  0x21   : > { %555 = vadd.xlane.f32.xlu0 %v554_v1  ;;  %622 = vmatpush.bf16.msra.mxu0 %v1791_v17  ;;  %v1867_v46 = vld [vmem:[%s2431_s6] ss:$0 sm:$0xff]  ;;  %s1930_s26 = scalar_lea.hbm %s2442_s17, 16 }
  0x22   : > { %v1885_v3 = vpop.eup %1884  ;;  %781 = vmatpush.bf16.msra.mxu1 %v1797_v19  ;;  %v1870_v55 = vld [vmem:[%s2433_s8] ss:$0 sm:$0xff] }
  0x23   : > { %v558_v4 = vmul.f32 32.0, %v1885_v3  ;;  %vm562_vm1 = vweird.f32 %v1885_v3 }
  0x24   : > { %687 = vmatpush.bf16.msrb.mxu2 %v1796_v21  ;;  %v1865_v31 = vld [vmem:[%s2459_s30] ss:$0 sm:$0xff] }
  0x25   : > { %v559_v5 = vsub.f32 1.0, %v558_v4  ;;  %v546_v4 = vlaneseq }
  0x27   : > { %v560_v6 = vmul.f32 %v1885_v3, %v559_v5  ;;  %v2202_v5 = vshrl.u32 %v546_v4, 7 }
  0x28   : > { %688 = vmatpush.bf16.msrb.mxu2 %v1795_v23 }
  0x29   : > { %v561_v7 = vadd.f32 %v1885_v3, %v560_v6  ;;  %v2204_v6 = vand.u32 127, %v546_v4 }
  0x2b   : > { %v2122_v8 = vsel %vm562_vm1, %v1885_v3, %v561_v7  ;;  %vm550_vm7 = vcmp.gt.s32.totalorder %v2204_v6, %v2202_v5 }
  0x94   : > { %v556_v9 = vpop.xlane.xlu0 %555 }
  0x95   : > { %v564_v10 = vmul.f32 %v2122_v8, %v556_v9 }
  0x97   : > { %v565_v11 = vsub.f32 %v2118_v0, %v564_v10 }
  0x99   : > { %v566_v12 = vmul.f32 %v565_v11, %v565_v11 }
  0x9b   : > { %v567_v13 = vsel %vm553_vm0, %v566_v12, 0.0  ;;  %v1872_v12 = vld [vmem:[%s2433_s8 + $0x1] ss:$0 sm:$0xff] }
  0x9c   : > { %568 = vadd.xlane.f32.xlu0 %v567_v13 }
 0x10f   : > { %v569_v20 = vpop.xlane.xlu0 %568 }
 0x110   : > { %v570_v22 = vmul.f32 %v569_v20, %v2122_v8 }
 0x112   : > { %v571_v24 = vadd.f32 1e-05, %v570_v22 }
 0x114   : > { %1886 = vrsqrt.f32 %v571_v24  ;;  %vm578_vm3 = vweird.f32 %v571_v24 }
 0x11a   : > { %v1887_v25 = vpop.eup %1886 }
 0x11b   : > { %v573_v26 = vmul.f32 %v1887_v25, %v571_v24  ;;  %vm579_vm2 = vweird.f32 %v1887_v25 }
 0x11c   : > { %vm580_vm4 = vmor %vm578_vm3, %vm579_vm2 }
 0x11d   : > { %v574_v27 = vmul.f32 %v1887_v25, %v573_v26  ;;  %v1804_v26 = vld [vmem:[%s2458_s3 + $0x28] sm:$0xff] }
 0x11f   : > { %v575_v28 = vmul.f32 0.5, %v574_v27 }
 0x121   : > { %v576_v29 = vsub.f32 1.5, %v575_v28  ;;  %v1803_v28 = vld [vmem:[%s2458_s3 + $0x20] sm:$0xff] }
 0x123   : > { %v577_v30 = vmul.f32 %v1887_v25, %v576_v29  ;;  %v1868_v29 = vld [vmem:[%s2431_s6 + $0x1] ss:$0 sm:$0xff] }
 0x125   : > { %v581_v32 = vsel %vm580_vm4, %v1887_v25, %v577_v30 }
 0x126   : > { %v582_v34 = vmul.f32 %v581_v32, %v565_v11  ;;  %v751_v32 = vld [vmem:[%s2434_s9] sm:$0xf] }
 0x128   : > { %v586_v35 = vmul.f32 %v1865_v31, %v582_v34 }
 0x12a   : > { %v590_v36 = vadd.f32 %v1866_v33, %v586_v35  ;;  %v937_v33 = vsel %vm733_vm6, %v751_v32, 0  ;;  %v1877_v32 = vld [vmem:[%s2432_s7 + $0x3] ss:$0 sm:$0xff] }
 0x12c   : > { %v2161_v38 = vpack.c.bf16 %v590_v36, %v590_v36 }
 0x12e   : > { %1585 = vmatmul.msk.bf16.vlgmr.msra.gmra.mxu0 %vm553_vm0, %v2161_v38  ;;  %1594 = vmatmul.msk.bf16.vlgmr.msra.gmra.mxu2 %vm553_vm0, %v2161_v38 }
 0x12f   : > { %1619 = vmatmul.msk.bf16.vlgmr.msra.gmra.mxu1 %vm553_vm0, %v2161_v38  ;;  %815 = vmatpush.bf16.msra.mxu2 %v1800_v37 }
 0x133   : > { %816 = vmatpush.bf16.msra.mxu2 %v1799_v39 }
 0x13e   : > { %1603 = vmatmul.msk.bf16.vlgmr.msrb.gmra.mxu2 %vm553_vm0, %v2161_v38 }
 0x14e   : > { %1633 = vmatmul.msk.bf16.vlgmr.msra.gmra.mxu2 %vm553_vm0, %v2161_v38 }
 0x1ab   : > { %v624_v40 = vpop.f32.mrf.mxu0 }
 0x1ac   : > { %v2176_v41 = vpop.f32.mrf.mxu1  ;;  %v625_v51 = vadd.f32 %v1867_v46, %v624_v40 }
 0x1ad   : > { %v784_v30 = vadd.f32 %v1868_v29, %v2176_v41 }
 0x1ae   : > { %v694_v54 = vpack.c.bf16 %v625_v51, %v625_v51  ;;  %v1806_v51 = vld [vmem:[%s2429_s4 + $0x28] sm:$0xff] }
 0x1af   : > { %v857_v31 = vpack.c.bf16 %v784_v30, %v784_v30 }
 0x1b1   : > { %v657_v43 = vpop.f32.mrf.mxu2 }
 0x1b2   : > { %v658_v44 = vadd.f32 %v1869_v42, %v657_v43 }
 0x1b3   : > { %v626_v45 = vpop.f32.mrf.mxu0 }
 0x1b4   : > { %v695_v47 = vpack.c.bf16 %v658_v44, %v658_v44  ;;  %v785_v48 = vpop.f32.mrf.mxu1 }
 0x1b6   : > { %v701_v50 = vsel %vm696_vm5, %v695_v47, 0 }
 0x1b7   : > { %710 = vmatpush.bf16.xpose.msra.mxu3 %v701_v50 }
 0x1b9   : > { %v659_v53 = vpop.f32.mrf.mxu2 }
 0x1be   : > { %1604 = vmatmul.msk.bf16.vlgmr.msra.gmra.mxu3 %vm696_vm5, %v694_v54 }
 0x1bf   : > { %850 = vmatpush.bf16.msrb.mxu3 %v1802_v49 }
 0x1c1   : > { %v690_v56 = vpop.f32.mrf.mxu2 }
 0x1c2   : > { %v691_v57 = vadd.f32 %v1870_v55, %v690_v56 }
 0x1c3   : > { %851 = vmatpush.bf16.msrb.mxu3 %v1801_v52  ;;  %v1805_v52 = vld [vmem:[%s2429_s4 + $0x20] sm:$0xff] }
 0x1c4   : > { %v729_v58 = vpack.c.bf16 %v691_v57, %v691_v57  ;;  %v1650_v57 = vld [vmem:[%s2434_s9 + $0x4] sm:$0xf] }
 0x1c6   : > { %v735_v59 = vsel %vm733_vm6, %v729_v58, 0  ;;  %v918_v58 = vsel %vm733_vm6, %v1650_v57, 0  ;;  %v1878_v57 = vld [vmem:[%s2433_s8 + $0x3] ss:$0 sm:$0xff] }
 0x1c7   : > { %744 = vmatpush.bf16.msrb.mxu0 %v735_v59  ;;  %946 = vmatpush.bf16.msra.mxu3 %v937_v33  ;;  %v1808_v59 = vld [vmem:[%s2430_s5 + $0x28] sm:$0xff] }
 0x1c8   : > { %927 = vmatpush.bf16.msrb.mxu2 %v918_v58 }
 0x1c9   : > { %v692_v60 = vpop.f32.mrf.mxu2 }
 0x1ca   : > { %v1807_v60 = vld [vmem:[%s2430_s5 + $0x20] sm:$0xff] }
 0x1cc   : > { %1050 = vmatpush.bf16.msra.mxu2 %v1808_v59 }
 0x1ce   : > { %1647 = vmatmul.msk.bf16.vlgmr.msrb.gmra.mxu3 %vm553_vm0, %v2161_v38 }
 0x1d0   : > { %1051 = vmatpush.bf16.msra.mxu2 %v1807_v60 }
 0x1d1   : > { %v818_v62 = vpop.f32.mrf.mxu2 }
 0x1d2   : > { %v819_v63 = vadd.f32 %v1871_v61, %v818_v62  ;;  %v1810_v62 = vld [vmem:[%s2458_s3 + $0x38] sm:$0xff] }
 0x1d4   : > { %v858_v1 = vpack.c.bf16 %v819_v63, %v819_v63 }
 0x1d6   : > { %v863_v2 = vsel %vm696_vm5, %v858_v1, 0  ;;  %v1809_v1 = vld [vmem:[%s2458_s3 + $0x30] sm:$0xff]  ;;  %s1924_s3 = sshra.s32 %s1512_s2, 4  ;;  %s1925_s3 = int_to_ptr.hbm [resolvable:$true] %s1924_s3 }
 0x1d7   : > { %872 = vmatpush.bf16.xpose.msra.mxu0 %v863_v2  ;;  %s1926_s0 = scalar_lea.hbm %s1925_s3, 8  ;;  %p1931_p0 = scmp.lt.s32.totalorder %s1925_s3, %s2442_s17 }
 0x1d8   : > { %p1927_p11 = scmp.ne.s32.totalorder %s1925_s3, %s1926_s0  ;;  %p1932_p1 = scmp.lt.s32.totalorder %s1930_s26, %s1926_s0 }
 0x1d9   : > { %v820_v3 = vpop.f32.mrf.mxu2 }
 0x1da   : > { %v1874_v3 = vld [vmem:[%s2432_s7 + $0x2] ss:$0 sm:$0xff]  ;;  %p1928_p12 = pnand %p1927_p11, %p2103_p5  ;;  %p1933_p2 = por %p1932_p1, %p1931_p0 }
 0x1dc   : > { %p1929_p13 = pneg %p1928_p12 }
 0x1de   : > { %p1934_p3 = pnand %p1933_p2, %p1929_p13 }
 0x241   : > { %v712_v7 = vpop.f32.mrf.mxu3 }
 0x242   : > { %v716_v9 = vsel %vm550_vm7, -inf, %v712_v7 }
 0x243   : > { %v717_v10 = vsel %vm696_vm5, %v716_v9, -inf }
 0x244   : > { %718 = vmax.xlane.f32.xlu1 %v717_v10 }
 0x249   : > { %v714_v11 = vpop.f32.mrf.mxu3 }
 0x24a   : > { %v1812_v11 = vld [vmem:[%s2429_s4 + $0x38] sm:$0xff] }
 0x251   : > { %v853_v13 = vpop.f32.mrf.mxu3 }
 0x252   : > { %v854_v14 = vadd.f32 %v1872_v12, %v853_v13 }
 0x254   : > { %v891_v15 = vpack.c.bf16 %v854_v14, %v854_v14  ;;  %v1811_v14 = vld [vmem:[%s2429_s4 + $0x30] sm:$0xff] }
 0x256   : > { %v896_v16 = vsel %vm733_vm6, %v891_v15, 0 }
 0x257   : > { %905 = vmatpush.bf16.msrb.mxu1 %v896_v16 }
 0x259   : > { %v855_v17 = vpop.f32.mrf.mxu3 }
 0x25b   : > { %1015 = vmatpush.bf16.msra.mxu1 %v1806_v51 }
 0x25f   : > { %1016 = vmatpush.bf16.msra.mxu1 %v1805_v52 }
 0x2b7   : > { %v719_v18 = vpop.xlane.xlu1 %718 }
 0x2b8   : > { %v720_v19 = vsub.f32 %v716_v9, %v719_v18  ;;  %v1873_v9 = vld [vmem:[%s2431_s6 + $0x2] ss:$0 sm:$0xff] }
 0x2ba   : > { %v721_v20 = vmul.f32 1.442695, %v720_v19  ;;  %v1875_v19 = vld [vmem:[%s2433_s8 + $0x2] ss:$0 sm:$0xff] }
 0x2bc   : > { %1888 = vpow2.f32 %v721_v20  ;;  %v1697_v20 = vld [vmem:[%s2434_s9 + $0x8] sm:$0xf] }
 0x2c2   : > { %v1889_v21 = vpop.eup %1888 }
 0x2c3   : > { %v723_v22 = vsel %vm696_vm5, %v1889_v21, 0.0 }
 0x2c4   : > { %724 = vadd.xlane.f32.xlu1 %v723_v22 }
 0x337   : > { %v725_v23 = vpop.xlane.xlu1 %724 }
 0x338   : > { %1890 = vrcp.f32 %v725_v23 }
 0x33e   : > { %v1891_v24 = vpop.eup %1890 }
 0x33f   : > { %v727_v25 = vmul.f32 %v1891_v24, %v1889_v21  ;;  %v1118_v21 = vsel %vm733_vm6, %v1697_v20, 0 }
 0x341   : > { %v728_v27 = vpack.c.bf16 %v727_v25, %v727_v25 }
 0x343   : > { %1605 = vmatmul.msk.bf16.vlgmr.msrb.gmra.mxu0 %vm696_vm5, %v728_v27 }
 0x344   : > { %980 = vmatpush.bf16.msrb.mxu0 %v1804_v26 }
 0x348   : > { %981 = vmatpush.bf16.msrb.mxu0 %v1803_v28 }
 0x353   : > { %1648 = vmatmul.msk.bf16.vlgmr.msra.gmra.mxu0 %vm696_vm5, %v857_v31 }
 0x363   : > { %1666 = vmatmul.msk.bf16.vlgmr.msrb.gmra.mxu0 %vm553_vm0, %v2161_v38 }
 0x3c0   : > { %v746_v34 = vpop.f32.mrf.mxu0 }
 0x3c1   : > { %v750_v35 = vpack.c.bf16 %v746_v34, %v746_v34 }
 0x3c3   : > { %1652 = vmatmul.msk.bf16.vlgmr.msra.gmra.mxu3 %vm696_vm5, %v750_v35 }
 0x3c8   : > { %v748_v36 = vpop.f32.mrf.mxu0 }
 0x3d0   : > { %v874_v37 = vpop.f32.mrf.mxu0 }
 0x3d1   : > { %v878_v39 = vsel %vm550_vm7, -inf, %v874_v37 }
 0x3d2   : > { %v879_v40 = vsel %vm696_vm5, %v878_v39, -inf }
 0x3d3   : > { %880 = vmax.xlane.f32.xlu2 %v879_v40 }
 0x3d8   : > { %v876_v41 = vpop.f32.mrf.mxu0 }
 0x3e0   : > { %v983_v42 = vpop.f32.mrf.mxu0 }
 0x3e1   : > { %v984_v13 = vadd.f32 %v1873_v9, %v983_v42 }
 0x3e3   : > { %v1057_v16 = vpack.c.bf16 %v984_v13, %v984_v13 }
 0x3e8   : > { %v985_v43 = vpop.f32.mrf.mxu0 }
 0x446   : > { %v881_v44 = vpop.xlane.xlu2 %880  ;;  %v2240_v45 = vpop.f32.mrf.mxu3 }
 0x447   : > { %v882_v46 = vsub.f32 %v878_v39, %v881_v44 }
 0x449   : > { %v883_v47 = vmul.f32 1.442695, %v882_v46  ;;  %v1814_v46 = vld [vmem:[%s2430_s5 + $0x38] sm:$0xff] }
 0x44b   : > { %1892 = vpow2.f32 %v883_v47  ;;  %v1813_v47 = vld [vmem:[%s2430_s5 + $0x30] sm:$0xff] }
 0x44e   : > { %v950_v48 = vpop.f32.mrf.mxu3 }
 0x451   : > { %v1893_v49 = vpop.eup %1892 }
 0x452   : > { %v885_v50 = vsel %vm696_vm5, %v1893_v49, 0.0 }
 0x453   : > { %886 = vadd.xlane.f32.xlu2 %v885_v50 }
 0x4c6   : > { %v887_v53 = vpop.xlane.xlu2 %886 }
 0x4c7   : > { %1894 = vrcp.f32 %v887_v53 }
 0x4cd   : > { %v1895_v54 = vpop.eup %1894 }
 0x4ce   : > { %v889_v55 = vmul.f32 %v1895_v54, %v1893_v49 }
 0x4d0   : > { %v890_v56 = vpack.c.bf16 %v889_v55, %v889_v55  ;;  %v1876_v55 = vld [vmem:[%s2431_s6 + $0x3] ss:$0 sm:$0xff] }
 0x4d2   : > { %1649 = vmatmul.msk.bf16.vlgmr.msrb.gmra.mxu1 %vm696_vm5, %v890_v56 }
 0x4d3   : > { %1127 = vmatpush.bf16.msrb.mxu1 %v1118_v21 }
 0x4e2   : > { %1680 = vmatmul.msk.bf16.vlgmr.msra.gmra.mxu1 %vm553_vm0, %v2161_v38 }
 0x54f   : > { %v907_v61 = vpop.f32.mrf.mxu1 }
 0x550   : > { %v911_v63 = vpack.c.bf16 %v907_v61, %v907_v61 }
 0x552   : > { %1651 = vmatmul.msk.bf16.vlgmr.msrb.gmra.mxu2 %vm696_vm5, %v911_v63 }
 0x553   : > { %1162 = vmatpush.bf16.msrb.mxu2 %v1810_v62 }
 0x557   : > { %v909_v2 = vpop.f32.mrf.mxu1  ;;  %1163 = vmatpush.bf16.msrb.mxu2 %v1809_v1 }
 0x55f   : > { %v1018_v4 = vpop.f32.mrf.mxu1 }
 0x560   : > { %v1019_v7 = vadd.f32 %v1874_v3, %v1018_v4 }
 0x562   : > { %v1058_v10 = vpack.c.bf16 %v1019_v7, %v1019_v7  ;;  %1694 = vmatmul.msk.bf16.vlgmr.msra.gmra.mxu2 %vm553_vm0, %v2161_v38 }
 0x564   : > { %v1063_v12 = vsel %vm696_vm5, %v1058_v10, 0 }
 0x565   : > { %1072 = vmatpush.bf16.xpose.msrb.mxu3 %v1063_v12 }
 0x567   : > { %v1020_v15 = vpop.f32.mrf.mxu1 }
 0x56c   : > { %1695 = vmatmul.msk.bf16.vlgmr.msrb.gmra.mxu3 %vm696_vm5, %v1057_v16 }
 0x56d   : > { %1197 = vmatpush.bf16.msra.mxu3 %v1812_v11 }
 0x571   : > { %1198 = vmatpush.bf16.msra.mxu3 %v1811_v14 }
 0x572   : > { %1712 = vmatmul.msk.bf16.vlgmr.msrb.gmra.mxu2 %vm553_vm0, %v2161_v38 }
 0x57c   : > { %1726 = vmatmul.msk.bf16.vlgmr.msra.gmra.mxu3 %vm553_vm0, %v2161_v38 }
 0x5d5   : > { %v929_v17 = vpop.f32.mrf.mxu2 }
 0x5d6   : > { %v949_v63 = vadd.f32 %v2240_v45, %v929_v17  ;;  %v1743_v45 = vld [vmem:[%s2434_s9 + $0xc] sm:$0xf] }
 0x5d7   : > { %v1300_v16 = vsel %vm733_vm6, %v1743_v45, 0 }
 0x5d8   : > { %1309 = vmatpush.bf16.msrb.mxu3 %v1300_v16 }
 0x5dd   : > { %v931_v18 = vpop.f32.mrf.mxu2 }
 0x5e5   : > { %v1053_v22 = vpop.f32.mrf.mxu2 }
 0x5e6   : > { %v1054_v23 = vadd.f32 %v1875_v19, %v1053_v22 }
 0x5e8   : > { %v1091_v24 = vpack.c.bf16 %v1054_v23, %v1054_v23 }
 0x5ea   : > { %v1096_v25 = vsel %vm733_vm6, %v1091_v24, 0  ;;  %v1879_v24 = vld [vmem:[%s2435_s10] ss:$0 sm:$0xff] }
 0x5eb   : > { %1105 = vmatpush.bf16.msra.mxu0 %v1096_v25 }
 0x5ed   : > { %v1055_v26 = vpop.f32.mrf.mxu2 }
 0x5ef   : > { %v1074_v27 = vpop.f32.mrf.mxu3  ;;  %1232 = vmatpush.bf16.msrb.mxu0 %v1814_v46  ;;  %v1880_v46 = vld [vmem:[%s2436_s11] ss:$0 sm:$0xff] }
 0x5f0   : > { %v1078_v28 = vsel %vm550_vm7, -inf, %v1074_v27 }
 0x5f1   : > { %v1079_v29 = vsel %vm696_vm5, %v1078_v28, -inf }
 0x5f2   : > { %1080 = vmax.xlane.f32.xlu0 %v1079_v29 }
 0x5f3   : > { %1233 = vmatpush.bf16.msrb.mxu0 %v1813_v47 }
 0x5f5   : > { %v1165_v30 = vpop.f32.mrf.mxu2 }
 0x5f6   : > { %v1166_v56 = vadd.f32 %v1876_v55, %v1165_v30  ;;  %v1821_v55 = vld [vmem:[%s2440_s15 + $0x20] sm:$0xff] }
 0x5f7   : > { %v1076_v31 = vpop.f32.mrf.mxu3 }
 0x5f8   : > { %v1239_v59 = vpack.c.bf16 %v1166_v56, %v1166_v56  ;;  %v1820_v56 = vld [vmem:[%s2440_s15 + $0x18] sm:$0xff] }
 0x5fd   : > { %v1167_v33 = vpop.f32.mrf.mxu2 }
 0x5ff   : > { %v1200_v34 = vpop.f32.mrf.mxu3 }
 0x600   : > { %v1201_v35 = vadd.f32 %v1877_v32, %v1200_v34  ;;  %v1815_v34 = vld [vmem:[%s2438_s13] sm:$0xff] }
 0x602   : > { %v1240_v36 = vpack.c.bf16 %v1201_v35, %v1201_v35 }
 0x604   : > { %v1245_v37 = vsel %vm696_vm5, %v1240_v36, 0 }
 0x605   : > { %1254 = vmatpush.bf16.xpose.msra.mxu1 %v1245_v37 }
 0x607   : > { %v1202_v39 = vpop.f32.mrf.mxu3 }
 0x665   : > { %v1081_v40 = vpop.xlane.xlu0 %1080 }
 0x666   : > { %v1082_v41 = vsub.f32 %v1078_v28, %v1081_v40 }
 0x668   : > { %v1083_v42 = vmul.f32 1.442695, %v1082_v41 }
 0x66a   : > { %1896 = vpow2.f32 %v1083_v42 }
 0x670   : > { %v1897_v43 = vpop.eup %1896 }
 0x671   : > { %v1085_v44 = vsel %vm696_vm5, %v1897_v43, 0.0 }
 0x672   : > { %1086 = vadd.xlane.f32.xlu1 %v1085_v44 }
 0x6e5   : > { %v1087_v48 = vpop.xlane.xlu1 %1086 }
 0x6e6   : > { %1898 = vrcp.f32 %v1087_v48 }
 0x6ec   : > { %v1899_v49 = vpop.eup %1898 }
 0x6ed   : > { %v1089_v50 = vmul.f32 %v1899_v49, %v1897_v43 }
 0x6ef   : > { %v1090_v51 = vpack.c.bf16 %v1089_v50, %v1089_v50 }
 0x6f1   : > { %1696 = vmatmul.msk.bf16.vlgmr.msra.gmra.mxu0 %vm696_vm5, %v1090_v51 }
 0x701   : > { %1740 = vmatmul.msk.bf16.vlgmr.msrb.gmra.mxu0 %vm553_vm0, %v2161_v38 }
 0x76e   : > { %v1107_v52 = vpop.f32.mrf.mxu0 }
 0x76f   : > { %v1111_v53 = vpack.c.bf16 %v1107_v52, %v1107_v52  ;;  %v1824_v52 = vld [vmem:[%s2440_s15 + $0x38] sm:$0xff] }
 0x771   : > { %1698 = vmatmul.msk.bf16.vlgmr.msrb.gmra.mxu1 %vm696_vm5, %v1111_v53  ;;  %v1823_v53 = vld [vmem:[%s2440_s15 + $0x30] sm:$0xff] }
 0x772   : > { %1481 = vmatpush.bf16.msrb.mxu1 %v1824_v52 }
 0x776   : > { %v1109_v54 = vpop.f32.mrf.mxu0  ;;  %1482 = vmatpush.bf16.msrb.mxu1 %v1823_v53 }
 0x777   : > { %v1822_v54 = vld [vmem:[%s2440_s15 + $0x28] sm:$0xff] }
 0x77a   : > { %1483 = vmatpush.bf16.msrb.mxu1 %v1822_v54 }
 0x77e   : > { %v1235_v58 = vpop.f32.mrf.mxu0  ;;  %1484 = vmatpush.bf16.msrb.mxu1 %v1821_v55 }
 0x77f   : > { %v1236_v60 = vadd.f32 %v1878_v57, %v1235_v58  ;;  %v1819_v57 = vld [vmem:[%s2440_s15 + $0x10] sm:$0xff]  ;;  %v1882_v58 = vld [vmem:[%s2439_s14] ss:$0 sm:$0xff] }
 0x781   : > { %v1273_v61 = vpack.c.bf16 %v1236_v60, %v1236_v60  ;;  %1741 = vmatmul.msk.bf16.vlgmr.msra.gmra.mxu1 %vm696_vm5, %v1239_v59  ;;  %v1818_v59 = vld [vmem:[%s2440_s15 + $0x8] sm:$0xff] }
 0x782   : > { %1485 = vmatpush.bf16.msrb.mxu1 %v1820_v56 }
 0x783   : > { %v1278_v38 = vsel %vm733_vm6, %v1273_v61, 0 }
 0x784   : > { %1287 = vmatpush.bf16.msra.mxu2 %v1278_v38  ;;  %v1817_v38 = vld [vmem:[%s2440_s15] sm:$0xff] }
 0x786   : > { %v1237_v62 = vpop.f32.mrf.mxu0  ;;  %1486 = vmatpush.bf16.msrb.mxu1 %v1819_v57 }
 0x78a   : > { %1487 = vmatpush.bf16.msrb.mxu1 %v1818_v59 }
 0x78e   : > { %1488 = vmatpush.bf16.msrb.mxu1 %v1817_v38 }
 0x7ee   : > { %v1129_v1 = vpop.f32.mrf.mxu1 }
 0x7ef   : > { %v1133_v2 = vadd.f32 %v1129_v1, %v949_v63 }
 0x7f6   : > { %v1131_v3 = vpop.f32.mrf.mxu1 }
 0x7fe   : > { %v1256_v4 = vpop.f32.mrf.mxu1 }
 0x7ff   : > { %v1260_v7 = vsel %vm550_vm7, -inf, %v1256_v4 }
 0x800   : > { %v1261_v9 = vsel %vm696_vm5, %v1260_v7, -inf }
 0x801   : > { %1262 = vmax.xlane.f32.xlu2 %v1261_v9 }
 0x806   : > { %v1258_v10 = vpop.f32.mrf.mxu1 }
 0x874   : > { %v1263_v11 = vpop.xlane.xlu2 %1262 }
 0x875   : > { %v1264_v12 = vsub.f32 %v1260_v7, %v1263_v11 }
 0x877   : > { %v1265_v13 = vmul.f32 1.442695, %v1264_v12 }
 0x879   : > { %1900 = vpow2.f32 %v1265_v13 }
 0x87f   : > { %v1901_v14 = vpop.eup %1900 }
 0x880   : > { %v1267_v15 = vsel %vm696_vm5, %v1901_v14, 0.0 }
 0x881   : > { %1268 = vadd.xlane.f32.xlu0 %v1267_v15 }
 0x8f4   : > { %v1269_v5 = vpop.xlane.xlu0 %1268 }
 0x8f5   : > { %1902 = vrcp.f32 %v1269_v5 }
 0x8fb   : > { %v1903_v6 = vpop.eup %1902 }
 0x8fc   : > { %v1271_v17 = vmul.f32 %v1903_v6, %v1901_v14  ;;  %v1883_v6 = vld [vmem:[%s2441_s16] ss:$0 sm:$0xff] }
 0x8fe   : > { %v1272_v18 = vpack.c.bf16 %v1271_v17, %v1271_v17 }
 0x900   : > { %1742 = vmatmul.msk.bf16.vlgmr.msra.gmra.mxu2 %vm696_vm5, %v1272_v18 }
 0x983   : > { %v1289_v19 = vpop.f32.mrf.mxu2 }
 0x984   : > { %v1293_v20 = vpack.c.bf16 %v1289_v19, %v1289_v19 }
 0x986   : > { %1744 = vmatmul.msk.bf16.vlgmr.msrb.gmra.mxu3 %vm696_vm5, %v1293_v20 }
 0x98b   : > { %v1291_v21 = vpop.f32.mrf.mxu2 }
 0xa09   : > { %v1311_v22 = vpop.f32.mrf.mxu3 }
 0xa0a   : > { %v1315_v23 = vadd.f32 %v1311_v22, %v1133_v2 }
 0xa0c   : > { %v1316_v25 = vadd.f32 %v1315_v23, %v2118_v0  ;;  %v1816_v0 = vld [vmem:[%s2438_s13 + $0x8] sm:$0xff] }
 0xa0d   : > { %1384 = vmatpush.bf16.msra.mxu0 %v1816_v0 }
 0xa0e   : > { %v2340_v26 = vadd.f32 %v1879_v24, %v1316_v25 }
 0xa10   : > { %v1324_v27 = vsel %vm553_vm0, %v2340_v26, 0.0 }
 0xa11   : > { %1325 = vadd.xlane.f32.xlu1 %v1324_v27  ;;  %v1313_v28 = vpop.f32.mrf.mxu3  ;;  %1385 = vmatpush.bf16.msra.mxu0 %v1815_v34 }
 0xa84   : > { %v1326_v29 = vpop.xlane.xlu1 %1325 }
 0xa85   : > { %v1327_v30 = vmul.f32 %v1326_v29, %v2122_v8 }
 0xa87   : > { %v1328_v31 = vsub.f32 %v2340_v26, %v1327_v30 }
 0xa89   : > { %v1329_v32 = vmul.f32 %v1328_v31, %v1328_v31 }
 0xa8b   : > { %v1330_v33 = vsel %vm553_vm0, %v1329_v32, 0.0 }
 0xa8c   : > { %1331 = vadd.xlane.f32.xlu2 %v1330_v33 }
 0xaff   : > { %v1332_v35 = vpop.xlane.xlu2 %1331 }
 0xb00   : > { %v1333_v36 = vmul.f32 %v1332_v35, %v2122_v8  ;;  %v1881_v8 = vld [vmem:[%s2437_s12] ss:$0 sm:$0xff] }
 0xb02   : > { %v1334_v37 = vadd.f32 1e-05, %v1333_v36 }
 0xb04   : > { %1904 = vrsqrt.f32 %v1334_v37  ;;  %vm1341_vm9 = vweird.f32 %v1334_v37 }
 0xb0a   : > { %v1905_v39 = vpop.eup %1904 }
 0xb0b   : > { %v1336_v40 = vmul.f32 %v1905_v39, %v1334_v37  ;;  %vm1342_vm8 = vweird.f32 %v1905_v39 }
 0xb0c   : > { %vm1343_vm10 = vmor %vm1341_vm9, %vm1342_vm8 }
 0xb0d   : > { %v1337_v41 = vmul.f32 %v1905_v39, %v1336_v40 }
 0xb0f   : > { %v1338_v42 = vmul.f32 0.5, %v1337_v41 }
 0xb11   : > { %v1339_v43 = vsub.f32 1.5, %v1338_v42 }
 0xb13   : > { %v1340_v44 = vmul.f32 %v1905_v39, %v1339_v43 }
 0xb15   : > { %v1344_v47 = vsel %vm1343_vm10, %v1905_v39, %v1340_v44 }
 0xb16   : > { %v1345_v48 = vmul.f32 %v1344_v47, %v1328_v31 }
 0xb18   : > { %v1349_v49 = vmul.f32 %v1880_v46, %v1345_v48 }
 0xb1a   : > { %v1353_v50 = vadd.f32 %v1881_v8, %v1349_v49 }
 0xb1c   : > { %v1354_v51 = vpack.c.bf16 %v1353_v50, %v1353_v50 }
 0xb1e   : > { %1753 = vmatmul.msk.bf16.vlgmr.msra.gmra.mxu0 %vm553_vm0, %v1354_v51 }
 0xb9b   : > { %v1387_v60 = vpop.f32.mrf.mxu0 }
 0xb9c   : > { %v1388_v61 = vadd.f32 %v1882_v58, %v1387_v60 }
 0xb9e   : > { %v1754_v62 = vmul.f32 -1.702, %v1388_v61 }
 0xba0   : > { %v1393_v63 = vmul.f32 1.442695, %v1754_v62 }
 0xba2   : > { %1906 = vpow2.f32 %v1393_v63 }
 0xba3   : > { %v1389_v1 = vpop.f32.mrf.mxu0 }
 0xba8   : > { %v1907_v2 = vpop.eup %1906 }
 0xba9   : > { %v1395_v3 = vadd.f32 1.0, %v1907_v2 }
 0xbab   : > { %1908 = vrcp.f32 %v1395_v3  ;;  %v1407_v10 = vand.u32 2147483648, %v1395_v3  ;;  %v1405_v12 = vand.u32 2147483647, %v1395_v3  ;;  %vm1401_vm12 = vweird.f32 %v1395_v3 }
 0xbad   : > { %v1408_v14 = vor.u32 1.1754944e-38, %v1407_v10  ;;  %vm1406_vm14 = vcmp.eq.f32.partialorder %v1405_v12, 8.507059e+37 }
 0xbb1   : > { %v1909_v4 = vpop.eup %1908 }
 0xbb2   : > { %v1397_v7 = vmul.f32 %v1909_v4, %v1395_v3  ;;  %vm1402_vm11 = vweird.f32 %v1909_v4 }
 0xbb3   : > { %vm1403_vm13 = vmor %vm1401_vm12, %vm1402_vm11 }
 0xbb4   : > { %v1398_v9 = vsub.f32 1.0, %v1397_v7 }
 0xbb6   : > { %v1399_v11 = vmul.f32 %v1909_v4, %v1398_v9 }
 0xbb8   : > { %v1400_v13 = vadd.f32 %v1909_v4, %v1399_v11 }
 0xbba   : > { %v1404_v15 = vsel %vm1403_vm13, %v1909_v4, %v1400_v13 }
 0xbbb   : > { %v1409_v45 = vsel %vm1406_vm14, %v1408_v14, %v1404_v15 }
 0xbbc   : > { %v1411_v16 = vmul.f32 %v1409_v45, %v1388_v61 }
 0xbbe   : > { %v1412_v5 = vpack.c.bf16 %v1411_v16, %v1411_v16 }
 0xbc0   : > { %1489 = vmatmul.bf16.vlgmr.msrb.gmra.mxu1 %v1412_v5 }
 0xc3d   : > { %v1490_v17 = vpop.f32.mrf.mxu1 }
 0xc3e   : > { %v1491_v18 = vadd.f32 %v1883_v6, %v1490_v17 }
 0xc40   : > { %v1494_v19 = vadd.f32 %v1491_v18, %v2340_v26 }
 0xc42   : > { %1495 = vst.msk [vmem:[%s539_s22] sm:$0xff] %vm553_vm0, %v1494_v19 }
 0xc43   : > { %1937 = shalt.err (!%p1934_p3)
}
 0xc44   : > { %1825 = dma.vmem_to_hbm [thread:$0]  (%p2103_p5), %s1510_s23, 128, %s1512_s2, %s1497_s28  }
 0xc45   : > { %v1492_v20 = vpop.f32.mrf.mxu1 }
 0xc46 PF: > { %p1831_p4 = scmp.ge.s32.totalorder %s1972_s27, 2  ;;  %s1523_s21 = sand.u32 1, %s1960_s24  }
 0xc47   : > { %s1524_s22 = scalar_lea.sflag [#allocation3], %s1523_s21 }
 0xc48   : > { %p1828_p7 = pnand %p1831_p4, %p2107_p6 }
 0xc4a   : > { %p1829_p8 = pneg %p1828_p7 }
 0xc4c   : > { %1955 = dma.done.wait (%p1829_p8), %s1524_s22, 128  }
 0xc4d   : > { %1957 = vsyncadd (%p1829_p8), %s1524_s22, 4294967168  ;;  %s2462_s27 = sld [smem:[#allocation6_spill]]  ;;  %s2465_s24 = smov %s1964_s25 }
 0xc4e   : > { %s2463_s3 = sld [smem:[#allocation5_spill]] }
 0xc4f   : > { %s2464_s26 = sld [smem:[#allocation7_spill]] }
 0xc53   : > { %p27_p9 = scmp.ge.s32.totalorder %s2462_s27, 4  }
 0xc54   : > { %s2466_s25 = smov %s2463_s3 }
 0xc55   :  { %29 = sbr.rel (!%p27_p9) target bundleno = 8 (0x8), region = 144 }
 0xc5a   :  { %1530 = vsyncpa [#allocation3], 1 }
 0xc5b   :  { %1532 = vsyncpa [#allocation3 + $0x1], 1 }

</bundles_post_ra>
